<compile_context>
chip_gen: v7x
topology: tpu7x:2x2x1
jax: 0.10.0
libtpu: 0.0.40
codegen_flags: <defaults>
</compile_context>

<pallas_src>
import functools

import jax
import jax.numpy as jnp
from jax.experimental import pallas as pl
from jax.experimental.pallas import tpu as pltpu

d_model = 512
d_ff = 2048
LN_EPS = 1e-5  # torch.nn.LayerNorm default eps


def ffn_ln_kernel(x_ref, w1_ref, w2_ref, o_ref):
    """Fused FFN + residual + LayerNorm for one row-tile.

    x_ref : (TM, d_model)   f32 input rows
    w1_ref: (d_model, d_ff) bf16 first linear weight (y = x @ W layout)
    w2_ref: (d_ff, d_model) bf16 second linear weight
    o_ref : (TM, d_model)   output rows
    """
    x_f32 = x_ref[...].astype(jnp.float32)          # residual (f32)
    x_bf = x_f32.astype(jnp.bfloat16)                # MXU operand

    # Linear(d_model -> d_ff, bias=False) + ReLU. bf16 operands, f32 accumulate.
    h = jnp.dot(x_bf, w1_ref[...], preferred_element_type=jnp.float32)
    h = jnp.maximum(h, 0.0)

    # Linear(d_ff -> d_model, bias=False) + residual (epilogue stays f32).
    y = jnp.dot(h.astype(jnp.bfloat16), w2_ref[...],
                preferred_element_type=jnp.float32) + x_f32

    # LayerNorm over d_model. Fresh nn.LayerNorm(d_model) in forward() => gamma=1, beta=0.
    mean = jnp.mean(y, axis=-1, keepdims=True)
    centered = y - mean
    var = jnp.mean(centered * centered, axis=-1, keepdims=True)
    o_ref[...] = (centered * jax.lax.rsqrt(var + LN_EPS)).astype(o_ref.dtype)


@functools.partial(jax.jit, static_argnames=("tm",))
def poswise_ffn(inputs, w1, w2, *, tm=512):
    """inputs: [batch, seq, d_model]; w1: [d_model, d_ff]; w2: [d_ff, d_model]."""
    B, S, D = inputs.shape
    assert D == d_model
    M = B * S

    # Effective row tile: <= tm, multiple of 8 (f32 sublane), and when there is
    # enough work, at least 2 grid steps so both v7x TensorCores get a share.
    tm_eff = min(tm, M)
    if M >= 16:
        tm_eff = min(tm_eff, pl.cdiv(M, 2))
    tm_eff = max(8, (tm_eff // 8) * 8)

    n_steps = pl.cdiv(M, tm_eff)
    M_pad = n_steps * tm_eff

    x2d = inputs.reshape(M, D)
    if M_pad != M:
        # Pad the ragged last tile with zeros; LN(0-row) stays finite (zeros) and
        # padded rows are sliced off below.
        x2d = jnp.pad(x2d, ((0, M_pad - M), (0, 0)))

    # bf16 weights: full-rate MXU feed, half the resident VMEM footprint.
    w1_bf = w1.astype(jnp.bfloat16)
    w2_bf = w2.astype(jnp.bfloat16)

    bytes_accessed = (
        M_pad * D * x2d.dtype.itemsize        # x in
        + w1_bf.size * 2 + w2_bf.size * 2     # resident weights (bf16), read once
        + M_pad * D * inputs.dtype.itemsize   # out
    )
    cost = pl.CostEstimate(
        flops=4 * M_pad * d_model * d_ff,     # 2 matmuls, 2*M*K*N flops each
        transcendentals=M_pad,                # one rsqrt per row
        bytes_accessed=bytes_accessed,
    )

    out2d = pl.pallas_call(
        ffn_ln_kernel,
        out_shape=jax.ShapeDtypeStruct((M_pad, D), inputs.dtype),
        grid_spec=pltpu.PrefetchScalarGridSpec(
            num_scalar_prefetch=0,
            grid=(n_steps,),
            in_specs=[
                pl.BlockSpec((tm_eff, D), lambda i: (i, 0)),          # x row tile
                pl.BlockSpec((d_model, d_ff), lambda i: (0, 0),       # W1 resident
                             pipeline_mode=pl.Buffered(1)),
                pl.BlockSpec((d_ff, d_model), lambda i: (0, 0),       # W2 resident
                             pipeline_mode=pl.Buffered(1)),
            ],
            out_specs=pl.BlockSpec((tm_eff, D), lambda i: (i, 0)),
        ),
        compiler_params=pltpu.CompilerParams(
            # Megacore: row tiles are independent -> shard grid across TCs.
            dimension_semantics=("parallel",),
            # ~48 MiB: bf16 resident weights (4 MiB) + double-buffered row tiles
            # + f32 intermediates, with headroom even on v7x's 64 MiB VMEM.
            vmem_limit_bytes=48 << 20,
        ),
        cost_estimate=cost,
    )(x2d, w1_bf, w2_bf)

    if M_pad != M:
        out2d = out2d[:M]
    return out2d.reshape(B, S, D)


if __name__ == "__main__":
    key = jax.random.PRNGKey(0)
    k_x, k_w1, k_w2 = jax.random.split(key, 3)

    batch, seq = 2, 8
    x = jax.random.normal(k_x, (batch, seq, d_model), dtype=jnp.float32)

    # Deterministic weight init (kaiming-uniform-like scale, bias=False as in module).
    # Stored transposed relative to torch's (out, in) layout so y = x @ W.
    bound1 = 1.0 / (d_model ** 0.5)
    bound2 = 1.0 / (d_ff ** 0.5)
    w1 = jax.random.uniform(k_w1, (d_model, d_ff), jnp.float32, -bound1, bound1)
    w2 = jax.random.uniform(k_w2, (d_ff, d_model), jnp.float32, -bound2, bound2)

    out = poswise_ffn(x, w1, w2)  # default tm=512; shrinks automatically for small M
    jax.block_until_ready(out)

    # Pure-JAX reference (emulating the kernel's bf16 matmul operands, f32 accum).
    x2d = x.reshape(-1, d_model)
    x_bf = x2d.astype(jnp.bfloat16).astype(jnp.float32)
    w1_bf = w1.astype(jnp.bfloat16).astype(jnp.float32)
    w2_bf = w2.astype(jnp.bfloat16).astype(jnp.float32)
    h_ref = jnp.maximum(x_bf @ w1_bf, 0.0)
    y_ref = h_ref.astype(jnp.bfloat16).astype(jnp.float32) @ w2_bf + x2d
    mu = y_ref.mean(-1, keepdims=True)
    var = ((y_ref - mu) ** 2).mean(-1, keepdims=True)
    ref = ((y_ref - mu) / jnp.sqrt(var + LN_EPS)).reshape(batch, seq, d_model)

    err = float(jnp.max(jnp.abs(out - ref)))
    assert err < 2e-2, f"mismatch vs reference: max abs err = {err}"

    print("KERNEL_OK")
</pallas_src>

<mosaic_0001>
module attributes {stable_mosaic.version = 11 : i64} {
  func.func @ffn_ln_kernel(%arg0: i32, %arg1: memref<8x512xf32, #tpu.memory_space<vmem>>, %arg2: memref<512x2048xbf16, #tpu.memory_space<vmem>>, %arg3: memref<2048x512xbf16, #tpu.memory_space<vmem>>, %arg4: memref<8x512xf32, #tpu.memory_space<vmem>>) attributes {dimension_semantics = [#tpu.dimension_semantics<parallel>], iteration_bounds = array<i64: 2>, scalar_prefetch = 0 : i64, scratch_operands = 0 : i64, tpu.core_type = #tpu.core_type<tc>, window_params = [{transform_indices = @transform_0, window_bounds = array<i64: 8, 512>}, {pipeline_mode = #tpu.pipeline_mode<synchronous>, transform_indices = @transform_1, window_bounds = array<i64: 512, 2048>}, {pipeline_mode = #tpu.pipeline_mode<synchronous>, transform_indices = @transform_2, window_bounds = array<i64: 2048, 512>}, {transform_indices = @transform_3, window_bounds = array<i64: 8, 512>}]} {
    %c0 = arith.constant 0 : index
    %c0_0 = arith.constant 0 : index
    %0 = vector.load %arg1[%c0, %c0_0] : memref<8x512xf32, #tpu.memory_space<vmem>>, vector<8x512xf32>
    %1 = arith.truncf %0 : vector<8x512xf32> to vector<8x512xbf16>
    %c0_1 = arith.constant 0 : index
    %c0_2 = arith.constant 0 : index
    %2 = vector.load %arg2[%c0_1, %c0_2] : memref<512x2048xbf16, #tpu.memory_space<vmem>>, vector<512x2048xbf16>
    %cst = arith.constant dense<0.000000e+00> : vector<8x2048xf32>
    %3 = tpu.matmul %1, %2, %cst {dimension_numbers = #tpu.dot_dimension_numbers<[1], [0], [0], [1], [0, 0, 1, 1], [], []>} : vector<8x512xbf16>, vector<512x2048xbf16>, vector<8x2048xf32> -> vector<8x2048xf32>
    %cst_3 = arith.constant 0.000000e+00 : f32
    %4 = vector.broadcast %cst_3 : f32 to vector<8x2048xf32>
    %5 = arith.maximumf %3, %4 : vector<8x2048xf32>
    %6 = arith.truncf %5 : vector<8x2048xf32> to vector<8x2048xbf16>
    %c0_4 = arith.constant 0 : index
    %c0_5 = arith.constant 0 : index
    %7 = vector.load %arg3[%c0_4, %c0_5] : memref<2048x512xbf16, #tpu.memory_space<vmem>>, vector<2048x512xbf16>
    %cst_6 = arith.constant dense<0.000000e+00> : vector<8x512xf32>
    %8 = tpu.matmul %6, %7, %cst_6 {dimension_numbers = #tpu.dot_dimension_numbers<[1], [0], [0], [1], [0, 0, 1, 1], [], []>} : vector<8x2048xbf16>, vector<2048x512xbf16>, vector<8x512xf32> -> vector<8x512xf32>
    %9 = arith.addf %8, %0 : vector<8x512xf32>
    %cst_7 = arith.constant dense<0.000000e+00> : vector<8xf32>
    %10 = vector.multi_reduction <add>, %9, %cst_7 [1] : vector<8x512xf32> to vector<8xf32>
    %11 = vector.shape_cast %10 : vector<8xf32> to vector<8x1xf32>
    %cst_8 = arith.constant 5.120000e+02 : f32
    %12 = vector.broadcast %cst_8 : f32 to vector<8x1xf32>
    %13 = arith.divf %11, %12 : vector<8x1xf32>
    %14 = vector.broadcast %13 : vector<8x1xf32> to vector<8x512xf32>
    %15 = arith.subf %9, %14 : vector<8x512xf32>
    %16 = arith.mulf %15, %15 : vector<8x512xf32>
    %cst_9 = arith.constant dense<0.000000e+00> : vector<8xf32>
    %17 = vector.multi_reduction <add>, %16, %cst_9 [1] : vector<8x512xf32> to vector<8xf32>
    %18 = vector.shape_cast %17 : vector<8xf32> to vector<8x1xf32>
    %cst_10 = arith.constant 5.120000e+02 : f32
    %19 = vector.broadcast %cst_10 : f32 to vector<8x1xf32>
    %20 = arith.divf %18, %19 : vector<8x1xf32>
    %cst_11 = arith.constant 9.99999974E-6 : f32
    %21 = vector.broadcast %cst_11 : f32 to vector<8x1xf32>
    %22 = arith.addf %20, %21 : vector<8x1xf32>
    %23 = math.rsqrt %22 : vector<8x1xf32>
    %24 = vector.broadcast %23 : vector<8x1xf32> to vector<8x512xf32>
    %25 = arith.mulf %15, %24 : vector<8x512xf32>
    %c0_12 = arith.constant 0 : index
    %c0_13 = arith.constant 0 : index
    %26 = vector.load %arg4[%c0_12, %c0_13] : memref<8x512xf32, #tpu.memory_space<vmem>>, vector<8x512xf32>
    tpu.vector_store %arg4[%c0_12, %c0_13], %25 {strides = array<i32>} : memref<8x512xf32, #tpu.memory_space<vmem>>, vector<8x512xf32>,
    return
  }
  func.func @transform_0(%arg0: i32) -> (i32, i32) {
    %c0_i32 = arith.constant 0 : i32
    %c0_i32_0 = arith.constant 0 : i32
    return %arg0, %c0_i32 : i32, i32
  }
  func.func @transform_1(%arg0: i32) -> (i32, i32) {
    %c0_i32 = arith.constant 0 : i32
    %c0_i32_0 = arith.constant 0 : i32
    %c0_i32_1 = arith.constant 0 : i32
    return %c0_i32, %c0_i32_0 : i32, i32
  }
  func.func @transform_2(%arg0: i32) -> (i32, i32) {
    %c0_i32 = arith.constant 0 : i32
    %c0_i32_0 = arith.constant 0 : i32
    %c0_i32_1 = arith.constant 0 : i32
    return %c0_i32, %c0_i32_0 : i32, i32
  }
  func.func @transform_3(%arg0: i32) -> (i32, i32) {
    %c0_i32 = arith.constant 0 : i32
    %c0_i32_0 = arith.constant 0 : i32
    return %arg0, %c0_i32 : i32, i32
  }
}

</mosaic_0001>

<bundles_post_ra>
// kernel: poswise_ffn.1
= control target key start
LH: loop header
LB: loop body
LE: loop exit
PB: predicated region body
PF: predicated region fallthrough
CT: control target
= control target key end

     0   :  { %8 = vsyncpa [#allocation3], 0  ;;  %s13068_s0 = inlined_call_operand.vmem [shape: f32[16,512], index: 0, kind: input, shape index: {}]   ;;  %s13069_s1 = inlined_call_operand.vmem [shape: bf16[512,2048], index: 1, kind: input, shape index: {}]   ;;  %s13070_s2 = inlined_call_operand.vmem [shape: bf16[2048,512], index: 2, kind: input, shape index: {}]   ;;  %s13071_s3 = inlined_call_operand.hbm [shape: f32[16,512], index: 3, kind: output, shape index: {}]  }
   0x1   :  { %10 = vsyncpa [#allocation3 + $0x1], 0  ;;  %s9798_s12 = smov 0   ;;  %s9800_s13 = smov 0  }
   0x2   :  { %s9802_s14 = smov 0   ;;  %s9804_s15 = smov 0  }
   0x3 LB: > { %s9819_s16 = sadd.s32 4294967295, %s9775_s15   ;;  %s7770_s17 = sadd.s32 4294967294, %s9775_s15   ;;  %s9775_s15 = sphi %s9804_s15, %s13077_s15   ;;  %s9771_s14 = sphi %s9802_s14, %s13076_s14   ;;  %s9767_s13 = sphi %s9800_s13, %s13075_s13   ;;  %s9763_s12 = sphi %s9798_s12, %s13074_s12  }
   0x4   : > { %s9823_s18 = sadd.s32 1, %s9775_s15   ;;  %s91_s19 = sadd.s32 1, %s9771_s14 }
   0x5   : > { %s88_s20 = ssub.s32 %s9775_s15, %s9823_s18  ;;  %p101_p0 = scmp.ne.s32.totalorder %s9771_s14, %s9767_s13 }
   0x6   : > { %p89_p1 = scmp.eq.s32.totalorder %s88_s20, 0  ;;  %p102_p2 = scmp.eq.s32.totalorder %s9819_s16, 1 }
   0x7   : > { %p107_p3 = scmp.ne.s32.totalorder %s9767_s13, %s9763_s12  ;;  %p108_p4 = scmp.eq.s32.totalorder %s7770_s17, 1 }
   0x8   : > { %s9834_s21 = scalar_select %p89_p1, %s9771_s14, %s91_s19  }
   0x9   : > { %p9836_p5 = por %p102_p2, %p101_p0  ;;  %p9840_p6 = por %p108_p4, %p107_p3 }
   0xa   : > { %p7773_p7 = scmp.ge.s32.totalorder %s9775_s15, 1  ;;  %p140_p8 = scmp.lt.s32.totalorder %s9775_s15, 3 }
   0xc   : > { %p141_p9 = pnand %p7773_p7, %p140_p8 }
   0xd   : > { %v177_v0 = vld [vmem:[%s13069_s1] sm:$0xff] (!%p141_p9)  ;;  %v178_v2 = vld [vmem:[%s13069_s1 + $0x8] sm:$0xff] (!%p141_p9)  ;;  %p164_p10 = scmp.lt.s32.totalorder (!%p141_p9), %s9819_s16, 1  ;;  %s8807_s8 = sshll.u32 (!%p141_p9), %s9819_s16, 9 }
   0xe   : > { %144 = sbr.rel (%p141_p9) target bundleno = 1590 (0x636), region = 32  ;;  %v185_v1 = vld [vmem:[%s13069_s1 + $0x40] sm:$0xff] (!%p141_p9)  ;;  %v186_v4 = vld [vmem:[%s13069_s1 + $0x48] sm:$0xff] (!%p141_p9)  ;;  %s13026_s19 = scalar_lea.hbm (!%p141_p9), %s13071_s3, %s8807_s8 }
   0xf   : > { %v7778_v3 = vcombine.high (!%p141_p9), %v177_v0, %v185_v1  ;;  %v7777_v5 = vcombine.low (!%p141_p9), %v177_v0, %v185_v1  ;;  %v193_v6 = vld [vmem:[%s13069_s1 + $0x80] sm:$0xff] (!%p141_p9)  ;;  %v7780_v8 = vcombine.high (!%p141_p9), %v178_v2, %v186_v4  ;;  %v7779_v9 = vcombine.low (!%p141_p9), %v178_v2, %v186_v4  ;;  %v194_v11 = vld [vmem:[%s13069_s1 + $0x88] sm:$0xff] (!%p141_p9)  ;;  %s9777_s24 = smov (!%p141_p9), [#allocation2]  }
  0x10   : > { %v201_v7 = vld [vmem:[%s13069_s1 + $0xc0] sm:$0xff] (!%p141_p9)  ;;  %v202_v12 = vld [vmem:[%s13069_s1 + $0xc8] sm:$0xff] (!%p141_p9)  ;;  %s9717_s25 = sshll.u32 (!%p141_p9), %s9777_s24, 4  ;;  %s9718_s25 = int_to_ptr.vmem [resolvable:$false] %s9717_s25 }
  0x11   : > { %v7794_v10 = vcombine.high (!%p141_p9), %v193_v6, %v201_v7  ;;  %v209_v13 = vld [vmem:[%s13069_s1 + $0x100] sm:$0xff] (!%p141_p9)  ;;  %3249 = vmatprep.subr.bf16.mxu0 (!%p141_p9), %v7778_v3  ;;  %v7796_v14 = vcombine.high (!%p141_p9), %v194_v11, %v202_v12  ;;  %v210_v16 = vld [vmem:[%s13069_s1 + $0x108] sm:$0xff] (!%p141_p9)  ;;  %3331 = vmatprep.subr.bf16.mxu1 (!%p141_p9), %v7780_v8  ;;  %v7793_v18 = vcombine.low (!%p141_p9), %v193_v6, %v201_v7  ;;  %s9719_s27 = scalar_lea.vmem (!%p141_p9), %s9718_s25, 1024 }
  0x12   : > { %v217_v15 = vld [vmem:[%s13069_s1 + $0x140] sm:$0xff] (!%p141_p9)  ;;  %v218_v17 = vld [vmem:[%s13069_s1 + $0x148] sm:$0xff] (!%p141_p9)  ;;  %3250 = vmatpush1.bf16.msra.mxu0 (!%p141_p9), %v7777_v5  ;;  %3332 = vmatpush1.bf16.msra.mxu1 (!%p141_p9), %v7779_v9  ;;  %v7795_v19 = vcombine.low (!%p141_p9), %v194_v11, %v202_v12 }
  0x13   : > { %3251 = vmatprep.subr.bf16.mxu0 (!%p141_p9), %v7794_v10  ;;  %v7810_v20 = vcombine.high (!%p141_p9), %v209_v13, %v217_v15  ;;  %3333 = vmatprep.subr.bf16.mxu1 (!%p141_p9), %v7796_v14  ;;  %v7812_v21 = vcombine.high (!%p141_p9), %v210_v16, %v218_v17  ;;  %v225_v22 = vld [vmem:[%s13069_s1 + $0x180] sm:$0xff] (!%p141_p9)  ;;  %v226_v24 = vld [vmem:[%s13069_s1 + $0x188] sm:$0xff] (!%p141_p9)  ;;  %v7809_v26 = vcombine.low (!%p141_p9), %v209_v13, %v217_v15 }
  0x14   : > { %v233_v23 = vld [vmem:[%s13069_s1 + $0x1c0] sm:$0xff] (!%p141_p9)  ;;  %v234_v25 = vld [vmem:[%s13069_s1 + $0x1c8] sm:$0xff] (!%p141_p9)  ;;  %v7811_v27 = vcombine.low (!%p141_p9), %v210_v16, %v218_v17 }
  0x15   : > { %v7826_v28 = vcombine.high %v225_v22, %v233_v23  ;;  %v7828_v29 = vcombine.high %v226_v24, %v234_v25  ;;  %v241_v30 = vld [vmem:[%s13069_s1 + $0x200] sm:$0xff]  ;;  %v242_v32 = vld [vmem:[%s13069_s1 + $0x208] sm:$0xff]  ;;  %s165_s28 = scalar_select %p164_p10, %s9819_s16, 1  ;;  %v7825_v34 = vcombine.low %v225_v22, %v233_v23  ;;  %v7827_v35 = vcombine.low %v226_v24, %v234_v25 }
  0x16   : > { %3252 = vmatpush1.bf16.msra.mxu0 %v7793_v18  ;;  %3334 = vmatpush1.bf16.msra.mxu1 %v7795_v19  ;;  %v249_v31 = vld [vmem:[%s13069_s1 + $0x240] sm:$0xff]  ;;  %v250_v33 = vld [vmem:[%s13069_s1 + $0x248] sm:$0xff] }
  0x17   : > { %3253 = vmatprep.subr.bf16.mxu0 %v7810_v20  ;;  %3335 = vmatprep.subr.bf16.mxu1 %v7812_v21  ;;  %v7842_v36 = vcombine.high %v241_v30, %v249_v31  ;;  %v7844_v37 = vcombine.high %v242_v32, %v250_v33  ;;  %v257_v38 = vld [vmem:[%s13069_s1 + $0x280] sm:$0xff]  ;;  %v258_v40 = vld [vmem:[%s13069_s1 + $0x288] sm:$0xff]  ;;  %s8806_s10 = sshll.u32 %s165_s28, 5  ;;  %v7841_v42 = vcombine.low %v241_v30, %v249_v31 }
  0x18   : > { %v265_v39 = vld [vmem:[%s13069_s1 + $0x2c0] sm:$0xff]  ;;  %v266_v41 = vld [vmem:[%s13069_s1 + $0x2c8] sm:$0xff]  ;;  %v7843_v43 = vcombine.low %v242_v32, %v250_v33  ;;  %s9929_s26 = scalar_lea.vmem %s13068_s0, %s8806_s10 }
  0x19   : > { %v7858_v44 = vcombine.high %v257_v38, %v265_v39  ;;  %v7860_v45 = vcombine.high %v258_v40, %v266_v41  ;;  %v273_v46 = vld [vmem:[%s13069_s1 + $0x300] sm:$0xff]  ;;  %v274_v48 = vld [vmem:[%s13069_s1 + $0x308] sm:$0xff]  ;;  %v7857_v50 = vcombine.low %v257_v38, %v265_v39  ;;  %v7859_v51 = vcombine.low %v258_v40, %v266_v41 }
  0x1a   : > { %3254 = vmatpush1.bf16.msra.mxu0 %v7809_v26  ;;  %3336 = vmatpush1.bf16.msra.mxu1 %v7811_v27  ;;  %v281_v47 = vld [vmem:[%s13069_s1 + $0x340] sm:$0xff]  ;;  %v282_v49 = vld [vmem:[%s13069_s1 + $0x348] sm:$0xff] }
  0x1b   : > { %3255 = vmatprep.subr.bf16.mxu0 %v7826_v28  ;;  %3337 = vmatprep.subr.bf16.mxu1 %v7828_v29  ;;  %v7874_v52 = vcombine.high %v273_v46, %v281_v47  ;;  %v170_v53 = vld [vmem:[%s9929_s26 + $0x8] sm:$0xff]  ;;  %v7876_v54 = vcombine.high %v274_v48, %v282_v49  ;;  %v289_v55 = vld [vmem:[%s13069_s1 + $0x380] sm:$0xff]  ;;  %v7873_v60 = vcombine.low %v273_v46, %v281_v47 }
  0x1c   : > { %v297_v56 = vld [vmem:[%s13069_s1 + $0x3c0] sm:$0xff]  ;;  %v9944_v57 = vpack.c.bf16 %v170_v53, %v170_v53  ;;  %v290_v58 = vld [vmem:[%s13069_s1 + $0x388] sm:$0xff]  ;;  %v7875_v61 = vcombine.low %v274_v48, %v282_v49 }
  0x1d   : > { %v298_v59 = vld [vmem:[%s13069_s1 + $0x3c8] sm:$0xff]  ;;  %v7890_v62 = vcombine.high %v289_v55, %v297_v56  ;;  %v305_v0 = vld [vmem:[%s13069_s1 + $0x400] sm:$0xff]  ;;  %v7889_v4 = vcombine.low %v289_v55, %v297_v56 }
  0x1e   : > { %3256 = vmatpush1.bf16.msra.mxu0 %v7825_v34  ;;  %3338 = vmatpush1.bf16.msra.mxu1 %v7827_v35  ;;  %v7892_v63 = vcombine.high %v290_v58, %v298_v59  ;;  %v313_v1 = vld [vmem:[%s13069_s1 + $0x440] sm:$0xff]  ;;  %v306_v2 = vld [vmem:[%s13069_s1 + $0x408] sm:$0xff]  ;;  %v7891_v5 = vcombine.low %v290_v58, %v298_v59 }
  0x1f   : > { %3257 = vmatprep.subr.bf16.mxu0 %v7842_v36  ;;  %3339 = vmatprep.subr.bf16.mxu1 %v7844_v37  ;;  %v314_v3 = vld [vmem:[%s13069_s1 + $0x448] sm:$0xff]  ;;  %v7906_v6 = vcombine.high %v305_v0, %v313_v1  ;;  %v321_v8 = vld [vmem:[%s13069_s1 + $0x480] sm:$0xff]  ;;  %v7905_v12 = vcombine.low %v305_v0, %v313_v1 }
  0x20   : > { %3281 = vmatprep.mubr.bf16.mxu0 %v9944_v57  ;;  %3363 = vmatprep.mubr.bf16.mxu1 %v9944_v57  ;;  %v7908_v7 = vcombine.high %v306_v2, %v314_v3  ;;  %v329_v9 = vld [vmem:[%s13069_s1 + $0x4c0] sm:$0xff]  ;;  %v322_v10 = vld [vmem:[%s13069_s1 + $0x488] sm:$0xff]  ;;  %v7907_v13 = vcombine.low %v306_v2, %v314_v3 }
  0x21   : > { %v330_v11 = vld [vmem:[%s13069_s1 + $0x4c8] sm:$0xff]  ;;  %v7922_v14 = vcombine.high %v321_v8, %v329_v9  ;;  %v337_v16 = vld [vmem:[%s13069_s1 + $0x500] sm:$0xff]  ;;  %v7921_v20 = vcombine.low %v321_v8, %v329_v9 }
  0x22   : > { %3258 = vmatpush1.bf16.msra.mxu0 %v7841_v42  ;;  %3340 = vmatpush1.bf16.msra.mxu1 %v7843_v43  ;;  %v7924_v15 = vcombine.high %v322_v10, %v330_v11  ;;  %v345_v17 = vld [vmem:[%s13069_s1 + $0x540] sm:$0xff]  ;;  %v338_v18 = vld [vmem:[%s13069_s1 + $0x508] sm:$0xff]  ;;  %v7923_v21 = vcombine.low %v322_v10, %v330_v11 }
  0x23   : > { %3259 = vmatprep.subr.bf16.mxu0 %v7858_v44  ;;  %3341 = vmatprep.subr.bf16.mxu1 %v7860_v45  ;;  %v346_v19 = vld [vmem:[%s13069_s1 + $0x548] sm:$0xff]  ;;  %v7938_v22 = vcombine.high %v337_v16, %v345_v17  ;;  %v353_v24 = vld [vmem:[%s13069_s1 + $0x580] sm:$0xff]  ;;  %v7937_v28 = vcombine.low %v337_v16, %v345_v17 }
  0x24   : > { %v7940_v23 = vcombine.high %v338_v18, %v346_v19  ;;  %v361_v25 = vld [vmem:[%s13069_s1 + $0x5c0] sm:$0xff]  ;;  %v354_v26 = vld [vmem:[%s13069_s1 + $0x588] sm:$0xff]  ;;  %v7939_v29 = vcombine.low %v338_v18, %v346_v19 }
  0x25   : > { %v362_v27 = vld [vmem:[%s13069_s1 + $0x5c8] sm:$0xff]  ;;  %v7954_v30 = vcombine.high %v353_v24, %v361_v25  ;;  %v369_v32 = vld [vmem:[%s13069_s1 + $0x600] sm:$0xff]  ;;  %v7953_v36 = vcombine.low %v353_v24, %v361_v25 }
  0x26   : > { %3260 = vmatpush1.bf16.msra.mxu0 %v7857_v50  ;;  %3342 = vmatpush1.bf16.msra.mxu1 %v7859_v51  ;;  %v7956_v31 = vcombine.high %v354_v26, %v362_v27  ;;  %v377_v33 = vld [vmem:[%s13069_s1 + $0x640] sm:$0xff]  ;;  %v370_v34 = vld [vmem:[%s13069_s1 + $0x608] sm:$0xff]  ;;  %v7955_v37 = vcombine.low %v354_v26, %v362_v27 }
  0x27   : > { %3261 = vmatprep.subr.bf16.mxu0 %v7874_v52  ;;  %3343 = vmatprep.subr.bf16.mxu1 %v7876_v54  ;;  %v378_v35 = vld [vmem:[%s13069_s1 + $0x648] sm:$0xff]  ;;  %v7970_v38 = vcombine.high %v369_v32, %v377_v33  ;;  %v385_v40 = vld [vmem:[%s13069_s1 + $0x680] sm:$0xff]  ;;  %v7969_v44 = vcombine.low %v369_v32, %v377_v33 }
  0x28   : > { %v7972_v39 = vcombine.high %v370_v34, %v378_v35  ;;  %v393_v41 = vld [vmem:[%s13069_s1 + $0x6c0] sm:$0xff]  ;;  %v386_v42 = vld [vmem:[%s13069_s1 + $0x688] sm:$0xff]  ;;  %v7971_v45 = vcombine.low %v370_v34, %v378_v35 }
  0x29   : > { %v394_v43 = vld [vmem:[%s13069_s1 + $0x6c8] sm:$0xff]  ;;  %v7986_v46 = vcombine.high %v385_v40, %v393_v41  ;;  %v401_v48 = vld [vmem:[%s13069_s1 + $0x700] sm:$0xff]  ;;  %v7985_v52 = vcombine.low %v385_v40, %v393_v41 }
  0x2a   : > { %3262 = vmatpush1.bf16.msra.mxu0 %v7873_v60  ;;  %3344 = vmatpush1.bf16.msra.mxu1 %v7875_v61  ;;  %v7988_v47 = vcombine.high %v386_v42, %v394_v43  ;;  %v409_v49 = vld [vmem:[%s13069_s1 + $0x740] sm:$0xff]  ;;  %v402_v50 = vld [vmem:[%s13069_s1 + $0x708] sm:$0xff]  ;;  %v7987_v53 = vcombine.low %v386_v42, %v394_v43 }
  0x2b   : > { %3263 = vmatprep.subr.bf16.mxu0 %v7890_v62  ;;  %3345 = vmatprep.subr.bf16.mxu1 %v7892_v63  ;;  %v410_v51 = vld [vmem:[%s13069_s1 + $0x748] sm:$0xff]  ;;  %v8002_v54 = vcombine.high %v401_v48, %v409_v49  ;;  %v417_v56 = vld [vmem:[%s13069_s1 + $0x780] sm:$0xff]  ;;  %v8001_v61 = vcombine.low %v401_v48, %v409_v49 }
  0x2c   : > { %v8004_v55 = vcombine.high %v402_v50, %v410_v51  ;;  %v425_v58 = vld [vmem:[%s13069_s1 + $0x7c0] sm:$0xff]  ;;  %v418_v59 = vld [vmem:[%s13069_s1 + $0x788] sm:$0xff]  ;;  %v8003_v62 = vcombine.low %v402_v50, %v410_v51 }
  0x2d   : > { %v426_v60 = vld [vmem:[%s13069_s1 + $0x7c8] sm:$0xff]  ;;  %v8018_v63 = vcombine.high %v417_v56, %v425_v58  ;;  %v433_v1 = vld [vmem:[%s13069_s1 + $0x800] sm:$0xff] }
  0x2e   : > { %3264 = vmatpush1.bf16.msra.mxu0 %v7889_v4  ;;  %3346 = vmatpush1.bf16.msra.mxu1 %v7891_v5  ;;  %v8020_v0 = vcombine.high %v418_v59, %v426_v60  ;;  %v441_v2 = vld [vmem:[%s13069_s1 + $0x840] sm:$0xff]  ;;  %v434_v3 = vld [vmem:[%s13069_s1 + $0x808] sm:$0xff]  ;;  %v8017_v5 = vcombine.low %v417_v56, %v425_v58 }
  0x2f   : > { %3265 = vmatprep.subr.bf16.mxu0 %v7906_v6  ;;  %3347 = vmatprep.subr.bf16.mxu1 %v7908_v7  ;;  %v442_v4 = vld [vmem:[%s13069_s1 + $0x848] sm:$0xff]  ;;  %v169_v6 = vld [vmem:[%s9929_s26] sm:$0xff]  ;;  %v8019_v7 = vcombine.low %v418_v59, %v426_v60  ;;  %v8034_v8 = vcombine.high %v433_v1, %v441_v2  ;;  %v8033_v16 = vcombine.low %v433_v1, %v441_v2 }
  0x30   : > { %v8036_v9 = vcombine.high %v434_v3, %v442_v4  ;;  %v449_v10 = vld [vmem:[%s13069_s1 + $0x880] sm:$0xff]  ;;  %v8035_v17 = vcombine.low %v434_v3, %v442_v4  ;;  %v490_v32 = vld [vmem:[%s13069_s1 + $0x9c8] sm:$0xff] }
  0x31   : > { %v457_v11 = vld [vmem:[%s13069_s1 + $0x8c0] sm:$0xff]  ;;  %v506_v40 = vld [vmem:[%s13069_s1 + $0xa48] sm:$0xff] }
  0x32   : > { %3266 = vmatpush1.bf16.msra.mxu0 %v7905_v12  ;;  %3348 = vmatpush1.bf16.msra.mxu1 %v7907_v13  ;;  %v10069_v12 = vpack.c.bf16 %v169_v6, %v169_v6  ;;  %v450_v13 = vld [vmem:[%s13069_s1 + $0x888] sm:$0xff]  ;;  %v8050_v18 = vcombine.high %v449_v10, %v457_v11  ;;  %v465_v19 = vld [vmem:[%s13069_s1 + $0x900] sm:$0xff]  ;;  %v8049_v25 = vcombine.low %v449_v10, %v457_v11 }
  0x33   : > { %3267 = vmatprep.subr.bf16.mxu0 %v7922_v14  ;;  %3349 = vmatprep.subr.bf16.mxu1 %v7924_v15  ;;  %v458_v14 = vld [vmem:[%s13069_s1 + $0x8c8] sm:$0xff]  ;;  %v172_v15 = vld [vmem:[%s9929_s26 + $0x18] sm:$0xff]  ;;  %v569_v6 = vld [vmem:[%s13069_s1 + $0xc40] sm:$0xff] }
  0x34   : > { %v10090_v24 = vpack.c.bf16 %v172_v15, %v172_v15  ;;  %v8051_v26 = vcombine.low %v450_v13, %v458_v14  ;;  %v522_v48 = vld [vmem:[%s13069_s1 + $0xac8] sm:$0xff]  ;;  %v585_v15 = vld [vmem:[%s13069_s1 + $0xcc0] sm:$0xff] }
  0x35   : > { %v538_v56 = vld [vmem:[%s13069_s1 + $0xb48] sm:$0xff] }
  0x36   : > { %3268 = vmatpush1.bf16.msra.mxu0 %v7921_v20  ;;  %3350 = vmatpush1.bf16.msra.mxu1 %v7923_v21  ;;  %v473_v20 = vld [vmem:[%s13069_s1 + $0x940] sm:$0xff]  ;;  %v8052_v21 = vcombine.high %v450_v13, %v458_v14  ;;  %v554_v1 = vld [vmem:[%s13069_s1 + $0xbc8] sm:$0xff] }
  0x37   : > { %3269 = vmatprep.subr.bf16.mxu0 %v7938_v22  ;;  %3351 = vmatprep.subr.bf16.mxu1 %v7940_v23  ;;  %v466_v22 = vld [vmem:[%s13069_s1 + $0x908] sm:$0xff]  ;;  %v8066_v27 = vcombine.high %v465_v19, %v473_v20  ;;  %v8065_v33 = vcombine.low %v465_v19, %v473_v20  ;;  %v577_v14 = vld [vmem:[%s13069_s1 + $0xc80] sm:$0xff] }
  0x38   : > { %v474_v23 = vld [vmem:[%s13069_s1 + $0x948] sm:$0xff] }
  0x39   : > { %v8067_v34 = vcombine.low %v466_v22, %v474_v23 }
  0x3a   : > { %3270 = vmatpush1.bf16.msra.mxu0 %v7937_v28  ;;  %3352 = vmatpush1.bf16.msra.mxu1 %v7939_v29  ;;  %v481_v28 = vld [vmem:[%s13069_s1 + $0x980] sm:$0xff] }
  0x3b   : > { %3271 = vmatprep.subr.bf16.mxu0 %v7954_v30  ;;  %3353 = vmatprep.subr.bf16.mxu1 %v7956_v31  ;;  %v489_v29 = vld [vmem:[%s13069_s1 + $0x9c0] sm:$0xff]  ;;  %v482_v30 = vld [vmem:[%s13069_s1 + $0x988] sm:$0xff]  ;;  %v8068_v31 = vcombine.high %v466_v22, %v474_v23 }
  0x3c   : > { %v8082_v35 = vcombine.high %v481_v28, %v489_v29  ;;  %v8081_v41 = vcombine.low %v481_v28, %v489_v29  ;;  %v8083_v42 = vcombine.low %v482_v30, %v490_v32  ;;  %v593_v22 = vld [vmem:[%s13069_s1 + $0xd00] sm:$0xff]  ;;  %v8177_v28 = vcombine.low %v577_v14, %v585_v15 }
  0x3d   : > { %v601_v23 = vld [vmem:[%s13069_s1 + $0xd40] sm:$0xff] }
  0x3e   : > { %3272 = vmatpush1.bf16.msra.mxu0 %v7953_v36  ;;  %3354 = vmatpush1.bf16.msra.mxu1 %v7955_v37  ;;  %v497_v36 = vld [vmem:[%s13069_s1 + $0xa00] sm:$0xff] }
  0x3f   : > { %3273 = vmatprep.subr.bf16.mxu0 %v7970_v38  ;;  %3355 = vmatprep.subr.bf16.mxu1 %v7972_v39  ;;  %v505_v37 = vld [vmem:[%s13069_s1 + $0xa40] sm:$0xff]  ;;  %v498_v38 = vld [vmem:[%s13069_s1 + $0xa08] sm:$0xff]  ;;  %v8084_v39 = vcombine.high %v482_v30, %v490_v32  ;;  %v8194_v30 = vcombine.high %v593_v22, %v601_v23 }
  0x40   : > { %v8098_v43 = vcombine.high %v497_v36, %v505_v37  ;;  %v8097_v49 = vcombine.low %v497_v36, %v505_v37  ;;  %v8099_v50 = vcombine.low %v498_v38, %v506_v40  ;;  %v617_v32 = vld [vmem:[%s13069_s1 + $0xdc0] sm:$0xff]  ;;  %v8193_v36 = vcombine.low %v593_v22, %v601_v23  ;;  %v204_v22 = vld [vmem:[%s13069_s1 + $0xd8] sm:$0xff] }
  0x42   : > { %3274 = vmatpush1.bf16.msra.mxu0 %v7969_v44  ;;  %3356 = vmatpush1.bf16.msra.mxu1 %v7971_v45  ;;  %v513_v44 = vld [vmem:[%s13069_s1 + $0xa80] sm:$0xff] }
  0x43   : > { %3275 = vmatprep.subr.bf16.mxu0 %v7986_v46  ;;  %3357 = vmatprep.subr.bf16.mxu1 %v7988_v47  ;;  %v521_v45 = vld [vmem:[%s13069_s1 + $0xac0] sm:$0xff]  ;;  %v514_v46 = vld [vmem:[%s13069_s1 + $0xa88] sm:$0xff]  ;;  %v8100_v47 = vcombine.high %v498_v38, %v506_v40 }
  0x44   : > { %v8114_v51 = vcombine.high %v513_v44, %v521_v45  ;;  %v8113_v58 = vcombine.low %v513_v44, %v521_v45  ;;  %v8115_v59 = vcombine.low %v514_v46, %v522_v48  ;;  %v633_v40 = vld [vmem:[%s13069_s1 + $0xe40] sm:$0xff] }
  0x46   : > { %3276 = vmatpush1.bf16.msra.mxu0 %v7985_v52  ;;  %3358 = vmatpush1.bf16.msra.mxu1 %v7987_v53  ;;  %v529_v52 = vld [vmem:[%s13069_s1 + $0xb00] sm:$0xff] }
  0x47   : > { %3277 = vmatprep.subr.bf16.mxu0 %v8002_v54  ;;  %3359 = vmatprep.subr.bf16.mxu1 %v8004_v55  ;;  %v537_v53 = vld [vmem:[%s13069_s1 + $0xb40] sm:$0xff]  ;;  %v530_v54 = vld [vmem:[%s13069_s1 + $0xb08] sm:$0xff]  ;;  %v8116_v55 = vcombine.high %v514_v46, %v522_v48 }
  0x48   : > { %v8130_v60 = vcombine.high %v529_v52, %v537_v53  ;;  %v8129_v2 = vcombine.low %v529_v52, %v537_v53  ;;  %v8131_v3 = vcombine.low %v530_v54, %v538_v56  ;;  %v649_v48 = vld [vmem:[%s13069_s1 + $0xec0] sm:$0xff] }
  0x4a   : > { %3278 = vmatpush1.bf16.msra.mxu0 %v8001_v61  ;;  %3360 = vmatpush1.bf16.msra.mxu1 %v8003_v62  ;;  %v545_v61 = vld [vmem:[%s13069_s1 + $0xb80] sm:$0xff] }
  0x4b   : > { %3279 = vmatprep.subr.bf16.mxu0 %v8018_v63  ;;  %3361 = vmatprep.subr.bf16.mxu1 %v8020_v0  ;;  %v553_v62 = vld [vmem:[%s13069_s1 + $0xbc0] sm:$0xff]  ;;  %v546_v63 = vld [vmem:[%s13069_s1 + $0xb88] sm:$0xff]  ;;  %v8132_v0 = vcombine.high %v530_v54, %v538_v56 }
  0x4c   : > { %v8146_v4 = vcombine.high %v545_v61, %v553_v62  ;;  %v8145_v10 = vcombine.low %v545_v61, %v553_v62  ;;  %v8147_v11 = vcombine.low %v546_v63, %v554_v1  ;;  %v665_v56 = vld [vmem:[%s13069_s1 + $0xf40] sm:$0xff] }
  0x4e   : > { %3280 = vmatpush1.bf16.msra.mxu0 %v8017_v5  ;;  %3362 = vmatpush1.bf16.msra.mxu1 %v8019_v7  ;;  %v561_v5 = vld [vmem:[%s13069_s1 + $0xc00] sm:$0xff]  ;;  %v562_v7 = vld [vmem:[%s13069_s1 + $0xc08] sm:$0xff] }
  0x4f   : > { %3290 = vmatprep.subr.bf16.mxu0 %v8034_v8  ;;  %3372 = vmatprep.subr.bf16.mxu1 %v8036_v9  ;;  %v8148_v8 = vcombine.high %v546_v63, %v554_v1  ;;  %v570_v9 = vld [vmem:[%s13069_s1 + $0xc48] sm:$0xff]  ;;  %v8162_v13 = vcombine.high %v561_v5, %v569_v6  ;;  %v8161_v19 = vcombine.low %v561_v5, %v569_v6  ;;  %v681_v1 = vld [vmem:[%s13069_s1 + $0xfc0] sm:$0xff] }
  0x50   : > { %v8163_v20 = vcombine.low %v562_v7, %v570_v9 }
  0x51   : > { %3282 = vmatmul.mubr.bf16.vlgmr.msra.gmra.mrb[0].mxu0 %v10069_v12  ;;  %3364 = vmatmul.mubr.bf16.vlgmr.msra.gmra.mrb[0].mxu1 %v10069_v12 }
  0x52   : > { %3291 = vmatpush1.bf16.msra.mxu0 %v8033_v16  ;;  %3373 = vmatpush1.bf16.msra.mxu1 %v8035_v17  ;;  %v578_v16 = vld [vmem:[%s13069_s1 + $0xc88] sm:$0xff]  ;;  %v8164_v17 = vcombine.high %v562_v7, %v570_v9  ;;  %v187_v9 = vld [vmem:[%s13069_s1 + $0x50] sm:$0xff] }
  0x53   : > { %3292 = vmatprep.subr.bf16.mxu0 %v8050_v18  ;;  %3374 = vmatprep.subr.bf16.mxu1 %v8052_v21  ;;  %v586_v18 = vld [vmem:[%s13069_s1 + $0xcc8] sm:$0xff]  ;;  %v8178_v21 = vcombine.high %v577_v14, %v585_v15  ;;  %v188_v14 = vld [vmem:[%s13069_s1 + $0x58] sm:$0xff] }
  0x54   : > { %3322 = vmatprep.mubr.bf16.mxu0 %v10090_v24  ;;  %3404 = vmatprep.mubr.bf16.mxu1 %v10090_v24  ;;  %v8179_v29 = vcombine.low %v578_v16, %v586_v18 }
  0x56   : > { %3293 = vmatpush1.bf16.msra.mxu0 %v8049_v25  ;;  %3375 = vmatpush1.bf16.msra.mxu1 %v8051_v26  ;;  %v594_v25 = vld [vmem:[%s13069_s1 + $0xd08] sm:$0xff]  ;;  %v8180_v26 = vcombine.high %v578_v16, %v586_v18  ;;  %v195_v18 = vld [vmem:[%s13069_s1 + $0x90] sm:$0xff] }
  0x57   : > { %3294 = vmatprep.subr.bf16.mxu0 %v8066_v27  ;;  %3376 = vmatprep.subr.bf16.mxu1 %v8068_v31  ;;  %v602_v27 = vld [vmem:[%s13069_s1 + $0xd48] sm:$0xff]  ;;  %v609_v31 = vld [vmem:[%s13069_s1 + $0xd80] sm:$0xff] }
  0x58   : > { %v8195_v37 = vcombine.low %v594_v25, %v602_v27  ;;  %v8210_v38 = vcombine.high %v609_v31, %v617_v32  ;;  %v8209_v44 = vcombine.low %v609_v31, %v617_v32  ;;  %v220_v32 = vld [vmem:[%s13069_s1 + $0x158] sm:$0xff] }
  0x5a   : > { %3295 = vmatpush1.bf16.msra.mxu0 %v8065_v33  ;;  %3377 = vmatpush1.bf16.msra.mxu1 %v8067_v34  ;;  %v610_v33 = vld [vmem:[%s13069_s1 + $0xd88] sm:$0xff]  ;;  %v8196_v34 = vcombine.high %v594_v25, %v602_v27 }
  0x5b   : > { %3296 = vmatprep.subr.bf16.mxu0 %v8082_v35  ;;  %3378 = vmatprep.subr.bf16.mxu1 %v8084_v39  ;;  %v618_v35 = vld [vmem:[%s13069_s1 + $0xdc8] sm:$0xff]  ;;  %v625_v39 = vld [vmem:[%s13069_s1 + $0xe00] sm:$0xff] }
  0x5c   : > { %v8211_v45 = vcombine.low %v610_v33, %v618_v35  ;;  %v8226_v46 = vcombine.high %v625_v39, %v633_v40  ;;  %v8225_v52 = vcombine.low %v625_v39, %v633_v40  ;;  %v236_v40 = vld [vmem:[%s13069_s1 + $0x1d8] sm:$0xff] }
  0x5e   : > { %3297 = vmatpush1.bf16.msra.mxu0 %v8081_v41  ;;  %3379 = vmatpush1.bf16.msra.mxu1 %v8083_v42  ;;  %v626_v41 = vld [vmem:[%s13069_s1 + $0xe08] sm:$0xff]  ;;  %v8212_v42 = vcombine.high %v610_v33, %v618_v35 }
  0x5f   : > { %3298 = vmatprep.subr.bf16.mxu0 %v8098_v43  ;;  %3380 = vmatprep.subr.bf16.mxu1 %v8100_v47  ;;  %v634_v43 = vld [vmem:[%s13069_s1 + $0xe48] sm:$0xff]  ;;  %v641_v47 = vld [vmem:[%s13069_s1 + $0xe80] sm:$0xff] }
  0x60   : > { %v8227_v53 = vcombine.low %v626_v41, %v634_v43  ;;  %v8242_v54 = vcombine.high %v641_v47, %v649_v48  ;;  %v8241_v61 = vcombine.low %v641_v47, %v649_v48  ;;  %v252_v48 = vld [vmem:[%s13069_s1 + $0x258] sm:$0xff] }
  0x62   : > { %3299 = vmatpush1.bf16.msra.mxu0 %v8097_v49  ;;  %3381 = vmatpush1.bf16.msra.mxu1 %v8099_v50  ;;  %v642_v49 = vld [vmem:[%s13069_s1 + $0xe88] sm:$0xff]  ;;  %v8228_v50 = vcombine.high %v626_v41, %v634_v43 }
  0x63   : > { %3300 = vmatprep.subr.bf16.mxu0 %v8114_v51  ;;  %3382 = vmatprep.subr.bf16.mxu1 %v8116_v55  ;;  %v650_v51 = vld [vmem:[%s13069_s1 + $0xec8] sm:$0xff]  ;;  %v657_v55 = vld [vmem:[%s13069_s1 + $0xf00] sm:$0xff] }
  0x64   : > { %v8243_v62 = vcombine.low %v642_v49, %v650_v51  ;;  %v8258_v63 = vcombine.high %v657_v55, %v665_v56  ;;  %v8257_v5 = vcombine.low %v657_v55, %v665_v56  ;;  %v268_v56 = vld [vmem:[%s13069_s1 + $0x2d8] sm:$0xff] }
  0x66   : > { %3301 = vmatpush1.bf16.msra.mxu0 %v8113_v58  ;;  %3383 = vmatpush1.bf16.msra.mxu1 %v8115_v59  ;;  %v658_v58 = vld [vmem:[%s13069_s1 + $0xf08] sm:$0xff]  ;;  %v8244_v59 = vcombine.high %v642_v49, %v650_v51 }
  0x67   : > { %3302 = vmatprep.subr.bf16.mxu0 %v8130_v60  ;;  %3384 = vmatprep.subr.bf16.mxu1 %v8132_v0  ;;  %v666_v60 = vld [vmem:[%s13069_s1 + $0xf48] sm:$0xff]  ;;  %v673_v0 = vld [vmem:[%s13069_s1 + $0xf80] sm:$0xff] }
  0x68   : > { %v8259_v6 = vcombine.low %v658_v58, %v666_v60  ;;  %v8274_v7 = vcombine.high %v673_v0, %v681_v1  ;;  %v8273_v15 = vcombine.low %v673_v0, %v681_v1  ;;  %v284_v1 = vld [vmem:[%s13069_s1 + $0x358] sm:$0xff] }
  0x6a   : > { %3303 = vmatpush1.bf16.msra.mxu0 %v8129_v2  ;;  %3385 = vmatpush1.bf16.msra.mxu1 %v8131_v3  ;;  %v674_v2 = vld [vmem:[%s13069_s1 + $0xf88] sm:$0xff]  ;;  %v8260_v3 = vcombine.high %v658_v58, %v666_v60 }
  0x6b   : > { %3304 = vmatprep.subr.bf16.mxu0 %v8146_v4  ;;  %3386 = vmatprep.subr.bf16.mxu1 %v8148_v8  ;;  %v682_v4 = vld [vmem:[%s13069_s1 + $0xfc8] sm:$0xff]  ;;  %v179_v8 = vld [vmem:[%s13069_s1 + $0x10] sm:$0xff] }
  0x6c   : > { %v8275_v16 = vcombine.low %v674_v2, %v682_v4  ;;  %v7781_v25 = vcombine.low %v179_v8, %v187_v9 }
  0x6e   : > { %3305 = vmatpush1.bf16.msra.mxu0 %v8145_v10  ;;  %3387 = vmatpush1.bf16.msra.mxu1 %v8147_v11  ;;  %v180_v10 = vld [vmem:[%s13069_s1 + $0x18] sm:$0xff]  ;;  %v8276_v11 = vcombine.high %v674_v2, %v682_v4 }
  0x6f   : > { %3306 = vmatprep.subr.bf16.mxu0 %v8162_v13  ;;  %3388 = vmatprep.subr.bf16.mxu1 %v8164_v17  ;;  %v171_v13 = vld [vmem:[%s9929_s26 + $0x10] sm:$0xff]  ;;  %v7782_v17 = vcombine.high %v179_v8, %v187_v9  ;;  %v300_v9 = vld [vmem:[%s13069_s1 + $0x3d8] sm:$0xff] }
  0x70   : > { %v10277_v23 = vpack.c.bf16 %v171_v13, %v171_v13 }
  0x72   : > { %3307 = vmatpush1.bf16.msra.mxu0 %v8161_v19  ;;  %3389 = vmatpush1.bf16.msra.mxu1 %v8163_v20  ;;  %v203_v19 = vld [vmem:[%s13069_s1 + $0xd0] sm:$0xff]  ;;  %v196_v20 = vld [vmem:[%s13069_s1 + $0x98] sm:$0xff] }
  0x73   : > { %3308 = vmatprep.subr.bf16.mxu0 %v8178_v21  ;;  %3390 = vmatprep.subr.bf16.mxu1 %v8180_v26  ;;  %v7784_v21 = vcombine.high %v180_v10, %v188_v14  ;;  %v7783_v26 = vcombine.low %v180_v10, %v188_v14  ;;  %v7798_v27 = vcombine.high %v195_v18, %v203_v19  ;;  %v307_v14 = vld [vmem:[%s13069_s1 + $0x410] sm:$0xff] }
  0x74   : > { %v7800_v31 = vcombine.high %v196_v20, %v204_v22  ;;  %v7797_v33 = vcombine.low %v195_v18, %v203_v19  ;;  %v316_v18 = vld [vmem:[%s13069_s1 + $0x458] sm:$0xff] }
  0x76   : > { %3309 = vmatpush1.bf16.msra.mxu0 %v8177_v28  ;;  %3391 = vmatpush1.bf16.msra.mxu1 %v8179_v29  ;;  %v211_v28 = vld [vmem:[%s13069_s1 + $0x110] sm:$0xff] }
  0x77   : > { %3310 = vmatprep.subr.bf16.mxu0 %v8194_v30  ;;  %3392 = vmatprep.subr.bf16.mxu1 %v8196_v34  ;;  %v219_v29 = vld [vmem:[%s13069_s1 + $0x150] sm:$0xff]  ;;  %v212_v30 = vld [vmem:[%s13069_s1 + $0x118] sm:$0xff]  ;;  %v7799_v34 = vcombine.low %v196_v20, %v204_v22 }
  0x78   : > { %v7814_v35 = vcombine.high %v211_v28, %v219_v29  ;;  %v7816_v39 = vcombine.high %v212_v30, %v220_v32  ;;  %v7813_v41 = vcombine.low %v211_v28, %v219_v29  ;;  %v323_v22 = vld [vmem:[%s13069_s1 + $0x490] sm:$0xff]  ;;  %v332_v28 = vld [vmem:[%s13069_s1 + $0x4d8] sm:$0xff] }
  0x7a   : > { %3311 = vmatpush1.bf16.msra.mxu0 %v8193_v36  ;;  %3393 = vmatpush1.bf16.msra.mxu1 %v8195_v37  ;;  %v227_v36 = vld [vmem:[%s13069_s1 + $0x190] sm:$0xff] }
  0x7b   : > { %3312 = vmatprep.subr.bf16.mxu0 %v8210_v38  ;;  %3394 = vmatprep.subr.bf16.mxu1 %v8212_v42  ;;  %v235_v37 = vld [vmem:[%s13069_s1 + $0x1d0] sm:$0xff]  ;;  %v228_v38 = vld [vmem:[%s13069_s1 + $0x198] sm:$0xff]  ;;  %v7815_v42 = vcombine.low %v212_v30, %v220_v32 }
  0x7c   : > { %v7830_v43 = vcombine.high %v227_v36, %v235_v37  ;;  %v7832_v47 = vcombine.high %v228_v38, %v236_v40  ;;  %v7829_v49 = vcombine.low %v227_v36, %v235_v37  ;;  %v339_v32 = vld [vmem:[%s13069_s1 + $0x510] sm:$0xff]  ;;  %v348_v36 = vld [vmem:[%s13069_s1 + $0x558] sm:$0xff] }
  0x7e   : > { %3313 = vmatpush1.bf16.msra.mxu0 %v8209_v44  ;;  %3395 = vmatpush1.bf16.msra.mxu1 %v8211_v45  ;;  %v243_v44 = vld [vmem:[%s13069_s1 + $0x210] sm:$0xff] }
  0x7f   : > { %3314 = vmatprep.subr.bf16.mxu0 %v8226_v46  ;;  %3396 = vmatprep.subr.bf16.mxu1 %v8228_v50  ;;  %v251_v45 = vld [vmem:[%s13069_s1 + $0x250] sm:$0xff]  ;;  %v244_v46 = vld [vmem:[%s13069_s1 + $0x218] sm:$0xff]  ;;  %v7831_v50 = vcombine.low %v228_v38, %v236_v40 }
  0x80   : > { %v7846_v51 = vcombine.high %v243_v44, %v251_v45  ;;  %v7848_v55 = vcombine.high %v244_v46, %v252_v48  ;;  %v7845_v58 = vcombine.low %v243_v44, %v251_v45  ;;  %v355_v40 = vld [vmem:[%s13069_s1 + $0x590] sm:$0xff]  ;;  %v364_v44 = vld [vmem:[%s13069_s1 + $0x5d8] sm:$0xff] }
  0x82   : > { %3315 = vmatpush1.bf16.msra.mxu0 %v8225_v52  ;;  %3397 = vmatpush1.bf16.msra.mxu1 %v8227_v53  ;;  %v259_v52 = vld [vmem:[%s13069_s1 + $0x290] sm:$0xff] }
  0x83   : > { %3316 = vmatprep.subr.bf16.mxu0 %v8242_v54  ;;  %3398 = vmatprep.subr.bf16.mxu1 %v8244_v59  ;;  %v267_v53 = vld [vmem:[%s13069_s1 + $0x2d0] sm:$0xff]  ;;  %v260_v54 = vld [vmem:[%s13069_s1 + $0x298] sm:$0xff]  ;;  %v7847_v59 = vcombine.low %v244_v46, %v252_v48 }
  0x84   : > { %v7862_v60 = vcombine.high %v259_v52, %v267_v53  ;;  %v7864_v0 = vcombine.high %v260_v54, %v268_v56  ;;  %v7861_v2 = vcombine.low %v259_v52, %v267_v53  ;;  %v371_v48 = vld [vmem:[%s13069_s1 + $0x610] sm:$0xff]  ;;  %v380_v52 = vld [vmem:[%s13069_s1 + $0x658] sm:$0xff] }
  0x86   : > { %3317 = vmatpush1.bf16.msra.mxu0 %v8241_v61  ;;  %3399 = vmatpush1.bf16.msra.mxu1 %v8243_v62  ;;  %v275_v61 = vld [vmem:[%s13069_s1 + $0x310] sm:$0xff] }
  0x87   : > { %3318 = vmatprep.subr.bf16.mxu0 %v8258_v63  ;;  %3400 = vmatprep.subr.bf16.mxu1 %v8260_v3  ;;  %v283_v62 = vld [vmem:[%s13069_s1 + $0x350] sm:$0xff]  ;;  %v276_v63 = vld [vmem:[%s13069_s1 + $0x318] sm:$0xff]  ;;  %v7863_v3 = vcombine.low %v260_v54, %v268_v56 }
  0x88   : > { %v7878_v4 = vcombine.high %v275_v61, %v283_v62  ;;  %v7880_v8 = vcombine.high %v276_v63, %v284_v1  ;;  %v7877_v10 = vcombine.low %v275_v61, %v283_v62  ;;  %v387_v56 = vld [vmem:[%s13069_s1 + $0x690] sm:$0xff]  ;;  %v396_v61 = vld [vmem:[%s13069_s1 + $0x6d8] sm:$0xff] }
  0x8a   : > { %3319 = vmatpush1.bf16.msra.mxu0 %v8257_v5  ;;  %3401 = vmatpush1.bf16.msra.mxu1 %v8259_v6  ;;  %v291_v5 = vld [vmem:[%s13069_s1 + $0x390] sm:$0xff] }
  0x8b   : > { %3320 = vmatprep.subr.bf16.mxu0 %v8274_v7  ;;  %3402 = vmatprep.subr.bf16.mxu1 %v8276_v11  ;;  %v299_v6 = vld [vmem:[%s13069_s1 + $0x3d0] sm:$0xff]  ;;  %v292_v7 = vld [vmem:[%s13069_s1 + $0x398] sm:$0xff]  ;;  %v7879_v11 = vcombine.low %v276_v63, %v284_v1 }
  0x8c   : > { %v7894_v13 = vcombine.high %v291_v5, %v299_v6  ;;  %v7893_v19 = vcombine.low %v291_v5, %v299_v6  ;;  %v7895_v20 = vcombine.low %v292_v7, %v300_v9  ;;  %v403_v1 = vld [vmem:[%s13069_s1 + $0x710] sm:$0xff]  ;;  %v412_v5 = vld [vmem:[%s13069_s1 + $0x758] sm:$0xff] }
  0x8e   : > { %3321 = vmatpush1.bf16.msra.mxu0 %v8273_v15  ;;  %3403 = vmatpush1.bf16.msra.mxu1 %v8275_v16  ;;  %v315_v15 = vld [vmem:[%s13069_s1 + $0x450] sm:$0xff]  ;;  %v308_v16 = vld [vmem:[%s13069_s1 + $0x418] sm:$0xff] }
  0x8f   : > { %3413 = vmatprep.subr.bf16.mxu0 %v7782_v17  ;;  %3495 = vmatprep.subr.bf16.mxu1 %v7784_v21  ;;  %v7896_v17 = vcombine.high %v292_v7, %v300_v9  ;;  %v7910_v21 = vcombine.high %v307_v14, %v315_v15  ;;  %v7909_v29 = vcombine.low %v307_v14, %v315_v15  ;;  %v419_v9 = vld [vmem:[%s13069_s1 + $0x790] sm:$0xff]  ;;  %v428_v14 = vld [vmem:[%s13069_s1 + $0x7d8] sm:$0xff] }
  0x90   : > { %v7911_v30 = vcombine.low %v308_v16, %v316_v18 }
  0x91   : > { %3323 = vmatmul.mubr.bf16.vlgmr.msra.gmra.mrb[0].mxu0 %v10277_v23  ;;  %3405 = vmatmul.mubr.bf16.vlgmr.msra.gmra.mrb[0].mxu1 %v10277_v23 }
  0x92   : > { %3414 = vmatpush1.bf16.msra.mxu0 %v7781_v25  ;;  %3496 = vmatpush1.bf16.msra.mxu1 %v7783_v26  ;;  %v331_v25 = vld [vmem:[%s13069_s1 + $0x4d0] sm:$0xff]  ;;  %v324_v26 = vld [vmem:[%s13069_s1 + $0x498] sm:$0xff] }
  0x93   : > { %3415 = vmatprep.subr.bf16.mxu0 %v7798_v27  ;;  %3497 = vmatprep.subr.bf16.mxu1 %v7800_v31  ;;  %v7912_v27 = vcombine.high %v308_v16, %v316_v18  ;;  %v7926_v31 = vcombine.high %v323_v22, %v331_v25  ;;  %v7925_v37 = vcombine.low %v323_v22, %v331_v25  ;;  %v435_v18 = vld [vmem:[%s13069_s1 + $0x810] sm:$0xff]  ;;  %v444_v22 = vld [vmem:[%s13069_s1 + $0x858] sm:$0xff] }
  0x94   : > { %3445 = vmatprep.mubr.bf16.mxu0 %v9944_v57  ;;  %3527 = vmatprep.mubr.bf16.mxu1 %v9944_v57  ;;  %v7927_v38 = vcombine.low %v324_v26, %v332_v28 }
  0x96   : > { %3416 = vmatpush1.bf16.msra.mxu0 %v7797_v33  ;;  %3498 = vmatpush1.bf16.msra.mxu1 %v7799_v34  ;;  %v347_v33 = vld [vmem:[%s13069_s1 + $0x550] sm:$0xff]  ;;  %v340_v34 = vld [vmem:[%s13069_s1 + $0x518] sm:$0xff] }
  0x97   : > { %3417 = vmatprep.subr.bf16.mxu0 %v7814_v35  ;;  %3499 = vmatprep.subr.bf16.mxu1 %v7816_v39  ;;  %v7928_v35 = vcombine.high %v324_v26, %v332_v28  ;;  %v7942_v39 = vcombine.high %v339_v32, %v347_v33  ;;  %v7941_v45 = vcombine.low %v339_v32, %v347_v33  ;;  %v451_v28 = vld [vmem:[%s13069_s1 + $0x890] sm:$0xff]  ;;  %v460_v32 = vld [vmem:[%s13069_s1 + $0x8d8] sm:$0xff] }
  0x98   : > { %v7943_v46 = vcombine.low %v340_v34, %v348_v36 }
  0x9a   : > { %3418 = vmatpush1.bf16.msra.mxu0 %v7813_v41  ;;  %3500 = vmatpush1.bf16.msra.mxu1 %v7815_v42  ;;  %v363_v41 = vld [vmem:[%s13069_s1 + $0x5d0] sm:$0xff]  ;;  %v356_v42 = vld [vmem:[%s13069_s1 + $0x598] sm:$0xff] }
  0x9b   : > { %3419 = vmatprep.subr.bf16.mxu0 %v7830_v43  ;;  %3501 = vmatprep.subr.bf16.mxu1 %v7832_v47  ;;  %v7944_v43 = vcombine.high %v340_v34, %v348_v36  ;;  %v7958_v47 = vcombine.high %v355_v40, %v363_v41  ;;  %v7957_v53 = vcombine.low %v355_v40, %v363_v41  ;;  %v467_v36 = vld [vmem:[%s13069_s1 + $0x910] sm:$0xff]  ;;  %v476_v40 = vld [vmem:[%s13069_s1 + $0x958] sm:$0xff] }
  0x9c   : > { %v7959_v54 = vcombine.low %v356_v42, %v364_v44 }
  0x9e   : > { %3420 = vmatpush1.bf16.msra.mxu0 %v7829_v49  ;;  %3502 = vmatpush1.bf16.msra.mxu1 %v7831_v50  ;;  %v379_v49 = vld [vmem:[%s13069_s1 + $0x650] sm:$0xff]  ;;  %v372_v50 = vld [vmem:[%s13069_s1 + $0x618] sm:$0xff] }
  0x9f   : > { %3421 = vmatprep.subr.bf16.mxu0 %v7846_v51  ;;  %3503 = vmatprep.subr.bf16.mxu1 %v7848_v55  ;;  %v7960_v51 = vcombine.high %v356_v42, %v364_v44  ;;  %v7974_v55 = vcombine.high %v371_v48, %v379_v49  ;;  %v7973_v62 = vcombine.low %v371_v48, %v379_v49  ;;  %v483_v44 = vld [vmem:[%s13069_s1 + $0x990] sm:$0xff]  ;;  %v492_v48 = vld [vmem:[%s13069_s1 + $0x9d8] sm:$0xff] }
  0xa0   : > { %v7975_v63 = vcombine.low %v372_v50, %v380_v52 }
  0xa2   : > { %3422 = vmatpush1.bf16.msra.mxu0 %v7845_v58  ;;  %3504 = vmatpush1.bf16.msra.mxu1 %v7847_v59  ;;  %v395_v58 = vld [vmem:[%s13069_s1 + $0x6d0] sm:$0xff]  ;;  %v388_v59 = vld [vmem:[%s13069_s1 + $0x698] sm:$0xff] }
  0xa3   : > { %3423 = vmatprep.subr.bf16.mxu0 %v7862_v60  ;;  %3505 = vmatprep.subr.bf16.mxu1 %v7864_v0  ;;  %v7976_v60 = vcombine.high %v372_v50, %v380_v52  ;;  %v7990_v0 = vcombine.high %v387_v56, %v395_v58  ;;  %v7989_v6 = vcombine.low %v387_v56, %v395_v58  ;;  %v499_v52 = vld [vmem:[%s13069_s1 + $0xa10] sm:$0xff]  ;;  %v508_v56 = vld [vmem:[%s13069_s1 + $0xa58] sm:$0xff] }
  0xa4   : > { %v7991_v7 = vcombine.low %v388_v59, %v396_v61 }
  0xa6   : > { %3424 = vmatpush1.bf16.msra.mxu0 %v7861_v2  ;;  %3506 = vmatpush1.bf16.msra.mxu1 %v7863_v3  ;;  %v411_v2 = vld [vmem:[%s13069_s1 + $0x750] sm:$0xff]  ;;  %v404_v3 = vld [vmem:[%s13069_s1 + $0x718] sm:$0xff] }
  0xa7   : > { %3425 = vmatprep.subr.bf16.mxu0 %v7878_v4  ;;  %3507 = vmatprep.subr.bf16.mxu1 %v7880_v8  ;;  %v7992_v4 = vcombine.high %v388_v59, %v396_v61  ;;  %v8006_v8 = vcombine.high %v403_v1, %v411_v2  ;;  %v8005_v15 = vcombine.low %v403_v1, %v411_v2  ;;  %v515_v61 = vld [vmem:[%s13069_s1 + $0xa90] sm:$0xff]  ;;  %v524_v1 = vld [vmem:[%s13069_s1 + $0xad8] sm:$0xff] }
  0xa8   : > { %v8007_v16 = vcombine.low %v404_v3, %v412_v5 }
  0xaa   : > { %3426 = vmatpush1.bf16.msra.mxu0 %v7877_v10  ;;  %3508 = vmatpush1.bf16.msra.mxu1 %v7879_v11  ;;  %v427_v10 = vld [vmem:[%s13069_s1 + $0x7d0] sm:$0xff]  ;;  %v420_v11 = vld [vmem:[%s13069_s1 + $0x798] sm:$0xff] }
  0xab   : > { %3427 = vmatprep.subr.bf16.mxu0 %v7894_v13  ;;  %3509 = vmatprep.subr.bf16.mxu1 %v7896_v17  ;;  %v8008_v13 = vcombine.high %v404_v3, %v412_v5  ;;  %v8022_v17 = vcombine.high %v419_v9, %v427_v10  ;;  %v8021_v25 = vcombine.low %v419_v9, %v427_v10  ;;  %v531_v5 = vld [vmem:[%s13069_s1 + $0xb10] sm:$0xff]  ;;  %v540_v9 = vld [vmem:[%s13069_s1 + $0xb58] sm:$0xff] }
  0xac   : > { %v8023_v26 = vcombine.low %v420_v11, %v428_v14 }
  0xae   : > { %3428 = vmatpush1.bf16.msra.mxu0 %v7893_v19  ;;  %3510 = vmatpush1.bf16.msra.mxu1 %v7895_v20  ;;  %v443_v19 = vld [vmem:[%s13069_s1 + $0x850] sm:$0xff]  ;;  %v436_v20 = vld [vmem:[%s13069_s1 + $0x818] sm:$0xff] }
  0xaf   : > { %3429 = vmatprep.subr.bf16.mxu0 %v7910_v21  ;;  %3511 = vmatprep.subr.bf16.mxu1 %v7912_v27  ;;  %v8024_v21 = vcombine.high %v420_v11, %v428_v14  ;;  %v8038_v27 = vcombine.high %v435_v18, %v443_v19  ;;  %v8037_v33 = vcombine.low %v435_v18, %v443_v19  ;;  %v547_v14 = vld [vmem:[%s13069_s1 + $0xb90] sm:$0xff]  ;;  %v556_v18 = vld [vmem:[%s13069_s1 + $0xbd8] sm:$0xff] }
  0xb0   : > { %v8039_v34 = vcombine.low %v436_v20, %v444_v22 }
  0xb2   : > { %3430 = vmatpush1.bf16.msra.mxu0 %v7909_v29  ;;  %3512 = vmatpush1.bf16.msra.mxu1 %v7911_v30  ;;  %v459_v29 = vld [vmem:[%s13069_s1 + $0x8d0] sm:$0xff]  ;;  %v452_v30 = vld [vmem:[%s13069_s1 + $0x898] sm:$0xff] }
  0xb3   : > { %3431 = vmatprep.subr.bf16.mxu0 %v7926_v31  ;;  %3513 = vmatprep.subr.bf16.mxu1 %v7928_v35  ;;  %v8040_v31 = vcombine.high %v436_v20, %v444_v22  ;;  %v8054_v35 = vcombine.high %v451_v28, %v459_v29  ;;  %v8053_v41 = vcombine.low %v451_v28, %v459_v29  ;;  %v563_v22 = vld [vmem:[%s13069_s1 + $0xc10] sm:$0xff]  ;;  %v572_v28 = vld [vmem:[%s13069_s1 + $0xc58] sm:$0xff] }
  0xb4   : > { %v8055_v42 = vcombine.low %v452_v30, %v460_v32 }
  0xb6   : > { %3432 = vmatpush1.bf16.msra.mxu0 %v7925_v37  ;;  %3514 = vmatpush1.bf16.msra.mxu1 %v7927_v38  ;;  %v475_v37 = vld [vmem:[%s13069_s1 + $0x950] sm:$0xff]  ;;  %v468_v38 = vld [vmem:[%s13069_s1 + $0x918] sm:$0xff] }
  0xb7   : > { %3433 = vmatprep.subr.bf16.mxu0 %v7942_v39  ;;  %3515 = vmatprep.subr.bf16.mxu1 %v7944_v43  ;;  %v8056_v39 = vcombine.high %v452_v30, %v460_v32  ;;  %v8070_v43 = vcombine.high %v467_v36, %v475_v37  ;;  %v8069_v49 = vcombine.low %v467_v36, %v475_v37  ;;  %v579_v32 = vld [vmem:[%s13069_s1 + $0xc90] sm:$0xff]  ;;  %v588_v36 = vld [vmem:[%s13069_s1 + $0xcd8] sm:$0xff] }
  0xb8   : > { %v8071_v50 = vcombine.low %v468_v38, %v476_v40 }
  0xba   : > { %3434 = vmatpush1.bf16.msra.mxu0 %v7941_v45  ;;  %3516 = vmatpush1.bf16.msra.mxu1 %v7943_v46  ;;  %v491_v45 = vld [vmem:[%s13069_s1 + $0x9d0] sm:$0xff]  ;;  %v484_v46 = vld [vmem:[%s13069_s1 + $0x998] sm:$0xff] }
  0xbb   : > { %3435 = vmatprep.subr.bf16.mxu0 %v7958_v47  ;;  %3517 = vmatprep.subr.bf16.mxu1 %v7960_v51  ;;  %v8072_v47 = vcombine.high %v468_v38, %v476_v40  ;;  %v8086_v51 = vcombine.high %v483_v44, %v491_v45  ;;  %v8085_v58 = vcombine.low %v483_v44, %v491_v45  ;;  %v595_v40 = vld [vmem:[%s13069_s1 + $0xd10] sm:$0xff]  ;;  %v604_v44 = vld [vmem:[%s13069_s1 + $0xd58] sm:$0xff] }
  0xbc   : > { %v8087_v59 = vcombine.low %v484_v46, %v492_v48 }
  0xbe   : > { %3436 = vmatpush1.bf16.msra.mxu0 %v7957_v53  ;;  %3518 = vmatpush1.bf16.msra.mxu1 %v7959_v54  ;;  %v507_v53 = vld [vmem:[%s13069_s1 + $0xa50] sm:$0xff]  ;;  %v500_v54 = vld [vmem:[%s13069_s1 + $0xa18] sm:$0xff] }
  0xbf   : > { %3437 = vmatprep.subr.bf16.mxu0 %v7974_v55  ;;  %3519 = vmatprep.subr.bf16.mxu1 %v7976_v60  ;;  %v8088_v55 = vcombine.high %v484_v46, %v492_v48  ;;  %v8102_v60 = vcombine.high %v499_v52, %v507_v53  ;;  %v8101_v2 = vcombine.low %v499_v52, %v507_v53  ;;  %v611_v48 = vld [vmem:[%s13069_s1 + $0xd90] sm:$0xff]  ;;  %v620_v52 = vld [vmem:[%s13069_s1 + $0xdd8] sm:$0xff] }
  0xc0   : > { %v8103_v3 = vcombine.low %v500_v54, %v508_v56 }
  0xc2   : > { %3438 = vmatpush1.bf16.msra.mxu0 %v7973_v62  ;;  %3520 = vmatpush1.bf16.msra.mxu1 %v7975_v63  ;;  %v523_v62 = vld [vmem:[%s13069_s1 + $0xad0] sm:$0xff]  ;;  %v516_v63 = vld [vmem:[%s13069_s1 + $0xa98] sm:$0xff] }
  0xc3   : > { %3439 = vmatprep.subr.bf16.mxu0 %v7990_v0  ;;  %3521 = vmatprep.subr.bf16.mxu1 %v7992_v4  ;;  %v8104_v0 = vcombine.high %v500_v54, %v508_v56  ;;  %v8118_v4 = vcombine.high %v515_v61, %v523_v62  ;;  %v8117_v10 = vcombine.low %v515_v61, %v523_v62  ;;  %v627_v56 = vld [vmem:[%s13069_s1 + $0xe10] sm:$0xff]  ;;  %v636_v61 = vld [vmem:[%s13069_s1 + $0xe58] sm:$0xff] }
  0xc4   : > { %v8119_v11 = vcombine.low %v516_v63, %v524_v1 }
  0xc6   : > { %3440 = vmatpush1.bf16.msra.mxu0 %v7989_v6  ;;  %3522 = vmatpush1.bf16.msra.mxu1 %v7991_v7  ;;  %v539_v6 = vld [vmem:[%s13069_s1 + $0xb50] sm:$0xff]  ;;  %v532_v7 = vld [vmem:[%s13069_s1 + $0xb18] sm:$0xff] }
  0xc7   : > { %3441 = vmatprep.subr.bf16.mxu0 %v8006_v8  ;;  %3523 = vmatprep.subr.bf16.mxu1 %v8008_v13  ;;  %v8120_v8 = vcombine.high %v516_v63, %v524_v1  ;;  %v8134_v13 = vcombine.high %v531_v5, %v539_v6  ;;  %v8133_v19 = vcombine.low %v531_v5, %v539_v6  ;;  %v643_v1 = vld [vmem:[%s13069_s1 + $0xe90] sm:$0xff]  ;;  %v652_v5 = vld [vmem:[%s13069_s1 + $0xed8] sm:$0xff] }
  0xc8   : > { %v8135_v20 = vcombine.low %v532_v7, %v540_v9 }
  0xca   : > { %3442 = vmatpush1.bf16.msra.mxu0 %v8005_v15  ;;  %3524 = vmatpush1.bf16.msra.mxu1 %v8007_v16  ;;  %v555_v15 = vld [vmem:[%s13069_s1 + $0xbd0] sm:$0xff]  ;;  %v548_v16 = vld [vmem:[%s13069_s1 + $0xb98] sm:$0xff] }
  0xcb   : > { %3443 = vmatprep.subr.bf16.mxu0 %v8022_v17  ;;  %3525 = vmatprep.subr.bf16.mxu1 %v8024_v21  ;;  %v8136_v17 = vcombine.high %v532_v7, %v540_v9  ;;  %v8150_v21 = vcombine.high %v547_v14, %v555_v15  ;;  %v8149_v29 = vcombine.low %v547_v14, %v555_v15  ;;  %v659_v9 = vld [vmem:[%s13069_s1 + $0xf10] sm:$0xff]  ;;  %v668_v14 = vld [vmem:[%s13069_s1 + $0xf58] sm:$0xff] }
  0xcc   : > { %v8151_v30 = vcombine.low %v548_v16, %v556_v18 }
  0xce   : > { %3444 = vmatpush1.bf16.msra.mxu0 %v8021_v25  ;;  %3526 = vmatpush1.bf16.msra.mxu1 %v8023_v26  ;;  %v571_v25 = vld [vmem:[%s13069_s1 + $0xc50] sm:$0xff]  ;;  %v564_v26 = vld [vmem:[%s13069_s1 + $0xc18] sm:$0xff] }
  0xcf   : > { %3454 = vmatprep.subr.bf16.mxu0 %v8038_v27  ;;  %3536 = vmatprep.subr.bf16.mxu1 %v8040_v31  ;;  %v8152_v27 = vcombine.high %v548_v16, %v556_v18  ;;  %v8166_v31 = vcombine.high %v563_v22, %v571_v25  ;;  %v8165_v37 = vcombine.low %v563_v22, %v571_v25  ;;  %v675_v18 = vld [vmem:[%s13069_s1 + $0xf90] sm:$0xff]  ;;  %v684_v22 = vld [vmem:[%s13069_s1 + $0xfd8] sm:$0xff] }
  0xd0   : > { %v8167_v38 = vcombine.low %v564_v26, %v572_v28 }
  0xd1   : > { %3446 = vmatmul.mubr.bf16.vlgmr.msra.gmra.mrb[4].mxu0 %v10069_v12  ;;  %3528 = vmatmul.mubr.bf16.vlgmr.msra.gmra.mrb[4].mxu1 %v10069_v12 }
  0xd2   : > { %3455 = vmatpush1.bf16.msra.mxu0 %v8037_v33  ;;  %3537 = vmatpush1.bf16.msra.mxu1 %v8039_v34  ;;  %v587_v33 = vld [vmem:[%s13069_s1 + $0xcd0] sm:$0xff]  ;;  %v580_v34 = vld [vmem:[%s13069_s1 + $0xc98] sm:$0xff] }
  0xd3   : > { %3456 = vmatprep.subr.bf16.mxu0 %v8054_v35  ;;  %3538 = vmatprep.subr.bf16.mxu1 %v8056_v39  ;;  %v8168_v35 = vcombine.high %v564_v26, %v572_v28  ;;  %v8182_v39 = vcombine.high %v579_v32, %v587_v33  ;;  %v8181_v45 = vcombine.low %v579_v32, %v587_v33  ;;  %v181_v28 = vld [vmem:[%s13069_s1 + $0x20] sm:$0xff]  ;;  %v190_v32 = vld [vmem:[%s13069_s1 + $0x68] sm:$0xff] }
  0xd4   : > { %3486 = vmatprep.mubr.bf16.mxu0 %v10090_v24  ;;  %3568 = vmatprep.mubr.bf16.mxu1 %v10090_v24  ;;  %v8183_v46 = vcombine.low %v580_v34, %v588_v36 }
  0xd6   : > { %3457 = vmatpush1.bf16.msra.mxu0 %v8053_v41  ;;  %3539 = vmatpush1.bf16.msra.mxu1 %v8055_v42  ;;  %v603_v41 = vld [vmem:[%s13069_s1 + $0xd50] sm:$0xff]  ;;  %v596_v42 = vld [vmem:[%s13069_s1 + $0xd18] sm:$0xff] }
  0xd7   : > { %3458 = vmatprep.subr.bf16.mxu0 %v8070_v43  ;;  %3540 = vmatprep.subr.bf16.mxu1 %v8072_v47  ;;  %v8184_v43 = vcombine.high %v580_v34, %v588_v36  ;;  %v8198_v47 = vcombine.high %v595_v40, %v603_v41  ;;  %v8197_v53 = vcombine.low %v595_v40, %v603_v41  ;;  %v197_v36 = vld [vmem:[%s13069_s1 + $0xa0] sm:$0xff]  ;;  %v206_v40 = vld [vmem:[%s13069_s1 + $0xe8] sm:$0xff] }
  0xd8   : > { %v8199_v54 = vcombine.low %v596_v42, %v604_v44 }
  0xda   : > { %3459 = vmatpush1.bf16.msra.mxu0 %v8069_v49  ;;  %3541 = vmatpush1.bf16.msra.mxu1 %v8071_v50  ;;  %v619_v49 = vld [vmem:[%s13069_s1 + $0xdd0] sm:$0xff]  ;;  %v612_v50 = vld [vmem:[%s13069_s1 + $0xd98] sm:$0xff] }
  0xdb   : > { %3460 = vmatprep.subr.bf16.mxu0 %v8086_v51  ;;  %3542 = vmatprep.subr.bf16.mxu1 %v8088_v55  ;;  %v8200_v51 = vcombine.high %v596_v42, %v604_v44  ;;  %v8214_v55 = vcombine.high %v611_v48, %v619_v49  ;;  %v8213_v62 = vcombine.low %v611_v48, %v619_v49  ;;  %v213_v44 = vld [vmem:[%s13069_s1 + $0x120] sm:$0xff]  ;;  %v222_v48 = vld [vmem:[%s13069_s1 + $0x168] sm:$0xff] }
  0xdc   : > { %v8215_v63 = vcombine.low %v612_v50, %v620_v52 }
  0xde   : > { %3461 = vmatpush1.bf16.msra.mxu0 %v8085_v58  ;;  %3543 = vmatpush1.bf16.msra.mxu1 %v8087_v59  ;;  %v635_v58 = vld [vmem:[%s13069_s1 + $0xe50] sm:$0xff]  ;;  %v628_v59 = vld [vmem:[%s13069_s1 + $0xe18] sm:$0xff] }
  0xdf   : > { %3462 = vmatprep.subr.bf16.mxu0 %v8102_v60  ;;  %3544 = vmatprep.subr.bf16.mxu1 %v8104_v0  ;;  %v8216_v60 = vcombine.high %v612_v50, %v620_v52  ;;  %v8230_v0 = vcombine.high %v627_v56, %v635_v58  ;;  %v8229_v6 = vcombine.low %v627_v56, %v635_v58  ;;  %v229_v52 = vld [vmem:[%s13069_s1 + $0x1a0] sm:$0xff]  ;;  %v238_v56 = vld [vmem:[%s13069_s1 + $0x1e8] sm:$0xff] }
  0xe0   : > { %v8231_v7 = vcombine.low %v628_v59, %v636_v61 }
  0xe2   : > { %3463 = vmatpush1.bf16.msra.mxu0 %v8101_v2  ;;  %3545 = vmatpush1.bf16.msra.mxu1 %v8103_v3  ;;  %v651_v2 = vld [vmem:[%s13069_s1 + $0xed0] sm:$0xff]  ;;  %v644_v3 = vld [vmem:[%s13069_s1 + $0xe98] sm:$0xff] }
  0xe3   : > { %3464 = vmatprep.subr.bf16.mxu0 %v8118_v4  ;;  %3546 = vmatprep.subr.bf16.mxu1 %v8120_v8  ;;  %v8232_v4 = vcombine.high %v628_v59, %v636_v61  ;;  %v8246_v8 = vcombine.high %v643_v1, %v651_v2  ;;  %v8245_v15 = vcombine.low %v643_v1, %v651_v2  ;;  %v245_v61 = vld [vmem:[%s13069_s1 + $0x220] sm:$0xff]  ;;  %v254_v1 = vld [vmem:[%s13069_s1 + $0x268] sm:$0xff] }
  0xe4   : > { %v8247_v16 = vcombine.low %v644_v3, %v652_v5 }
  0xe6   : > { %3465 = vmatpush1.bf16.msra.mxu0 %v8117_v10  ;;  %3547 = vmatpush1.bf16.msra.mxu1 %v8119_v11  ;;  %v667_v10 = vld [vmem:[%s13069_s1 + $0xf50] sm:$0xff]  ;;  %v660_v11 = vld [vmem:[%s13069_s1 + $0xf18] sm:$0xff] }
  0xe7   : > { %3466 = vmatprep.subr.bf16.mxu0 %v8134_v13  ;;  %3548 = vmatprep.subr.bf16.mxu1 %v8136_v17  ;;  %v8248_v13 = vcombine.high %v644_v3, %v652_v5  ;;  %v8262_v17 = vcombine.high %v659_v9, %v667_v10  ;;  %v8261_v25 = vcombine.low %v659_v9, %v667_v10  ;;  %v261_v5 = vld [vmem:[%s13069_s1 + $0x2a0] sm:$0xff]  ;;  %v270_v9 = vld [vmem:[%s13069_s1 + $0x2e8] sm:$0xff] }
  0xe8   : > { %v8263_v26 = vcombine.low %v660_v11, %v668_v14 }
  0xea   : > { %3467 = vmatpush1.bf16.msra.mxu0 %v8133_v19  ;;  %3549 = vmatpush1.bf16.msra.mxu1 %v8135_v20  ;;  %v683_v19 = vld [vmem:[%s13069_s1 + $0xfd0] sm:$0xff]  ;;  %v676_v20 = vld [vmem:[%s13069_s1 + $0xf98] sm:$0xff] }
  0xeb   : > { %3468 = vmatprep.subr.bf16.mxu0 %v8150_v21  ;;  %3550 = vmatprep.subr.bf16.mxu1 %v8152_v27  ;;  %v8264_v21 = vcombine.high %v660_v11, %v668_v14  ;;  %v8278_v27 = vcombine.high %v675_v18, %v683_v19  ;;  %v8277_v33 = vcombine.low %v675_v18, %v683_v19  ;;  %v277_v14 = vld [vmem:[%s13069_s1 + $0x320] sm:$0xff]  ;;  %v286_v18 = vld [vmem:[%s13069_s1 + $0x368] sm:$0xff] }
  0xec   : > { %v8279_v34 = vcombine.low %v676_v20, %v684_v22 }
  0xee   : > { %3469 = vmatpush1.bf16.msra.mxu0 %v8149_v29  ;;  %3551 = vmatpush1.bf16.msra.mxu1 %v8151_v30  ;;  %v189_v29 = vld [vmem:[%s13069_s1 + $0x60] sm:$0xff]  ;;  %v182_v30 = vld [vmem:[%s13069_s1 + $0x28] sm:$0xff] }
  0xef   : > { %3470 = vmatprep.subr.bf16.mxu0 %v8166_v31  ;;  %3552 = vmatprep.subr.bf16.mxu1 %v8168_v35  ;;  %v8280_v31 = vcombine.high %v676_v20, %v684_v22  ;;  %v7786_v35 = vcombine.high %v181_v28, %v189_v29  ;;  %v7785_v41 = vcombine.low %v181_v28, %v189_v29  ;;  %v293_v22 = vld [vmem:[%s13069_s1 + $0x3a0] sm:$0xff]  ;;  %v302_v28 = vld [vmem:[%s13069_s1 + $0x3e8] sm:$0xff] }
  0xf0   : > { %v7787_v42 = vcombine.low %v182_v30, %v190_v32 }
  0xf2   : > { %3471 = vmatpush1.bf16.msra.mxu0 %v8165_v37  ;;  %3553 = vmatpush1.bf16.msra.mxu1 %v8167_v38  ;;  %v205_v37 = vld [vmem:[%s13069_s1 + $0xe0] sm:$0xff]  ;;  %v198_v38 = vld [vmem:[%s13069_s1 + $0xa8] sm:$0xff] }
  0xf3   : > { %3472 = vmatprep.subr.bf16.mxu0 %v8182_v39  ;;  %3554 = vmatprep.subr.bf16.mxu1 %v8184_v43  ;;  %v7788_v39 = vcombine.high %v182_v30, %v190_v32  ;;  %v7802_v43 = vcombine.high %v197_v36, %v205_v37  ;;  %v7801_v49 = vcombine.low %v197_v36, %v205_v37  ;;  %v309_v32 = vld [vmem:[%s13069_s1 + $0x420] sm:$0xff]  ;;  %v318_v36 = vld [vmem:[%s13069_s1 + $0x468] sm:$0xff] }
  0xf4   : > { %v7803_v50 = vcombine.low %v198_v38, %v206_v40 }
  0xf6   : > { %3473 = vmatpush1.bf16.msra.mxu0 %v8181_v45  ;;  %3555 = vmatpush1.bf16.msra.mxu1 %v8183_v46  ;;  %v221_v45 = vld [vmem:[%s13069_s1 + $0x160] sm:$0xff]  ;;  %v214_v46 = vld [vmem:[%s13069_s1 + $0x128] sm:$0xff] }
  0xf7   : > { %3474 = vmatprep.subr.bf16.mxu0 %v8198_v47  ;;  %3556 = vmatprep.subr.bf16.mxu1 %v8200_v51  ;;  %v7804_v47 = vcombine.high %v198_v38, %v206_v40  ;;  %v7818_v51 = vcombine.high %v213_v44, %v221_v45  ;;  %v7817_v58 = vcombine.low %v213_v44, %v221_v45  ;;  %v325_v40 = vld [vmem:[%s13069_s1 + $0x4a0] sm:$0xff]  ;;  %v334_v44 = vld [vmem:[%s13069_s1 + $0x4e8] sm:$0xff] }
  0xf8   : > { %v7819_v59 = vcombine.low %v214_v46, %v222_v48 }
  0xfa   : > { %3475 = vmatpush1.bf16.msra.mxu0 %v8197_v53  ;;  %3557 = vmatpush1.bf16.msra.mxu1 %v8199_v54  ;;  %v237_v53 = vld [vmem:[%s13069_s1 + $0x1e0] sm:$0xff]  ;;  %v230_v54 = vld [vmem:[%s13069_s1 + $0x1a8] sm:$0xff] }
  0xfb   : > { %3476 = vmatprep.subr.bf16.mxu0 %v8214_v55  ;;  %3558 = vmatprep.subr.bf16.mxu1 %v8216_v60  ;;  %v7820_v55 = vcombine.high %v214_v46, %v222_v48  ;;  %v7834_v60 = vcombine.high %v229_v52, %v237_v53  ;;  %v7833_v2 = vcombine.low %v229_v52, %v237_v53  ;;  %v341_v48 = vld [vmem:[%s13069_s1 + $0x520] sm:$0xff]  ;;  %v350_v52 = vld [vmem:[%s13069_s1 + $0x568] sm:$0xff] }
  0xfc   : > { %v7835_v3 = vcombine.low %v230_v54, %v238_v56 }
  0xfe   : > { %3477 = vmatpush1.bf16.msra.mxu0 %v8213_v62  ;;  %3559 = vmatpush1.bf16.msra.mxu1 %v8215_v63  ;;  %v253_v62 = vld [vmem:[%s13069_s1 + $0x260] sm:$0xff]  ;;  %v246_v63 = vld [vmem:[%s13069_s1 + $0x228] sm:$0xff] }
  0xff   : > { %3478 = vmatprep.subr.bf16.mxu0 %v8230_v0  ;;  %3560 = vmatprep.subr.bf16.mxu1 %v8232_v4  ;;  %v7836_v0 = vcombine.high %v230_v54, %v238_v56  ;;  %v7850_v4 = vcombine.high %v245_v61, %v253_v62  ;;  %v7849_v10 = vcombine.low %v245_v61, %v253_v62  ;;  %v357_v56 = vld [vmem:[%s13069_s1 + $0x5a0] sm:$0xff]  ;;  %v366_v61 = vld [vmem:[%s13069_s1 + $0x5e8] sm:$0xff] }
 0x100   : > { %v7851_v11 = vcombine.low %v246_v63, %v254_v1 }
 0x102   : > { %3479 = vmatpush1.bf16.msra.mxu0 %v8229_v6  ;;  %3561 = vmatpush1.bf16.msra.mxu1 %v8231_v7  ;;  %v269_v6 = vld [vmem:[%s13069_s1 + $0x2e0] sm:$0xff]  ;;  %v262_v7 = vld [vmem:[%s13069_s1 + $0x2a8] sm:$0xff] }
 0x103   : > { %3480 = vmatprep.subr.bf16.mxu0 %v8246_v8  ;;  %3562 = vmatprep.subr.bf16.mxu1 %v8248_v13  ;;  %v7852_v8 = vcombine.high %v246_v63, %v254_v1  ;;  %v7866_v13 = vcombine.high %v261_v5, %v269_v6  ;;  %v7865_v19 = vcombine.low %v261_v5, %v269_v6  ;;  %v373_v1 = vld [vmem:[%s13069_s1 + $0x620] sm:$0xff]  ;;  %v382_v5 = vld [vmem:[%s13069_s1 + $0x668] sm:$0xff] }
 0x104   : > { %v7867_v20 = vcombine.low %v262_v7, %v270_v9 }
 0x106   : > { %3481 = vmatpush1.bf16.msra.mxu0 %v8245_v15  ;;  %3563 = vmatpush1.bf16.msra.mxu1 %v8247_v16  ;;  %v285_v15 = vld [vmem:[%s13069_s1 + $0x360] sm:$0xff]  ;;  %v278_v16 = vld [vmem:[%s13069_s1 + $0x328] sm:$0xff] }
 0x107   : > { %3482 = vmatprep.subr.bf16.mxu0 %v8262_v17  ;;  %3564 = vmatprep.subr.bf16.mxu1 %v8264_v21  ;;  %v7868_v17 = vcombine.high %v262_v7, %v270_v9  ;;  %v7882_v21 = vcombine.high %v277_v14, %v285_v15  ;;  %v7881_v29 = vcombine.low %v277_v14, %v285_v15  ;;  %v389_v9 = vld [vmem:[%s13069_s1 + $0x6a0] sm:$0xff]  ;;  %v398_v14 = vld [vmem:[%s13069_s1 + $0x6e8] sm:$0xff] }
 0x108   : > { %v7883_v30 = vcombine.low %v278_v16, %v286_v18 }
 0x10a   : > { %3483 = vmatpush1.bf16.msra.mxu0 %v8261_v25  ;;  %3565 = vmatpush1.bf16.msra.mxu1 %v8263_v26  ;;  %v301_v25 = vld [vmem:[%s13069_s1 + $0x3e0] sm:$0xff]  ;;  %v294_v26 = vld [vmem:[%s13069_s1 + $0x3a8] sm:$0xff] }
 0x10b   : > { %3484 = vmatprep.subr.bf16.mxu0 %v8278_v27  ;;  %3566 = vmatprep.subr.bf16.mxu1 %v8280_v31  ;;  %v7884_v27 = vcombine.high %v278_v16, %v286_v18  ;;  %v7898_v31 = vcombine.high %v293_v22, %v301_v25  ;;  %v7897_v37 = vcombine.low %v293_v22, %v301_v25  ;;  %v405_v18 = vld [vmem:[%s13069_s1 + $0x720] sm:$0xff]  ;;  %v414_v22 = vld [vmem:[%s13069_s1 + $0x768] sm:$0xff] }
 0x10c   : > { %v7899_v38 = vcombine.low %v294_v26, %v302_v28 }
 0x10e   : > { %3485 = vmatpush1.bf16.msra.mxu0 %v8277_v33  ;;  %3567 = vmatpush1.bf16.msra.mxu1 %v8279_v34  ;;  %v317_v33 = vld [vmem:[%s13069_s1 + $0x460] sm:$0xff]  ;;  %v310_v34 = vld [vmem:[%s13069_s1 + $0x428] sm:$0xff] }
 0x10f   : > { %3577 = vmatprep.subr.bf16.mxu0 %v7786_v35  ;;  %3659 = vmatprep.subr.bf16.mxu1 %v7788_v39  ;;  %v7900_v35 = vcombine.high %v294_v26, %v302_v28  ;;  %v7914_v39 = vcombine.high %v309_v32, %v317_v33  ;;  %v7913_v45 = vcombine.low %v309_v32, %v317_v33  ;;  %v421_v28 = vld [vmem:[%s13069_s1 + $0x7a0] sm:$0xff]  ;;  %v430_v32 = vld [vmem:[%s13069_s1 + $0x7e8] sm:$0xff] }
 0x110   : > { %v7915_v46 = vcombine.low %v310_v34, %v318_v36 }
 0x111   : > { %3487 = vmatmul.mubr.bf16.vlgmr.msra.gmra.mrb[4].mxu0 %v10277_v23  ;;  %3569 = vmatmul.mubr.bf16.vlgmr.msra.gmra.mrb[4].mxu1 %v10277_v23 }
 0x112   : > { %3578 = vmatpush1.bf16.msra.mxu0 %v7785_v41  ;;  %3660 = vmatpush1.bf16.msra.mxu1 %v7787_v42  ;;  %v333_v41 = vld [vmem:[%s13069_s1 + $0x4e0] sm:$0xff]  ;;  %v326_v42 = vld [vmem:[%s13069_s1 + $0x4a8] sm:$0xff] }
 0x113   : > { %3579 = vmatprep.subr.bf16.mxu0 %v7802_v43  ;;  %3661 = vmatprep.subr.bf16.mxu1 %v7804_v47  ;;  %v7916_v43 = vcombine.high %v310_v34, %v318_v36  ;;  %v7930_v47 = vcombine.high %v325_v40, %v333_v41  ;;  %v7929_v53 = vcombine.low %v325_v40, %v333_v41  ;;  %v437_v36 = vld [vmem:[%s13069_s1 + $0x820] sm:$0xff]  ;;  %v446_v40 = vld [vmem:[%s13069_s1 + $0x868] sm:$0xff] }
 0x114   : > { %3609 = vmatprep.mubr.bf16.mxu0 %v9944_v57  ;;  %3691 = vmatprep.mubr.bf16.mxu1 %v9944_v57  ;;  %v7931_v54 = vcombine.low %v326_v42, %v334_v44 }
 0x116   : > { %3580 = vmatpush1.bf16.msra.mxu0 %v7801_v49  ;;  %3662 = vmatpush1.bf16.msra.mxu1 %v7803_v50  ;;  %v349_v49 = vld [vmem:[%s13069_s1 + $0x560] sm:$0xff]  ;;  %v342_v50 = vld [vmem:[%s13069_s1 + $0x528] sm:$0xff] }
 0x117   : > { %3581 = vmatprep.subr.bf16.mxu0 %v7818_v51  ;;  %3663 = vmatprep.subr.bf16.mxu1 %v7820_v55  ;;  %v7932_v51 = vcombine.high %v326_v42, %v334_v44  ;;  %v7946_v55 = vcombine.high %v341_v48, %v349_v49  ;;  %v7945_v62 = vcombine.low %v341_v48, %v349_v49  ;;  %v453_v44 = vld [vmem:[%s13069_s1 + $0x8a0] sm:$0xff]  ;;  %v462_v48 = vld [vmem:[%s13069_s1 + $0x8e8] sm:$0xff] }
 0x118   : > { %v7947_v63 = vcombine.low %v342_v50, %v350_v52 }
 0x11a   : > { %3582 = vmatpush1.bf16.msra.mxu0 %v7817_v58  ;;  %3664 = vmatpush1.bf16.msra.mxu1 %v7819_v59  ;;  %v365_v58 = vld [vmem:[%s13069_s1 + $0x5e0] sm:$0xff]  ;;  %v358_v59 = vld [vmem:[%s13069_s1 + $0x5a8] sm:$0xff] }
 0x11b   : > { %3583 = vmatprep.subr.bf16.mxu0 %v7834_v60  ;;  %3665 = vmatprep.subr.bf16.mxu1 %v7836_v0  ;;  %v7948_v60 = vcombine.high %v342_v50, %v350_v52  ;;  %v7962_v0 = vcombine.high %v357_v56, %v365_v58  ;;  %v7961_v6 = vcombine.low %v357_v56, %v365_v58  ;;  %v478_v56 = vld [vmem:[%s13069_s1 + $0x968] sm:$0xff] }
 0x11c   : > { %v7963_v7 = vcombine.low %v358_v59, %v366_v61 }
 0x11e   : > { %3584 = vmatpush1.bf16.msra.mxu0 %v7833_v2  ;;  %3666 = vmatpush1.bf16.msra.mxu1 %v7835_v3  ;;  %v381_v2 = vld [vmem:[%s13069_s1 + $0x660] sm:$0xff]  ;;  %v374_v3 = vld [vmem:[%s13069_s1 + $0x628] sm:$0xff] }
 0x11f   : > { %3585 = vmatprep.subr.bf16.mxu0 %v7850_v4  ;;  %3667 = vmatprep.subr.bf16.mxu1 %v7852_v8  ;;  %v7964_v4 = vcombine.high %v358_v59, %v366_v61  ;;  %v7978_v8 = vcombine.high %v373_v1, %v381_v2  ;;  %v7977_v15 = vcombine.low %v373_v1, %v381_v2  ;;  %v494_v1 = vld [vmem:[%s13069_s1 + $0x9e8] sm:$0xff] }
 0x120   : > { %v7979_v16 = vcombine.low %v374_v3, %v382_v5 }
 0x122   : > { %3586 = vmatpush1.bf16.msra.mxu0 %v7849_v10  ;;  %3668 = vmatpush1.bf16.msra.mxu1 %v7851_v11  ;;  %v397_v10 = vld [vmem:[%s13069_s1 + $0x6e0] sm:$0xff]  ;;  %v390_v11 = vld [vmem:[%s13069_s1 + $0x6a8] sm:$0xff] }
 0x123   : > { %3587 = vmatprep.subr.bf16.mxu0 %v7866_v13  ;;  %3669 = vmatprep.subr.bf16.mxu1 %v7868_v17  ;;  %v7980_v13 = vcombine.high %v374_v3, %v382_v5  ;;  %v7994_v17 = vcombine.high %v389_v9, %v397_v10  ;;  %v7993_v25 = vcombine.low %v389_v9, %v397_v10  ;;  %v510_v9 = vld [vmem:[%s13069_s1 + $0xa68] sm:$0xff] }
 0x124   : > { %v7995_v26 = vcombine.low %v390_v11, %v398_v14 }
 0x126   : > { %3588 = vmatpush1.bf16.msra.mxu0 %v7865_v19  ;;  %3670 = vmatpush1.bf16.msra.mxu1 %v7867_v20  ;;  %v413_v19 = vld [vmem:[%s13069_s1 + $0x760] sm:$0xff]  ;;  %v406_v20 = vld [vmem:[%s13069_s1 + $0x728] sm:$0xff] }
 0x127   : > { %3589 = vmatprep.subr.bf16.mxu0 %v7882_v21  ;;  %3671 = vmatprep.subr.bf16.mxu1 %v7884_v27  ;;  %v7996_v21 = vcombine.high %v390_v11, %v398_v14  ;;  %v8010_v27 = vcombine.high %v405_v18, %v413_v19  ;;  %v8009_v33 = vcombine.low %v405_v18, %v413_v19  ;;  %v526_v18 = vld [vmem:[%s13069_s1 + $0xae8] sm:$0xff] }
 0x128   : > { %v8011_v34 = vcombine.low %v406_v20, %v414_v22 }
 0x12a   : > { %3590 = vmatpush1.bf16.msra.mxu0 %v7881_v29  ;;  %3672 = vmatpush1.bf16.msra.mxu1 %v7883_v30  ;;  %v429_v29 = vld [vmem:[%s13069_s1 + $0x7e0] sm:$0xff]  ;;  %v422_v30 = vld [vmem:[%s13069_s1 + $0x7a8] sm:$0xff] }
 0x12b   : > { %3591 = vmatprep.subr.bf16.mxu0 %v7898_v31  ;;  %3673 = vmatprep.subr.bf16.mxu1 %v7900_v35  ;;  %v8012_v31 = vcombine.high %v406_v20, %v414_v22  ;;  %v8026_v35 = vcombine.high %v421_v28, %v429_v29  ;;  %v8025_v41 = vcombine.low %v421_v28, %v429_v29  ;;  %v542_v28 = vld [vmem:[%s13069_s1 + $0xb68] sm:$0xff] }
 0x12c   : > { %v8027_v42 = vcombine.low %v422_v30, %v430_v32 }
 0x12e   : > { %3592 = vmatpush1.bf16.msra.mxu0 %v7897_v37  ;;  %3674 = vmatpush1.bf16.msra.mxu1 %v7899_v38  ;;  %v445_v37 = vld [vmem:[%s13069_s1 + $0x860] sm:$0xff]  ;;  %v438_v38 = vld [vmem:[%s13069_s1 + $0x828] sm:$0xff] }
 0x12f   : > { %3593 = vmatprep.subr.bf16.mxu0 %v7914_v39  ;;  %3675 = vmatprep.subr.bf16.mxu1 %v7916_v43  ;;  %v8028_v39 = vcombine.high %v422_v30, %v430_v32  ;;  %v8042_v43 = vcombine.high %v437_v36, %v445_v37  ;;  %v8041_v49 = vcombine.low %v437_v36, %v445_v37 }
 0x130   : > { %v8043_v50 = vcombine.low %v438_v38, %v446_v40 }
 0x132   : > { %3594 = vmatpush1.bf16.msra.mxu0 %v7913_v45  ;;  %3676 = vmatpush1.bf16.msra.mxu1 %v7915_v46  ;;  %v461_v45 = vld [vmem:[%s13069_s1 + $0x8e0] sm:$0xff]  ;;  %v454_v46 = vld [vmem:[%s13069_s1 + $0x8a8] sm:$0xff] }
 0x133   : > { %3595 = vmatprep.subr.bf16.mxu0 %v7930_v47  ;;  %3677 = vmatprep.subr.bf16.mxu1 %v7932_v51  ;;  %v8044_v47 = vcombine.high %v438_v38, %v446_v40  ;;  %v8058_v51 = vcombine.high %v453_v44, %v461_v45  ;;  %v8060_v52 = vcombine.high %v454_v46, %v462_v48  ;;  %v550_v38 = vld [vmem:[%s13069_s1 + $0xba8] sm:$0xff] }
 0x134   : > { %v8057_v58 = vcombine.low %v453_v44, %v461_v45  ;;  %v8059_v59 = vcombine.low %v454_v46, %v462_v48 }
 0x136   : > { %3596 = vmatpush1.bf16.msra.mxu0 %v7929_v53  ;;  %3678 = vmatpush1.bf16.msra.mxu1 %v7931_v54  ;;  %v469_v53 = vld [vmem:[%s13069_s1 + $0x920] sm:$0xff] }
 0x137   : > { %3597 = vmatprep.subr.bf16.mxu0 %v7946_v55  ;;  %3679 = vmatprep.subr.bf16.mxu1 %v7948_v60  ;;  %v477_v54 = vld [vmem:[%s13069_s1 + $0x960] sm:$0xff]  ;;  %v470_v55 = vld [vmem:[%s13069_s1 + $0x928] sm:$0xff] }
 0x138   : > { %v8074_v60 = vcombine.high %v469_v53, %v477_v54  ;;  %v8076_v61 = vcombine.high %v470_v55, %v478_v56  ;;  %v8073_v2 = vcombine.low %v469_v53, %v477_v54  ;;  %v8075_v3 = vcombine.low %v470_v55, %v478_v56 }
 0x13a   : > { %3598 = vmatpush1.bf16.msra.mxu0 %v7945_v62  ;;  %3680 = vmatpush1.bf16.msra.mxu1 %v7947_v63  ;;  %v485_v62 = vld [vmem:[%s13069_s1 + $0x9a0] sm:$0xff] }
 0x13b   : > { %3599 = vmatprep.subr.bf16.mxu0 %v7962_v0  ;;  %3681 = vmatprep.subr.bf16.mxu1 %v7964_v4  ;;  %v493_v63 = vld [vmem:[%s13069_s1 + $0x9e0] sm:$0xff]  ;;  %v486_v0 = vld [vmem:[%s13069_s1 + $0x9a8] sm:$0xff] }
 0x13c   : > { %v8090_v4 = vcombine.high %v485_v62, %v493_v63  ;;  %v8092_v5 = vcombine.high %v486_v0, %v494_v1  ;;  %v8089_v10 = vcombine.low %v485_v62, %v493_v63  ;;  %v8091_v11 = vcombine.low %v486_v0, %v494_v1 }
 0x13e   : > { %3600 = vmatpush1.bf16.msra.mxu0 %v7961_v6  ;;  %3682 = vmatpush1.bf16.msra.mxu1 %v7963_v7  ;;  %v501_v6 = vld [vmem:[%s13069_s1 + $0xa20] sm:$0xff] }
 0x13f   : > { %3601 = vmatprep.subr.bf16.mxu0 %v7978_v8  ;;  %3683 = vmatprep.subr.bf16.mxu1 %v7980_v13  ;;  %v509_v7 = vld [vmem:[%s13069_s1 + $0xa60] sm:$0xff]  ;;  %v502_v8 = vld [vmem:[%s13069_s1 + $0xa28] sm:$0xff] }
 0x140   : > { %v8106_v13 = vcombine.high %v501_v6, %v509_v7  ;;  %v8108_v14 = vcombine.high %v502_v8, %v510_v9  ;;  %v8105_v19 = vcombine.low %v501_v6, %v509_v7  ;;  %v8107_v20 = vcombine.low %v502_v8, %v510_v9 }
 0x142   : > { %3602 = vmatpush1.bf16.msra.mxu0 %v7977_v15  ;;  %3684 = vmatpush1.bf16.msra.mxu1 %v7979_v16  ;;  %v517_v15 = vld [vmem:[%s13069_s1 + $0xaa0] sm:$0xff] }
 0x143   : > { %3603 = vmatprep.subr.bf16.mxu0 %v7994_v17  ;;  %3685 = vmatprep.subr.bf16.mxu1 %v7996_v21  ;;  %v525_v16 = vld [vmem:[%s13069_s1 + $0xae0] sm:$0xff]  ;;  %v518_v17 = vld [vmem:[%s13069_s1 + $0xaa8] sm:$0xff] }
 0x144   : > { %v8122_v21 = vcombine.high %v517_v15, %v525_v16  ;;  %v8124_v22 = vcombine.high %v518_v17, %v526_v18  ;;  %v8121_v29 = vcombine.low %v517_v15, %v525_v16  ;;  %v8123_v30 = vcombine.low %v518_v17, %v526_v18 }
 0x146   : > { %3604 = vmatpush1.bf16.msra.mxu0 %v7993_v25  ;;  %3686 = vmatpush1.bf16.msra.mxu1 %v7995_v26  ;;  %v533_v25 = vld [vmem:[%s13069_s1 + $0xb20] sm:$0xff] }
 0x147   : > { %3605 = vmatprep.subr.bf16.mxu0 %v8010_v27  ;;  %3687 = vmatprep.subr.bf16.mxu1 %v8012_v31  ;;  %v541_v26 = vld [vmem:[%s13069_s1 + $0xb60] sm:$0xff]  ;;  %v534_v27 = vld [vmem:[%s13069_s1 + $0xb28] sm:$0xff] }
 0x148   : > { %v8138_v31 = vcombine.high %v533_v25, %v541_v26  ;;  %v8139_v45 = vcombine.low %v534_v27, %v542_v28 }
 0x14a   : > { %3606 = vmatpush1.bf16.msra.mxu0 %v8009_v33  ;;  %3688 = vmatpush1.bf16.msra.mxu1 %v8011_v34  ;;  %v8140_v33 = vcombine.high %v534_v27, %v542_v28  ;;  %v549_v34 = vld [vmem:[%s13069_s1 + $0xba0] sm:$0xff] }
 0x14b   : > { %3607 = vmatprep.subr.bf16.mxu0 %v8026_v35  ;;  %3689 = vmatprep.subr.bf16.mxu1 %v8028_v39  ;;  %v557_v35 = vld [vmem:[%s13069_s1 + $0xbe0] sm:$0xff]  ;;  %v558_v39 = vld [vmem:[%s13069_s1 + $0xbe8] sm:$0xff] }
 0x14c   : > { %v8154_v46 = vcombine.high %v549_v34, %v557_v35  ;;  %v8156_v48 = vcombine.high %v550_v38, %v558_v39  ;;  %v8153_v53 = vcombine.low %v549_v34, %v557_v35  ;;  %v8155_v54 = vcombine.low %v550_v38, %v558_v39 }
 0x14e   : > { %3608 = vmatpush1.bf16.msra.mxu0 %v8025_v41  ;;  %3690 = vmatpush1.bf16.msra.mxu1 %v8027_v42  ;;  %v8137_v42 = vcombine.low %v533_v25, %v541_v26 }
 0x14f   : > { %3618 = vmatprep.subr.bf16.mxu0 %v8042_v43  ;;  %3700 = vmatprep.subr.bf16.mxu1 %v8044_v47 }
 0x151   : > { %3610 = vmatmul.mubr.bf16.vlgmr.msra.gmra.mrb[8].mxu0 %v10069_v12  ;;  %3692 = vmatmul.mubr.bf16.vlgmr.msra.gmra.mrb[8].mxu1 %v10069_v12 }
 0x152   : > { %3619 = vmatpush1.bf16.msra.mxu0 %v8041_v49  ;;  %3701 = vmatpush1.bf16.msra.mxu1 %v8043_v50  ;;  %v565_v49 = vld [vmem:[%s13069_s1 + $0xc20] sm:$0xff] }
 0x153   : > { %3620 = vmatprep.subr.bf16.mxu0 %v8058_v51  ;;  %3702 = vmatprep.subr.bf16.mxu1 %v8060_v52  ;;  %v573_v50 = vld [vmem:[%s13069_s1 + $0xc60] sm:$0xff]  ;;  %v566_v51 = vld [vmem:[%s13069_s1 + $0xc28] sm:$0xff] }
 0x154   : > { %3650 = vmatprep.mubr.bf16.mxu0 %v10090_v24  ;;  %3732 = vmatprep.mubr.bf16.mxu1 %v10090_v24  ;;  %v574_v52 = vld [vmem:[%s13069_s1 + $0xc68] sm:$0xff]  ;;  %v8170_v55 = vcombine.high %v565_v49, %v573_v50  ;;  %v8169_v62 = vcombine.low %v565_v49, %v573_v50  ;;  %v677_v49 = vld [vmem:[%s13069_s1 + $0xfa0] sm:$0xff] }
 0x155   : > { %v8172_v56 = vcombine.high %v566_v51, %v574_v52  ;;  %v8171_v63 = vcombine.low %v566_v51, %v574_v52  ;;  %v685_v50 = vld [vmem:[%s13069_s1 + $0xfe0] sm:$0xff]  ;;  %v678_v51 = vld [vmem:[%s13069_s1 + $0xfa8] sm:$0xff] }
 0x156   : > { %3621 = vmatpush1.bf16.msra.mxu0 %v8057_v58  ;;  %3703 = vmatpush1.bf16.msra.mxu1 %v8059_v59  ;;  %v581_v58 = vld [vmem:[%s13069_s1 + $0xca0] sm:$0xff]  ;;  %v686_v52 = vld [vmem:[%s13069_s1 + $0xfe8] sm:$0xff] }
 0x157   : > { %3622 = vmatprep.subr.bf16.mxu0 %v8074_v60  ;;  %3704 = vmatprep.subr.bf16.mxu1 %v8076_v61  ;;  %v589_v59 = vld [vmem:[%s13069_s1 + $0xce0] sm:$0xff]  ;;  %v582_v60 = vld [vmem:[%s13069_s1 + $0xca8] sm:$0xff] }
 0x158   : > { %v590_v61 = vld [vmem:[%s13069_s1 + $0xce8] sm:$0xff]  ;;  %v8186_v0 = vcombine.high %v581_v58, %v589_v59  ;;  %v8185_v6 = vcombine.low %v581_v58, %v589_v59  ;;  %v183_v58 = vld [vmem:[%s13069_s1 + $0x30] sm:$0xff] }
 0x159   : > { %v8188_v1 = vcombine.high %v582_v60, %v590_v61  ;;  %v8187_v7 = vcombine.low %v582_v60, %v590_v61  ;;  %v191_v59 = vld [vmem:[%s13069_s1 + $0x70] sm:$0xff]  ;;  %v184_v60 = vld [vmem:[%s13069_s1 + $0x38] sm:$0xff] }
 0x15a   : > { %3623 = vmatpush1.bf16.msra.mxu0 %v8073_v2  ;;  %3705 = vmatpush1.bf16.msra.mxu1 %v8075_v3  ;;  %v597_v2 = vld [vmem:[%s13069_s1 + $0xd20] sm:$0xff]  ;;  %v192_v61 = vld [vmem:[%s13069_s1 + $0x78] sm:$0xff] }
 0x15b   : > { %3624 = vmatprep.subr.bf16.mxu0 %v8090_v4  ;;  %3706 = vmatprep.subr.bf16.mxu1 %v8092_v5  ;;  %v605_v3 = vld [vmem:[%s13069_s1 + $0xd60] sm:$0xff]  ;;  %v598_v4 = vld [vmem:[%s13069_s1 + $0xd28] sm:$0xff] }
 0x15c   : > { %v606_v5 = vld [vmem:[%s13069_s1 + $0xd68] sm:$0xff]  ;;  %v8202_v8 = vcombine.high %v597_v2, %v605_v3  ;;  %v8201_v15 = vcombine.low %v597_v2, %v605_v3  ;;  %v199_v2 = vld [vmem:[%s13069_s1 + $0xb0] sm:$0xff] }
 0x15d   : > { %v8204_v9 = vcombine.high %v598_v4, %v606_v5  ;;  %v8203_v16 = vcombine.low %v598_v4, %v606_v5  ;;  %v207_v3 = vld [vmem:[%s13069_s1 + $0xf0] sm:$0xff]  ;;  %v200_v4 = vld [vmem:[%s13069_s1 + $0xb8] sm:$0xff] }
 0x15e   : > { %3625 = vmatpush1.bf16.msra.mxu0 %v8089_v10  ;;  %3707 = vmatpush1.bf16.msra.mxu1 %v8091_v11  ;;  %v613_v10 = vld [vmem:[%s13069_s1 + $0xda0] sm:$0xff]  ;;  %v208_v5 = vld [vmem:[%s13069_s1 + $0xf8] sm:$0xff] }
 0x15f   : > { %3626 = vmatprep.subr.bf16.mxu0 %v8106_v13  ;;  %3708 = vmatprep.subr.bf16.mxu1 %v8108_v14  ;;  %v621_v11 = vld [vmem:[%s13069_s1 + $0xde0] sm:$0xff]  ;;  %v614_v13 = vld [vmem:[%s13069_s1 + $0xda8] sm:$0xff] }
 0x160   : > { %v622_v14 = vld [vmem:[%s13069_s1 + $0xde8] sm:$0xff]  ;;  %v8218_v17 = vcombine.high %v613_v10, %v621_v11  ;;  %v8217_v25 = vcombine.low %v613_v10, %v621_v11  ;;  %v215_v10 = vld [vmem:[%s13069_s1 + $0x130] sm:$0xff] }
 0x161   : > { %v8220_v18 = vcombine.high %v614_v13, %v622_v14  ;;  %v8219_v26 = vcombine.low %v614_v13, %v622_v14  ;;  %v223_v11 = vld [vmem:[%s13069_s1 + $0x170] sm:$0xff]  ;;  %v216_v13 = vld [vmem:[%s13069_s1 + $0x138] sm:$0xff] }
 0x162   : > { %3627 = vmatpush1.bf16.msra.mxu0 %v8105_v19  ;;  %3709 = vmatpush1.bf16.msra.mxu1 %v8107_v20  ;;  %v629_v19 = vld [vmem:[%s13069_s1 + $0xe20] sm:$0xff]  ;;  %v224_v14 = vld [vmem:[%s13069_s1 + $0x178] sm:$0xff] }
 0x163   : > { %3628 = vmatprep.subr.bf16.mxu0 %v8122_v21  ;;  %3710 = vmatprep.subr.bf16.mxu1 %v8124_v22  ;;  %v637_v20 = vld [vmem:[%s13069_s1 + $0xe60] sm:$0xff]  ;;  %v630_v21 = vld [vmem:[%s13069_s1 + $0xe28] sm:$0xff] }
 0x164   : > { %v10931_v32 = vpop.f32.mrb[0].mxu0  ;;  %v10939_v36 = vpop.f32.mrb[0].mxu1  ;;  %v638_v22 = vld [vmem:[%s13069_s1 + $0xe68] sm:$0xff]  ;;  %v8234_v27 = vcombine.high %v629_v19, %v637_v20  ;;  %v8233_v34 = vcombine.low %v629_v19, %v637_v20  ;;  %v231_v19 = vld [vmem:[%s13069_s1 + $0x1b0] sm:$0xff] }
 0x165   : > { %v10941_v37 = vpop.f32.mrb[1].mxu0  ;;  %v10949_v40 = vpop.f32.mrb[1].mxu1  ;;  %v8236_v28 = vcombine.high %v630_v21, %v638_v22  ;;  %v8235_v35 = vcombine.low %v630_v21, %v638_v22  ;;  %v239_v20 = vld [vmem:[%s13069_s1 + $0x1f0] sm:$0xff]  ;;  %v232_v21 = vld [vmem:[%s13069_s1 + $0x1b8] sm:$0xff] }
 0x166   : > { %v3328_v41 = vpop.f32.mrb[2].mxu0  ;;  %3629 = vmatpush1.bf16.msra.mxu0 %v8121_v29  ;;  %v3410_v43 = vpop.f32.mrb[2].mxu1  ;;  %3711 = vmatpush1.bf16.msra.mxu1 %v8123_v30  ;;  %v645_v29 = vld [vmem:[%s13069_s1 + $0xea0] sm:$0xff]  ;;  %v240_v22 = vld [vmem:[%s13069_s1 + $0x1f8] sm:$0xff] }
 0x167   : > { %v3329_v44 = vpop.f32.mrb[3].mxu0  ;;  %3630 = vmatprep.subr.bf16.mxu0 %v8138_v31  ;;  %v3411_v47 = vpop.f32.mrb[3].mxu1  ;;  %3712 = vmatprep.subr.bf16.mxu1 %v8140_v33  ;;  %v653_v30 = vld [vmem:[%s13069_s1 + $0xee0] sm:$0xff]  ;;  %v646_v31 = vld [vmem:[%s13069_s1 + $0xea8] sm:$0xff] }
 0x168   : > { %v654_v33 = vld [vmem:[%s13069_s1 + $0xee8] sm:$0xff]  ;;  %v8250_v38 = vcombine.high %v645_v29, %v653_v30  ;;  %v661_v41 = vld [vmem:[%s13069_s1 + $0xf20] sm:$0xff] }
 0x169   : > { %v8252_v39 = vcombine.high %v646_v31, %v654_v33  ;;  %v662_v43 = vld [vmem:[%s13069_s1 + $0xf28] sm:$0xff] }
 0x16a   : > { %3631 = vmatpush1.bf16.msra.mxu0 %v8137_v42  ;;  %3713 = vmatpush1.bf16.msra.mxu1 %v8139_v45  ;;  %v669_v42 = vld [vmem:[%s13069_s1 + $0xf60] sm:$0xff]  ;;  %v670_v44 = vld [vmem:[%s13069_s1 + $0xf68] sm:$0xff]  ;;  %v8249_v45 = vcombine.low %v645_v29, %v653_v30  ;;  %v247_v29 = vld [vmem:[%s13069_s1 + $0x230] sm:$0xff] }
 0x16b   : > { %3632 = vmatprep.subr.bf16.mxu0 %v8154_v46  ;;  %3714 = vmatprep.subr.bf16.mxu1 %v8156_v48  ;;  %v8251_v46 = vcombine.low %v646_v31, %v654_v33  ;;  %v8266_v47 = vcombine.high %v661_v41, %v669_v42  ;;  %v8268_v48 = vcombine.high %v662_v43, %v670_v44  ;;  %v255_v30 = vld [vmem:[%s13069_s1 + $0x270] sm:$0xff]  ;;  %v256_v31 = vld [vmem:[%s13069_s1 + $0x278] sm:$0xff] }
 0x16c   : > { %v7837_v33 = vcombine.low %v231_v19, %v239_v20 }
 0x16e   : > { %3633 = vmatpush1.bf16.msra.mxu0 %v8153_v53  ;;  %3715 = vmatpush1.bf16.msra.mxu1 %v8155_v54  ;;  %v8265_v53 = vcombine.low %v661_v41, %v669_v42  ;;  %v8267_v54 = vcombine.low %v662_v43, %v670_v44  ;;  %v271_v41 = vld [vmem:[%s13069_s1 + $0x2f0] sm:$0xff]  ;;  %v264_v42 = vld [vmem:[%s13069_s1 + $0x2b8] sm:$0xff]  ;;  %v7853_v44 = vcombine.low %v247_v29, %v255_v30 }
 0x16f   : > { %3634 = vmatprep.subr.bf16.mxu0 %v8170_v55  ;;  %3716 = vmatprep.subr.bf16.mxu1 %v8172_v56  ;;  %v8282_v55 = vcombine.high %v677_v49, %v685_v50  ;;  %v8284_v56 = vcombine.high %v678_v51, %v686_v52  ;;  %v272_v43 = vld [vmem:[%s13069_s1 + $0x2f8] sm:$0xff] }
 0x172   : > { %3635 = vmatpush1.bf16.msra.mxu0 %v8169_v62  ;;  %3717 = vmatpush1.bf16.msra.mxu1 %v8171_v63  ;;  %v8281_v62 = vcombine.low %v677_v49, %v685_v50  ;;  %v8283_v63 = vcombine.low %v678_v51, %v686_v52  ;;  %v287_v49 = vld [vmem:[%s13069_s1 + $0x370] sm:$0xff]  ;;  %v280_v50 = vld [vmem:[%s13069_s1 + $0x338] sm:$0xff] }
 0x173   : > { %3636 = vmatprep.subr.bf16.mxu0 %v8186_v0  ;;  %3718 = vmatprep.subr.bf16.mxu1 %v8188_v1  ;;  %v7790_v0 = vcombine.high %v183_v58, %v191_v59  ;;  %v7792_v1 = vcombine.high %v184_v60, %v192_v61  ;;  %v288_v51 = vld [vmem:[%s13069_s1 + $0x378] sm:$0xff] }
 0x176   : > { %3637 = vmatpush1.bf16.msra.mxu0 %v8185_v6  ;;  %3719 = vmatpush1.bf16.msra.mxu1 %v8187_v7  ;;  %v7789_v6 = vcombine.low %v183_v58, %v191_v59  ;;  %v7791_v7 = vcombine.low %v184_v60, %v192_v61  ;;  %v303_v58 = vld [vmem:[%s13069_s1 + $0x3f0] sm:$0xff]  ;;  %v296_v59 = vld [vmem:[%s13069_s1 + $0x3b8] sm:$0xff] }
 0x177   : > { %3638 = vmatprep.subr.bf16.mxu0 %v8202_v8  ;;  %3720 = vmatprep.subr.bf16.mxu1 %v8204_v9  ;;  %v7806_v8 = vcombine.high %v199_v2, %v207_v3  ;;  %v7808_v9 = vcombine.high %v200_v4, %v208_v5  ;;  %v304_v60 = vld [vmem:[%s13069_s1 + $0x3f8] sm:$0xff] }
 0x17a   : > { %3639 = vmatpush1.bf16.msra.mxu0 %v8201_v15  ;;  %3721 = vmatpush1.bf16.msra.mxu1 %v8203_v16  ;;  %v7805_v15 = vcombine.low %v199_v2, %v207_v3  ;;  %v7807_v16 = vcombine.low %v200_v4, %v208_v5  ;;  %v319_v2 = vld [vmem:[%s13069_s1 + $0x470] sm:$0xff]  ;;  %v312_v3 = vld [vmem:[%s13069_s1 + $0x438] sm:$0xff] }
 0x17b   : > { %3640 = vmatprep.subr.bf16.mxu0 %v8218_v17  ;;  %3722 = vmatprep.subr.bf16.mxu1 %v8220_v18  ;;  %v7822_v17 = vcombine.high %v215_v10, %v223_v11  ;;  %v7824_v18 = vcombine.high %v216_v13, %v224_v14  ;;  %v320_v4 = vld [vmem:[%s13069_s1 + $0x478] sm:$0xff] }
 0x17e   : > { %3641 = vmatpush1.bf16.msra.mxu0 %v8217_v25  ;;  %3723 = vmatpush1.bf16.msra.mxu1 %v8219_v26  ;;  %v7821_v25 = vcombine.low %v215_v10, %v223_v11  ;;  %v7823_v26 = vcombine.low %v216_v13, %v224_v14  ;;  %v335_v10 = vld [vmem:[%s13069_s1 + $0x4f0] sm:$0xff]  ;;  %v328_v11 = vld [vmem:[%s13069_s1 + $0x4b8] sm:$0xff] }
 0x17f   : > { %3642 = vmatprep.subr.bf16.mxu0 %v8234_v27  ;;  %3724 = vmatprep.subr.bf16.mxu1 %v8236_v28  ;;  %v7838_v27 = vcombine.high %v231_v19, %v239_v20  ;;  %v7840_v28 = vcombine.high %v232_v21, %v240_v22  ;;  %v336_v13 = vld [vmem:[%s13069_s1 + $0x4f8] sm:$0xff]  ;;  %v351_v19 = vld [vmem:[%s13069_s1 + $0x570] sm:$0xff] }
 0x180   : > { %v344_v20 = vld [vmem:[%s13069_s1 + $0x538] sm:$0xff] }
 0x182   : > { %3643 = vmatpush1.bf16.msra.mxu0 %v8233_v34  ;;  %3725 = vmatpush1.bf16.msra.mxu1 %v8235_v35  ;;  %v7839_v34 = vcombine.low %v232_v21, %v240_v22  ;;  %v7854_v35 = vcombine.high %v247_v29, %v255_v30  ;;  %v352_v21 = vld [vmem:[%s13069_s1 + $0x578] sm:$0xff]  ;;  %v367_v29 = vld [vmem:[%s13069_s1 + $0x5f0] sm:$0xff] }
 0x183   : > { %3644 = vmatprep.subr.bf16.mxu0 %v8250_v38  ;;  %3726 = vmatprep.subr.bf16.mxu1 %v8252_v39  ;;  %v263_v39 = vld [vmem:[%s13069_s1 + $0x2b0] sm:$0xff]  ;;  %v360_v30 = vld [vmem:[%s13069_s1 + $0x5b8] sm:$0xff] }
 0x184   : > { %v7869_v52 = vcombine.low %v263_v39, %v271_v41 }
 0x186   : > { %3645 = vmatpush1.bf16.msra.mxu0 %v8249_v45  ;;  %3727 = vmatpush1.bf16.msra.mxu1 %v8251_v46  ;;  %v7870_v46 = vcombine.high %v263_v39, %v271_v41  ;;  %v383_v39 = vld [vmem:[%s13069_s1 + $0x670] sm:$0xff]  ;;  %v376_v41 = vld [vmem:[%s13069_s1 + $0x638] sm:$0xff] }
 0x187   : > { %3646 = vmatprep.subr.bf16.mxu0 %v8266_v47  ;;  %3728 = vmatprep.subr.bf16.mxu1 %v8268_v48  ;;  %v7872_v47 = vcombine.high %v264_v42, %v272_v43  ;;  %v279_v48 = vld [vmem:[%s13069_s1 + $0x330] sm:$0xff] }
 0x188   : > { %v7885_v61 = vcombine.low %v279_v48, %v287_v49 }
 0x18a   : > { %3647 = vmatpush1.bf16.msra.mxu0 %v8265_v53  ;;  %3729 = vmatpush1.bf16.msra.mxu1 %v8267_v54  ;;  %v7871_v53 = vcombine.low %v264_v42, %v272_v43  ;;  %v7886_v54 = vcombine.high %v279_v48, %v287_v49  ;;  %v384_v42 = vld [vmem:[%s13069_s1 + $0x678] sm:$0xff]  ;;  %v399_v48 = vld [vmem:[%s13069_s1 + $0x6f0] sm:$0xff] }
 0x18b   : > { %3648 = vmatprep.subr.bf16.mxu0 %v8282_v55  ;;  %3730 = vmatprep.subr.bf16.mxu1 %v8284_v56  ;;  %v7888_v55 = vcombine.high %v280_v50, %v288_v51  ;;  %v295_v56 = vld [vmem:[%s13069_s1 + $0x3b0] sm:$0xff]  ;;  %v392_v49 = vld [vmem:[%s13069_s1 + $0x6b8] sm:$0xff] }
 0x18c   : > { %v7901_v5 = vcombine.low %v295_v56, %v303_v58 }
 0x18e   : > { %3649 = vmatpush1.bf16.msra.mxu0 %v8281_v62  ;;  %3731 = vmatpush1.bf16.msra.mxu1 %v8283_v63  ;;  %v7887_v62 = vcombine.low %v280_v50, %v288_v51  ;;  %v7902_v63 = vcombine.high %v295_v56, %v303_v58  ;;  %v400_v50 = vld [vmem:[%s13069_s1 + $0x6f8] sm:$0xff]  ;;  %v415_v56 = vld [vmem:[%s13069_s1 + $0x770] sm:$0xff] }
 0x18f   : > { %3741 = vmatprep.subr.bf16.mxu0 %v7790_v0  ;;  %3823 = vmatprep.subr.bf16.mxu1 %v7792_v1  ;;  %v7904_v0 = vcombine.high %v296_v59, %v304_v60  ;;  %v311_v1 = vld [vmem:[%s13069_s1 + $0x430] sm:$0xff]  ;;  %v408_v58 = vld [vmem:[%s13069_s1 + $0x738] sm:$0xff] }
 0x190   : > { %v7917_v14 = vcombine.low %v311_v1, %v319_v2 }
 0x191   : > { %3651 = vmatmul.mubr.bf16.vlgmr.msra.gmra.mrb[8].mxu0 %v10277_v23  ;;  %3733 = vmatmul.mubr.bf16.vlgmr.msra.gmra.mrb[8].mxu1 %v10277_v23 }
 0x192   : > { %3742 = vmatpush1.bf16.msra.mxu0 %v7789_v6  ;;  %3824 = vmatpush1.bf16.msra.mxu1 %v7791_v7  ;;  %v7903_v6 = vcombine.low %v296_v59, %v304_v60  ;;  %v7918_v7 = vcombine.high %v311_v1, %v319_v2  ;;  %v416_v59 = vld [vmem:[%s13069_s1 + $0x778] sm:$0xff]  ;;  %v431_v1 = vld [vmem:[%s13069_s1 + $0x7f0] sm:$0xff] }
 0x193   : > { %3743 = vmatprep.subr.bf16.mxu0 %v7806_v8  ;;  %3825 = vmatprep.subr.bf16.mxu1 %v7808_v9  ;;  %v7920_v8 = vcombine.high %v312_v3, %v320_v4  ;;  %v327_v9 = vld [vmem:[%s13069_s1 + $0x4b0] sm:$0xff]  ;;  %v424_v2 = vld [vmem:[%s13069_s1 + $0x7b8] sm:$0xff] }
 0x194   : > { %3773 = vmatprep.mubr.bf16.mxu0 %v9944_v57  ;;  %3855 = vmatprep.mubr.bf16.mxu1 %v9944_v57  ;;  %v248_v57 = vld [vmem:[%s13069_s1 + $0x238] sm:$0xff]  ;;  %v7933_v22 = vcombine.low %v327_v9, %v335_v10 }
 0x195   : > { %v7856_v38 = vcombine.high %v248_v57, %v256_v31  ;;  %v7855_v45 = vcombine.low %v248_v57, %v256_v31  ;;  %v368_v57 = vld [vmem:[%s13069_s1 + $0x5f8] sm:$0xff] }
 0x196   : > { %3744 = vmatpush1.bf16.msra.mxu0 %v7805_v15  ;;  %3826 = vmatpush1.bf16.msra.mxu1 %v7807_v16  ;;  %v7919_v15 = vcombine.low %v312_v3, %v320_v4  ;;  %v7934_v16 = vcombine.high %v327_v9, %v335_v10  ;;  %v432_v3 = vld [vmem:[%s13069_s1 + $0x7f8] sm:$0xff]  ;;  %v447_v9 = vld [vmem:[%s13069_s1 + $0x870] sm:$0xff] }
 0x197   : > { %3745 = vmatprep.subr.bf16.mxu0 %v7822_v17  ;;  %3827 = vmatprep.subr.bf16.mxu1 %v7824_v18  ;;  %v7936_v17 = vcombine.high %v328_v11, %v336_v13  ;;  %v343_v18 = vld [vmem:[%s13069_s1 + $0x530] sm:$0xff]  ;;  %v440_v10 = vld [vmem:[%s13069_s1 + $0x838] sm:$0xff] }
 0x198   : > { %v7949_v31 = vcombine.low %v343_v18, %v351_v19 }
 0x19a   : > { %3746 = vmatpush1.bf16.msra.mxu0 %v7821_v25  ;;  %3828 = vmatpush1.bf16.msra.mxu1 %v7823_v26  ;;  %v7935_v25 = vcombine.low %v328_v11, %v336_v13  ;;  %v7950_v26 = vcombine.high %v343_v18, %v351_v19  ;;  %v448_v11 = vld [vmem:[%s13069_s1 + $0x878] sm:$0xff]  ;;  %v463_v18 = vld [vmem:[%s13069_s1 + $0x8f0] sm:$0xff] }
 0x19b   : > { %3747 = vmatprep.subr.bf16.mxu0 %v7838_v27  ;;  %3829 = vmatprep.subr.bf16.mxu1 %v7840_v28  ;;  %v7952_v27 = vcombine.high %v344_v20, %v352_v21  ;;  %v359_v28 = vld [vmem:[%s13069_s1 + $0x5b0] sm:$0xff]  ;;  %v456_v19 = vld [vmem:[%s13069_s1 + $0x8b8] sm:$0xff] }
 0x19c   : > { %v7965_v43 = vcombine.low %v359_v28, %v367_v29 }
 0x19e   : > { %3748 = vmatpush1.bf16.msra.mxu0 %v7837_v33  ;;  %3830 = vmatpush1.bf16.msra.mxu1 %v7839_v34  ;;  %v7951_v33 = vcombine.low %v344_v20, %v352_v21  ;;  %v7966_v34 = vcombine.high %v359_v28, %v367_v29  ;;  %v464_v20 = vld [vmem:[%s13069_s1 + $0x8f8] sm:$0xff]  ;;  %v479_v28 = vld [vmem:[%s13069_s1 + $0x970] sm:$0xff] }
 0x19f   : > { %3749 = vmatprep.subr.bf16.mxu0 %v7854_v35  ;;  %3831 = vmatprep.subr.bf16.mxu1 %v7856_v38  ;;  %v7968_v35 = vcombine.high %v360_v30, %v368_v57  ;;  %v375_v38 = vld [vmem:[%s13069_s1 + $0x630] sm:$0xff]  ;;  %v472_v29 = vld [vmem:[%s13069_s1 + $0x938] sm:$0xff] }
 0x1a0   : > { %v7981_v51 = vcombine.low %v375_v38, %v383_v39 }
 0x1a2   : > { %3750 = vmatpush1.bf16.msra.mxu0 %v7853_v44  ;;  %3832 = vmatpush1.bf16.msra.mxu1 %v7855_v45  ;;  %v7967_v44 = vcombine.low %v360_v30, %v368_v57  ;;  %v7982_v45 = vcombine.high %v375_v38, %v383_v39  ;;  %v480_v30 = vld [vmem:[%s13069_s1 + $0x978] sm:$0xff]  ;;  %v495_v38 = vld [vmem:[%s13069_s1 + $0x9f0] sm:$0xff] }
 0x1a3   : > { %3751 = vmatprep.subr.bf16.mxu0 %v7870_v46  ;;  %3833 = vmatprep.subr.bf16.mxu1 %v7872_v47  ;;  %v7984_v46 = vcombine.high %v376_v41, %v384_v42  ;;  %v391_v47 = vld [vmem:[%s13069_s1 + $0x6b0] sm:$0xff]  ;;  %v496_v39 = vld [vmem:[%s13069_s1 + $0x9f8] sm:$0xff] }
 0x1a4   : > { %v7997_v60 = vcombine.low %v391_v47, %v399_v48 }
 0x1a6   : > { %3752 = vmatpush1.bf16.msra.mxu0 %v7869_v52  ;;  %3834 = vmatpush1.bf16.msra.mxu1 %v7871_v53  ;;  %v7983_v52 = vcombine.low %v376_v41, %v384_v42  ;;  %v7998_v53 = vcombine.high %v391_v47, %v399_v48  ;;  %v8079_v42 = vcombine.low %v472_v29, %v480_v30  ;;  %v512_v47 = vld [vmem:[%s13069_s1 + $0xa78] sm:$0xff] }
 0x1a7   : > { %3753 = vmatprep.subr.bf16.mxu0 %v7886_v54  ;;  %3835 = vmatprep.subr.bf16.mxu1 %v7888_v55  ;;  %v8000_v54 = vcombine.high %v392_v49, %v400_v50  ;;  %v407_v55 = vld [vmem:[%s13069_s1 + $0x730] sm:$0xff] }
 0x1a8   : > { %v8013_v4 = vcombine.low %v407_v55, %v415_v56 }
 0x1aa   : > { %3754 = vmatpush1.bf16.msra.mxu0 %v7885_v61  ;;  %3836 = vmatpush1.bf16.msra.mxu1 %v7887_v62  ;;  %v7999_v61 = vcombine.low %v392_v49, %v400_v50  ;;  %v8014_v62 = vcombine.high %v407_v55, %v415_v56  ;;  %v528_v55 = vld [vmem:[%s13069_s1 + $0xaf8] sm:$0xff] }
 0x1ab   : > { %3755 = vmatprep.subr.bf16.mxu0 %v7902_v63  ;;  %3837 = vmatprep.subr.bf16.mxu1 %v7904_v0  ;;  %v8016_v63 = vcombine.high %v408_v58, %v416_v59  ;;  %v423_v0 = vld [vmem:[%s13069_s1 + $0x7b0] sm:$0xff] }
 0x1ac   : > { %v8029_v13 = vcombine.low %v423_v0, %v431_v1 }
 0x1ae   : > { %3756 = vmatpush1.bf16.msra.mxu0 %v7901_v5  ;;  %3838 = vmatpush1.bf16.msra.mxu1 %v7903_v6  ;;  %v8015_v5 = vcombine.low %v408_v58, %v416_v59  ;;  %v8030_v6 = vcombine.high %v423_v0, %v431_v1  ;;  %v544_v0 = vld [vmem:[%s13069_s1 + $0xb78] sm:$0xff] }
 0x1af   : > { %3757 = vmatprep.subr.bf16.mxu0 %v7918_v7  ;;  %3839 = vmatprep.subr.bf16.mxu1 %v7920_v8  ;;  %v8032_v7 = vcombine.high %v424_v2, %v432_v3  ;;  %v439_v8 = vld [vmem:[%s13069_s1 + $0x830] sm:$0xff] }
 0x1b0   : > { %v8045_v21 = vcombine.low %v439_v8, %v447_v9 }
 0x1b2   : > { %3758 = vmatpush1.bf16.msra.mxu0 %v7917_v14  ;;  %3840 = vmatpush1.bf16.msra.mxu1 %v7919_v15  ;;  %v8031_v14 = vcombine.low %v424_v2, %v432_v3  ;;  %v8046_v15 = vcombine.high %v439_v8, %v447_v9 }
 0x1b3   : > { %3759 = vmatprep.subr.bf16.mxu0 %v7934_v16  ;;  %3841 = vmatprep.subr.bf16.mxu1 %v7936_v17  ;;  %v8048_v16 = vcombine.high %v440_v10, %v448_v11  ;;  %v455_v17 = vld [vmem:[%s13069_s1 + $0x8b0] sm:$0xff] }
 0x1b4   : > { %v8061_v57 = vcombine.low %v455_v17, %v463_v18 }
 0x1b6   : > { %3760 = vmatpush1.bf16.msra.mxu0 %v7933_v22  ;;  %3842 = vmatpush1.bf16.msra.mxu1 %v7935_v25  ;;  %v8047_v22 = vcombine.low %v440_v10, %v448_v11  ;;  %v8062_v25 = vcombine.high %v455_v17, %v463_v18  ;;  %v552_v10 = vld [vmem:[%s13069_s1 + $0xbb8] sm:$0xff] }
 0x1b7   : > { %3761 = vmatprep.subr.bf16.mxu0 %v7950_v26  ;;  %3843 = vmatprep.subr.bf16.mxu1 %v7952_v27  ;;  %v8064_v26 = vcombine.high %v456_v19, %v464_v20  ;;  %v471_v27 = vld [vmem:[%s13069_s1 + $0x930] sm:$0xff]  ;;  %v560_v11 = vld [vmem:[%s13069_s1 + $0xbf8] sm:$0xff] }
 0x1b8   : > { %v8077_v41 = vcombine.low %v471_v27, %v479_v28 }
 0x1ba   : > { %3762 = vmatpush1.bf16.msra.mxu0 %v7949_v31  ;;  %3844 = vmatpush1.bf16.msra.mxu1 %v7951_v33  ;;  %v8063_v31 = vcombine.low %v456_v19, %v464_v20  ;;  %v8078_v33 = vcombine.high %v471_v27, %v479_v28  ;;  %v576_v27 = vld [vmem:[%s13069_s1 + $0xc78] sm:$0xff] }
 0x1bb   : > { %3763 = vmatprep.subr.bf16.mxu0 %v7966_v34  ;;  %3845 = vmatprep.subr.bf16.mxu1 %v7968_v35  ;;  %v8080_v34 = vcombine.high %v472_v29, %v480_v30  ;;  %v487_v35 = vld [vmem:[%s13069_s1 + $0x9b0] sm:$0xff]  ;;  %v8159_v29 = vcombine.low %v552_v10, %v560_v11 }
 0x1bc   : > { %v8093_v48 = vcombine.low %v487_v35, %v495_v38 }
 0x1be   : > { %3764 = vmatpush1.bf16.msra.mxu0 %v7965_v43  ;;  %3846 = vmatpush1.bf16.msra.mxu1 %v7967_v44  ;;  %v8094_v43 = vcombine.high %v487_v35, %v495_v38  ;;  %v592_v35 = vld [vmem:[%s13069_s1 + $0xcf8] sm:$0xff] }
 0x1bf   : > { %3765 = vmatprep.subr.bf16.mxu0 %v7982_v45  ;;  %3847 = vmatprep.subr.bf16.mxu1 %v7984_v46  ;;  %v503_v45 = vld [vmem:[%s13069_s1 + $0xa30] sm:$0xff] }
 0x1c0   : > { %v511_v46 = vld [vmem:[%s13069_s1 + $0xa70] sm:$0xff] }
 0x1c1   : > { %v8110_v50 = vcombine.high %v503_v45, %v511_v46  ;;  %v8109_v56 = vcombine.low %v503_v45, %v511_v46  ;;  %v608_v45 = vld [vmem:[%s13069_s1 + $0xd78] sm:$0xff] }
 0x1c2   : > { %3766 = vmatpush1.bf16.msra.mxu0 %v7981_v51  ;;  %3848 = vmatpush1.bf16.msra.mxu1 %v7983_v52  ;;  %v519_v52 = vld [vmem:[%s13069_s1 + $0xab0] sm:$0xff] }
 0x1c3   : > { %3767 = vmatprep.subr.bf16.mxu0 %v7998_v53  ;;  %3849 = vmatprep.subr.bf16.mxu1 %v8000_v54  ;;  %v527_v53 = vld [vmem:[%s13069_s1 + $0xaf0] sm:$0xff]  ;;  %v520_v54 = vld [vmem:[%s13069_s1 + $0xab8] sm:$0xff] }
 0x1c4   : > { %v8126_v59 = vcombine.high %v519_v52, %v527_v53  ;;  %v8125_v1 = vcombine.low %v519_v52, %v527_v53  ;;  %v8127_v2 = vcombine.low %v520_v54, %v528_v55  ;;  %v624_v52 = vld [vmem:[%s13069_s1 + $0xdf8] sm:$0xff] }
 0x1c6   : > { %3768 = vmatpush1.bf16.msra.mxu0 %v7997_v60  ;;  %3850 = vmatpush1.bf16.msra.mxu1 %v7999_v61  ;;  %v8128_v60 = vcombine.high %v520_v54, %v528_v55  ;;  %v535_v61 = vld [vmem:[%s13069_s1 + $0xb30] sm:$0xff] }
 0x1c7   : > { %3769 = vmatprep.subr.bf16.mxu0 %v8014_v62  ;;  %3851 = vmatprep.subr.bf16.mxu1 %v8016_v63  ;;  %v543_v62 = vld [vmem:[%s13069_s1 + $0xb70] sm:$0xff]  ;;  %v536_v63 = vld [vmem:[%s13069_s1 + $0xb38] sm:$0xff] }
 0x1c8   : > { %v8142_v3 = vcombine.high %v535_v61, %v543_v62  ;;  %v8143_v18 = vcombine.low %v536_v63, %v544_v0 }
 0x1ca   : > { %3770 = vmatpush1.bf16.msra.mxu0 %v8013_v4  ;;  %3852 = vmatpush1.bf16.msra.mxu1 %v8015_v5  ;;  %v8144_v5 = vcombine.high %v536_v63, %v544_v0 }
 0x1cb   : > { %3771 = vmatprep.subr.bf16.mxu0 %v8030_v6  ;;  %3853 = vmatprep.subr.bf16.mxu1 %v8032_v7  ;;  %v551_v6 = vld [vmem:[%s13069_s1 + $0xbb0] sm:$0xff] }
 0x1cc   : > { %v559_v7 = vld [vmem:[%s13069_s1 + $0xbf0] sm:$0xff] }
 0x1cd   : > { %v8158_v19 = vcombine.high %v551_v6, %v559_v7  ;;  %v8157_v28 = vcombine.low %v551_v6, %v559_v7  ;;  %v656_v6 = vld [vmem:[%s13069_s1 + $0xef8] sm:$0xff] }
 0x1ce   : > { %3772 = vmatpush1.bf16.msra.mxu0 %v8029_v13  ;;  %3854 = vmatpush1.bf16.msra.mxu1 %v8031_v14 }
 0x1cf   : > { %3782 = vmatprep.subr.bf16.mxu0 %v8046_v15  ;;  %3864 = vmatprep.subr.bf16.mxu1 %v8048_v16  ;;  %v8141_v15 = vcombine.low %v535_v61, %v543_v62  ;;  %v640_v61 = vld [vmem:[%s13069_s1 + $0xe78] sm:$0xff] }
 0x1d1   : > { %3774 = vmatmul.mubr.bf16.vlgmr.msra.gmra.mrb[12].mxu0 %v10069_v12  ;;  %3856 = vmatmul.mubr.bf16.vlgmr.msra.gmra.mrb[12].mxu1 %v10069_v12  ;;  %v488_v12 = vld [vmem:[%s13069_s1 + $0x9b8] sm:$0xff] }
 0x1d2   : > { %3783 = vmatpush1.bf16.msra.mxu0 %v8045_v21  ;;  %3865 = vmatpush1.bf16.msra.mxu1 %v8047_v22  ;;  %v8096_v44 = vcombine.high %v488_v12, %v496_v39  ;;  %v8095_v49 = vcombine.low %v488_v12, %v496_v39  ;;  %v8160_v21 = vcombine.high %v552_v10, %v560_v11  ;;  %v567_v22 = vld [vmem:[%s13069_s1 + $0xc30] sm:$0xff] }
 0x1d3   : > { %3784 = vmatprep.subr.bf16.mxu0 %v8062_v25  ;;  %3866 = vmatprep.subr.bf16.mxu1 %v8064_v26  ;;  %v575_v25 = vld [vmem:[%s13069_s1 + $0xc70] sm:$0xff]  ;;  %v568_v26 = vld [vmem:[%s13069_s1 + $0xc38] sm:$0xff] }
 0x1d4   : > { %3814 = vmatprep.mubr.bf16.mxu0 %v10090_v24  ;;  %3896 = vmatprep.mubr.bf16.mxu1 %v10090_v24  ;;  %v504_v24 = vld [vmem:[%s13069_s1 + $0xa38] sm:$0xff]  ;;  %v8174_v30 = vcombine.high %v567_v22, %v575_v25  ;;  %v8173_v38 = vcombine.low %v567_v22, %v575_v25  ;;  %v8175_v12 = vcombine.low %v568_v26, %v576_v27  ;;  %v679_v25 = vld [vmem:[%s13069_s1 + $0xfb0] sm:$0xff] }
 0x1d5   : > { %v8112_v51 = vcombine.high %v504_v24, %v512_v47  ;;  %v8111_v58 = vcombine.low %v504_v24, %v512_v47 }
 0x1d6   : > { %3785 = vmatpush1.bf16.msra.mxu0 %v8061_v57  ;;  %3867 = vmatpush1.bf16.msra.mxu1 %v8063_v31  ;;  %v8176_v57 = vcombine.high %v568_v26, %v576_v27  ;;  %v583_v31 = vld [vmem:[%s13069_s1 + $0xcb0] sm:$0xff]  ;;  %v680_v27 = vld [vmem:[%s13069_s1 + $0xfb8] sm:$0xff] }
 0x1d7   : > { %3786 = vmatprep.subr.bf16.mxu0 %v8078_v33  ;;  %3868 = vmatprep.subr.bf16.mxu1 %v8080_v34  ;;  %v591_v33 = vld [vmem:[%s13069_s1 + $0xcf0] sm:$0xff]  ;;  %v584_v34 = vld [vmem:[%s13069_s1 + $0xcb8] sm:$0xff] }
 0x1d8   : > { %v8190_v39 = vcombine.high %v583_v31, %v591_v33  ;;  %v8189_v46 = vcombine.low %v583_v31, %v591_v33  ;;  %v8191_v24 = vcombine.low %v584_v34, %v592_v35  ;;  %v687_v26 = vld [vmem:[%s13069_s1 + $0xff0] sm:$0xff] }
 0x1d9   : > { %v8285_v33 = vcombine.low %v679_v25, %v687_v26 }
 0x1da   : > { %3787 = vmatpush1.bf16.msra.mxu0 %v8077_v41  ;;  %3869 = vmatpush1.bf16.msra.mxu1 %v8079_v42  ;;  %v8192_v41 = vcombine.high %v584_v34, %v592_v35  ;;  %v599_v42 = vld [vmem:[%s13069_s1 + $0xd30] sm:$0xff] }
 0x1db   : > { %3788 = vmatprep.subr.bf16.mxu0 %v8094_v43  ;;  %3870 = vmatprep.subr.bf16.mxu1 %v8096_v44  ;;  %v607_v43 = vld [vmem:[%s13069_s1 + $0xd70] sm:$0xff]  ;;  %v600_v44 = vld [vmem:[%s13069_s1 + $0xd38] sm:$0xff] }
 0x1dc   : > { %v8206_v47 = vcombine.high %v599_v42, %v607_v43  ;;  %v8205_v53 = vcombine.low %v599_v42, %v607_v43  ;;  %v8207_v54 = vcombine.low %v600_v44, %v608_v45  ;;  %v8941_v35 = vld [vmem:[%s13070_s2 + $0x4] ss:$16 sps:$4 sm:$0xff]  }
 0x1dd   : > { %v8947_v42 = vld [vmem:[%s13070_s2 + $0x24] ss:$16 sps:$4 sm:$0xff]  }
 0x1de   : > { %3789 = vmatpush1.bf16.msra.mxu0 %v8093_v48  ;;  %3871 = vmatpush1.bf16.msra.mxu1 %v8095_v49  ;;  %v8208_v48 = vcombine.high %v600_v44, %v608_v45  ;;  %v615_v49 = vld [vmem:[%s13069_s1 + $0xdb0] sm:$0xff]  ;;  %v8948_v45 = vld [vmem:[%s13070_s2 + $0x28] ss:$16 sps:$4 sm:$0xff]  }
 0x1df   : > { %3790 = vmatprep.subr.bf16.mxu0 %v8110_v50  ;;  %3872 = vmatprep.subr.bf16.mxu1 %v8112_v51  ;;  %v623_v50 = vld [vmem:[%s13069_s1 + $0xdf0] sm:$0xff]  ;;  %v616_v51 = vld [vmem:[%s13069_s1 + $0xdb8] sm:$0xff] }
 0x1e0   : > { %v8222_v55 = vcombine.high %v615_v49, %v623_v50  ;;  %v8221_v62 = vcombine.low %v615_v49, %v623_v50  ;;  %v8223_v63 = vcombine.low %v616_v51, %v624_v52  ;;  %v8945_v44 = vld [vmem:[%s13070_s2 + $0x20] ss:$16 sps:$4 sm:$0xff]   ;;  %v8962_v49 = vld [vmem:[%s13070_s2 + $0x6c] ss:$16 sps:$4 sm:$0xff]  }
 0x1e1   : > { %v8957_v50 = vld [vmem:[%s13070_s2 + $0x60] ss:$16 sps:$4 sm:$0xff]  }
 0x1e2   : > { %3791 = vmatpush1.bf16.msra.mxu0 %v8109_v56  ;;  %3873 = vmatpush1.bf16.msra.mxu1 %v8111_v58  ;;  %v8224_v56 = vcombine.high %v616_v51, %v624_v52  ;;  %v631_v58 = vld [vmem:[%s13069_s1 + $0xe30] sm:$0xff]  ;;  %v8960_v51 = vld [vmem:[%s13070_s2 + $0x68] ss:$16 sps:$4 sm:$0xff]  }
 0x1e3   : > { %3792 = vmatprep.subr.bf16.mxu0 %v8126_v59  ;;  %3874 = vmatprep.subr.bf16.mxu1 %v8128_v60  ;;  %v639_v59 = vld [vmem:[%s13069_s1 + $0xe70] sm:$0xff]  ;;  %v632_v60 = vld [vmem:[%s13069_s1 + $0xe38] sm:$0xff] }
 0x1e4   : > { %v11331_v4 = vpop.f32.mrb[4].mxu0  ;;  %v11339_v8 = vpop.f32.mrb[4].mxu1  ;;  %v8238_v0 = vcombine.high %v631_v58, %v639_v59  ;;  %v8237_v7 = vcombine.low %v631_v58, %v639_v59  ;;  %v8239_v10 = vcombine.low %v632_v60, %v640_v61  ;;  %v8965_v52 = vld [vmem:[%s13070_s2 + $0x84] ss:$16 sps:$4 sm:$0xff]   ;;  %v8974_v58 = vld [vmem:[%s13070_s2 + $0xac] ss:$16 sps:$4 sm:$0xff]  }
 0x1e5   : > { %v11341_v9 = vpop.f32.mrb[5].mxu0  ;;  %v11349_v13 = vpop.f32.mrb[5].mxu1  ;;  %v8969_v59 = vld [vmem:[%s13070_s2 + $0xa0] ss:$16 sps:$4 sm:$0xff]  }
 0x1e6   : > { %v3492_v14 = vpop.f32.mrb[6].mxu0  ;;  %3793 = vmatpush1.bf16.msra.mxu0 %v8125_v1  ;;  %v3574_v16 = vpop.f32.mrb[6].mxu1  ;;  %3875 = vmatpush1.bf16.msra.mxu1 %v8127_v2  ;;  %v8240_v1 = vcombine.high %v632_v60, %v640_v61  ;;  %v647_v2 = vld [vmem:[%s13069_s1 + $0xeb0] sm:$0xff]  ;;  %v8972_v60 = vld [vmem:[%s13070_s2 + $0xa8] ss:$16 sps:$4 sm:$0xff]  }
 0x1e7   : > { %v3493_v17 = vpop.f32.mrb[7].mxu0  ;;  %3794 = vmatprep.subr.bf16.mxu0 %v8142_v3  ;;  %v3575_v20 = vpop.f32.mrb[7].mxu1  ;;  %3876 = vmatprep.subr.bf16.mxu1 %v8144_v5  ;;  %v655_v3 = vld [vmem:[%s13069_s1 + $0xef0] sm:$0xff]  ;;  %v648_v5 = vld [vmem:[%s13069_s1 + $0xeb8] sm:$0xff] }
 0x1e8   : > { %v8254_v11 = vcombine.high %v647_v2, %v655_v3  ;;  %v8256_v14 = vcombine.high %v648_v5, %v656_v6  ;;  %v671_v16 = vld [vmem:[%s13069_s1 + $0xf70] sm:$0xff]  ;;  %v664_v17 = vld [vmem:[%s13069_s1 + $0xf38] sm:$0xff]  ;;  %v8255_v20 = vcombine.low %v648_v5, %v656_v6 }
 0x1e9   : > { %v8977_v61 = vld [vmem:[%s13070_s2 + $0xc4] ss:$16 sps:$4 sm:$0xff]   ;;  %v8984_v5 = vld [vmem:[%s13070_s2 + $0xe8] ss:$16 sps:$4 sm:$0xff]  }
 0x1ea   : > { %3795 = vmatpush1.bf16.msra.mxu0 %v8141_v15  ;;  %3877 = vmatpush1.bf16.msra.mxu1 %v8143_v18  ;;  %v663_v15 = vld [vmem:[%s13069_s1 + $0xf30] sm:$0xff]  ;;  %v672_v18 = vld [vmem:[%s13069_s1 + $0xf78] sm:$0xff] }
 0x1eb   : > { %3796 = vmatprep.subr.bf16.mxu0 %v8158_v19  ;;  %3878 = vmatprep.subr.bf16.mxu1 %v8160_v21  ;;  %v8253_v19 = vcombine.low %v647_v2, %v655_v3  ;;  %v8270_v21 = vcombine.high %v663_v15, %v671_v16  ;;  %v8272_v22 = vcombine.high %v664_v17, %v672_v18  ;;  %v8986_v2 = vld [vmem:[%s13070_s2 + $0xec] ss:$16 sps:$4 sm:$0xff]   ;;  %v8981_v3 = vld [vmem:[%s13070_s2 + $0xe0] ss:$16 sps:$4 sm:$0xff]   ;;  %v8989_v6 = vld [vmem:[%s13070_s2 + $0x104] ss:$16 sps:$4 sm:$0xff]  }
 0x1ee   : > { %3797 = vmatpush1.bf16.msra.mxu0 %v8157_v28  ;;  %3879 = vmatpush1.bf16.msra.mxu1 %v8159_v29  ;;  %v688_v28 = vld [vmem:[%s13069_s1 + $0xff8] sm:$0xff]  ;;  %v8269_v29 = vcombine.low %v663_v15, %v671_v16  ;;  %v8993_v16 = vld [vmem:[%s13070_s2 + $0x120] ss:$16 sps:$4 sm:$0xff]  }
 0x1ef   : > { %3798 = vmatprep.subr.bf16.mxu0 %v8174_v30  ;;  %3880 = vmatprep.subr.bf16.mxu1 %v8176_v57  ;;  %v8271_v30 = vcombine.low %v664_v17, %v672_v18  ;;  %v8286_v57 = vcombine.high %v679_v25, %v687_v26  ;;  %v8288_v31 = vcombine.high %v680_v27, %v688_v28  ;;  %v8998_v15 = vld [vmem:[%s13070_s2 + $0x12c] ss:$16 sps:$4 sm:$0xff]   ;;  %v8996_v17 = vld [vmem:[%s13070_s2 + $0x128] ss:$16 sps:$4 sm:$0xff]   ;;  %v9001_v18 = vld [vmem:[%s13070_s2 + $0x144] ss:$16 sps:$4 sm:$0xff]  }
 0x1f0   : > { %v8287_v34 = vcombine.low %v680_v27, %v688_v28  ;;  %v9010_v25 = vld [vmem:[%s13070_s2 + $0x16c] ss:$16 sps:$4 sm:$0xff]   ;;  %v9005_v26 = vld [vmem:[%s13070_s2 + $0x160] ss:$16 sps:$4 sm:$0xff]   ;;  %v9008_v27 = vld [vmem:[%s13070_s2 + $0x168] ss:$16 sps:$4 sm:$0xff]  }
 0x1f1   : > { %v9013_v28 = vld [vmem:[%s13070_s2 + $0x184] ss:$16 sps:$4 sm:$0xff]  }
 0x1f2   : > { %3799 = vmatpush1.bf16.msra.mxu0 %v8173_v38  ;;  %3881 = vmatpush1.bf16.msra.mxu1 %v8175_v12  ;;  %v8944_v38 = vld [vmem:[%s13070_s2 + $0xc] ss:$16 sps:$4 sm:$0xff]   ;;  %v3906_v12 = vmax.f32 %v10941_v37, 0.0 }
 0x1f3   : > { %3800 = vmatprep.subr.bf16.mxu0 %v8190_v39  ;;  %3882 = vmatprep.subr.bf16.mxu1 %v8192_v41  ;;  %v8939_v39 = vld [vmem:[%s13070_s2] ss:$16 sps:$4 sm:$0xff]   ;;  %v8942_v41 = vld [vmem:[%s13070_s2 + $0x8] ss:$16 sps:$4 sm:$0xff]   ;;  %v8950_v37 = vld [vmem:[%s13070_s2 + $0x2c] ss:$16 sps:$4 sm:$0xff]  }
 0x1f4   : > { %v3922_v43 = vpack.c.bf16 %v3906_v12, %v3906_v12  ;;  %v9028_v12 = vld [vmem:[%s13070_s2 + $0x1cc] ss:$16 sps:$4 sm:$0xff]  }
 0x1f6   : > { %3801 = vmatpush1.bf16.msra.mxu0 %v8189_v46  ;;  %3883 = vmatpush1.bf16.msra.mxu1 %v8191_v24  ;;  %v8953_v46 = vld [vmem:[%s13070_s2 + $0x44] ss:$16 sps:$4 sm:$0xff]   ;;  %v8951_v24 = vld [vmem:[%s13070_s2 + $0x40] ss:$16 sps:$4 sm:$0xff]  }
 0x1f7   : > { %3802 = vmatprep.subr.bf16.mxu0 %v8206_v47  ;;  %3884 = vmatprep.subr.bf16.mxu1 %v8208_v48  ;;  %v8954_v47 = vld [vmem:[%s13070_s2 + $0x48] ss:$16 sps:$4 sm:$0xff]   ;;  %v8959_v48 = vld [vmem:[%s13070_s2 + $0x64] ss:$16 sps:$4 sm:$0xff]  }
 0x1fa   : > { %3803 = vmatpush1.bf16.msra.mxu0 %v8205_v53  ;;  %3885 = vmatpush1.bf16.msra.mxu1 %v8207_v54  ;;  %v8968_v53 = vld [vmem:[%s13070_s2 + $0x8c] ss:$16 sps:$4 sm:$0xff]   ;;  %v8963_v54 = vld [vmem:[%s13070_s2 + $0x80] ss:$16 sps:$4 sm:$0xff]  }
 0x1fb   : > { %3804 = vmatprep.subr.bf16.mxu0 %v8222_v55  ;;  %3886 = vmatprep.subr.bf16.mxu1 %v8224_v56  ;;  %v8966_v55 = vld [vmem:[%s13070_s2 + $0x88] ss:$16 sps:$4 sm:$0xff]   ;;  %v8971_v56 = vld [vmem:[%s13070_s2 + $0xa4] ss:$16 sps:$4 sm:$0xff]  }
 0x1fe   : > { %3805 = vmatpush1.bf16.msra.mxu0 %v8221_v62  ;;  %3887 = vmatpush1.bf16.msra.mxu1 %v8223_v63  ;;  %v8980_v62 = vld [vmem:[%s13070_s2 + $0xcc] ss:$16 sps:$4 sm:$0xff]   ;;  %v8975_v63 = vld [vmem:[%s13070_s2 + $0xc0] ss:$16 sps:$4 sm:$0xff]  }
 0x1ff   : > { %3806 = vmatprep.subr.bf16.mxu0 %v8238_v0  ;;  %3888 = vmatprep.subr.bf16.mxu1 %v8240_v1  ;;  %v8978_v0 = vld [vmem:[%s13070_s2 + $0xc8] ss:$16 sps:$4 sm:$0xff]   ;;  %v8983_v1 = vld [vmem:[%s13070_s2 + $0xe4] ss:$16 sps:$4 sm:$0xff]  }
 0x202   : > { %3807 = vmatpush1.bf16.msra.mxu0 %v8237_v7  ;;  %3889 = vmatpush1.bf16.msra.mxu1 %v8239_v10  ;;  %v8992_v7 = vld [vmem:[%s13070_s2 + $0x10c] ss:$16 sps:$4 sm:$0xff]   ;;  %v8987_v10 = vld [vmem:[%s13070_s2 + $0x100] ss:$16 sps:$4 sm:$0xff]  }
 0x203   : > { %3808 = vmatprep.subr.bf16.mxu0 %v8254_v11  ;;  %3890 = vmatprep.subr.bf16.mxu1 %v8256_v14  ;;  %v8990_v11 = vld [vmem:[%s13070_s2 + $0x108] ss:$16 sps:$4 sm:$0xff]   ;;  %v8995_v14 = vld [vmem:[%s13070_s2 + $0x124] ss:$16 sps:$4 sm:$0xff]  }
 0x206   : > { %3809 = vmatpush1.bf16.msra.mxu0 %v8253_v19  ;;  %3891 = vmatpush1.bf16.msra.mxu1 %v8255_v20  ;;  %v9004_v19 = vld [vmem:[%s13070_s2 + $0x14c] ss:$16 sps:$4 sm:$0xff]   ;;  %v8999_v20 = vld [vmem:[%s13070_s2 + $0x140] ss:$16 sps:$4 sm:$0xff]  }
 0x207   : > { %3810 = vmatprep.subr.bf16.mxu0 %v8270_v21  ;;  %3892 = vmatprep.subr.bf16.mxu1 %v8272_v22  ;;  %v9002_v21 = vld [vmem:[%s13070_s2 + $0x148] ss:$16 sps:$4 sm:$0xff]   ;;  %v9007_v22 = vld [vmem:[%s13070_s2 + $0x164] ss:$16 sps:$4 sm:$0xff]  }
 0x20a   : > { %3811 = vmatpush1.bf16.msra.mxu0 %v8269_v29  ;;  %3893 = vmatpush1.bf16.msra.mxu1 %v8271_v30  ;;  %v9016_v29 = vld [vmem:[%s13070_s2 + $0x18c] ss:$16 sps:$4 sm:$0xff]   ;;  %v9011_v30 = vld [vmem:[%s13070_s2 + $0x180] ss:$16 sps:$4 sm:$0xff]  }
 0x20b   : > { %3812 = vmatprep.subr.bf16.mxu0 %v8286_v57  ;;  %3894 = vmatprep.subr.bf16.mxu1 %v8288_v31  ;;  %v9014_v57 = vld [vmem:[%s13070_s2 + $0x188] ss:$16 sps:$4 sm:$0xff]   ;;  %v9019_v31 = vld [vmem:[%s13070_s2 + $0x1a4] ss:$16 sps:$4 sm:$0xff]  }
 0x20e   : > { %3813 = vmatpush1.bf16.msra.mxu0 %v8285_v33  ;;  %3895 = vmatpush1.bf16.msra.mxu1 %v8287_v34  ;;  %v9022_v33 = vld [vmem:[%s13070_s2 + $0x1ac] ss:$16 sps:$4 sm:$0xff]   ;;  %v9017_v34 = vld [vmem:[%s13070_s2 + $0x1a0] ss:$16 sps:$4 sm:$0xff]  }
 0x20f   : > { %7009 = vmatprep.subr.bf16.mxu0 %v8941_v35  ;;  %7337 = vmatprep.subr.bf16.mxu1 %v8944_v38  ;;  %v9020_v35 = vld [vmem:[%s13070_s2 + $0x1a8] ss:$16 sps:$4 sm:$0xff]   ;;  %v9025_v38 = vld [vmem:[%s13070_s2 + $0x1c4] ss:$16 sps:$4 sm:$0xff]  }
 0x211   : > { %3815 = vmatmul.mubr.bf16.vlgmr.msra.gmra.mrb[12].mxu0 %v10277_v23  ;;  %3897 = vmatmul.mubr.bf16.vlgmr.msra.gmra.mrb[12].mxu1 %v10277_v23  ;;  %v8956_v23 = vld [vmem:[%s13070_s2 + $0x4c] ss:$16 sps:$4 sm:$0xff]  }
 0x212   : > { %7010 = vmatpush1.bf16.msra.mxu0 %v8939_v39  ;;  %7041 = vmatprep.mubr.bf16.mxu0 %v3922_v43  ;;  %v9023_v39 = vld [vmem:[%s13070_s2 + $0x1c0] ss:$16 sps:$4 sm:$0xff]  }
 0x213   : > { %7338 = vmatpush1.bf16.msra.mxu1 %v8942_v41  ;;  %7369 = vmatprep.mubr.bf16.mxu1 %v3922_v43  ;;  %v9026_v41 = vld [vmem:[%s13070_s2 + $0x1c8] ss:$16 sps:$4 sm:$0xff]   ;;  %v9034_v43 = vld [vmem:[%s13070_s2 + $0x1ec] ss:$16 sps:$4 sm:$0xff]  }
 0x214   : > { %7011 = vmatprep.subr.bf16.mxu0 %v8947_v42  ;;  %7339 = vmatprep.subr.bf16.mxu1 %v8950_v37  ;;  %v9031_v42 = vld [vmem:[%s13070_s2 + $0x1e4] ss:$16 sps:$4 sm:$0xff]   ;;  %v9029_v37 = vld [vmem:[%s13070_s2 + $0x1e0] ss:$16 sps:$4 sm:$0xff]  }
 0x216   : > { %7012 = vmatpush1.bf16.msra.mxu0 %v8945_v44  ;;  %v3905_v44 = vmax.f32 %v10931_v32, 0.0  ;;  %v9035_v32 = vld [vmem:[%s13070_s2 + $0x200] ss:$16 sps:$4 sm:$0xff]  }
 0x217   : > { %7340 = vmatpush1.bf16.msra.mxu1 %v8948_v45  ;;  %7013 = vmatprep.subr.bf16.mxu0 %v8953_v46  ;;  %v9032_v45 = vld [vmem:[%s13070_s2 + $0x1e8] ss:$16 sps:$4 sm:$0xff]   ;;  %v9037_v46 = vld [vmem:[%s13070_s2 + $0x204] ss:$16 sps:$4 sm:$0xff]  }
 0x218   : > { %7341 = vmatprep.subr.bf16.mxu1 %v8956_v23  ;;  %v9040_v23 = vld [vmem:[%s13070_s2 + $0x20c] ss:$16 sps:$4 sm:$0xff]  }
 0x21a   : > { %7014 = vmatpush1.bf16.msra.mxu0 %v8951_v24  ;;  %v3908_v24 = vmax.f32 %v10949_v40, 0.0  ;;  %v9046_v40 = vld [vmem:[%s13070_s2 + $0x22c] ss:$16 sps:$4 sm:$0xff]  }
 0x21b   : > { %7342 = vmatpush1.bf16.msra.mxu1 %v8954_v47  ;;  %7015 = vmatprep.subr.bf16.mxu0 %v8959_v48  ;;  %v3921_v47 = vpack.c.bf16 %v3905_v44, %v3905_v44  ;;  %v9038_v48 = vld [vmem:[%s13070_s2 + $0x208] ss:$16 sps:$4 sm:$0xff]   ;;  %v9101_v44 = vld [vmem:[%s13070_s2 + $0x360] ss:$16 sps:$4 sm:$0xff]  }
 0x21c   : > { %7343 = vmatprep.subr.bf16.mxu1 %v8962_v49  ;;  %v9043_v49 = vld [vmem:[%s13070_s2 + $0x224] ss:$16 sps:$4 sm:$0xff]  }
 0x21e   : > { %7016 = vmatpush1.bf16.msra.mxu0 %v8957_v50  ;;  %v3924_v50 = vpack.c.bf16 %v3908_v24, %v3908_v24  ;;  %v9107_v24 = vld [vmem:[%s13070_s2 + $0x380] ss:$16 sps:$4 sm:$0xff]  }
 0x21f   : > { %7344 = vmatpush1.bf16.msra.mxu1 %v8960_v51  ;;  %7017 = vmatprep.subr.bf16.mxu0 %v8965_v52  ;;  %v9041_v51 = vld [vmem:[%s13070_s2 + $0x220] ss:$16 sps:$4 sm:$0xff]   ;;  %v9044_v52 = vld [vmem:[%s13070_s2 + $0x228] ss:$16 sps:$4 sm:$0xff]  }
 0x220   : > { %7345 = vmatprep.subr.bf16.mxu1 %v8968_v53  ;;  %v9049_v53 = vld [vmem:[%s13070_s2 + $0x244] ss:$16 sps:$4 sm:$0xff]  }
 0x222   : > { %7018 = vmatpush1.bf16.msra.mxu0 %v8963_v54  ;;  %v9052_v54 = vld [vmem:[%s13070_s2 + $0x24c] ss:$16 sps:$4 sm:$0xff]  }
 0x223   : > { %7346 = vmatpush1.bf16.msra.mxu1 %v8966_v55  ;;  %7019 = vmatprep.subr.bf16.mxu0 %v8971_v56  ;;  %v9047_v55 = vld [vmem:[%s13070_s2 + $0x240] ss:$16 sps:$4 sm:$0xff]   ;;  %v9050_v56 = vld [vmem:[%s13070_s2 + $0x248] ss:$16 sps:$4 sm:$0xff]  }
 0x224   : > { %7347 = vmatprep.subr.bf16.mxu1 %v8974_v58  ;;  %v9055_v58 = vld [vmem:[%s13070_s2 + $0x264] ss:$16 sps:$4 sm:$0xff]  }
 0x226   : > { %7020 = vmatpush1.bf16.msra.mxu0 %v8969_v59  ;;  %v9058_v59 = vld [vmem:[%s13070_s2 + $0x26c] ss:$16 sps:$4 sm:$0xff]  }
 0x227   : > { %7348 = vmatpush1.bf16.msra.mxu1 %v8972_v60  ;;  %7021 = vmatprep.subr.bf16.mxu0 %v8977_v61  ;;  %v9053_v60 = vld [vmem:[%s13070_s2 + $0x260] ss:$16 sps:$4 sm:$0xff]   ;;  %v9056_v61 = vld [vmem:[%s13070_s2 + $0x268] ss:$16 sps:$4 sm:$0xff]  }
 0x228   : > { %7349 = vmatprep.subr.bf16.mxu1 %v8980_v62  ;;  %v9061_v62 = vld [vmem:[%s13070_s2 + $0x284] ss:$16 sps:$4 sm:$0xff]  }
 0x22a   : > { %7022 = vmatpush1.bf16.msra.mxu0 %v8975_v63  ;;  %v9064_v63 = vld [vmem:[%s13070_s2 + $0x28c] ss:$16 sps:$4 sm:$0xff]  }
 0x22b   : > { %7350 = vmatpush1.bf16.msra.mxu1 %v8978_v0  ;;  %7023 = vmatprep.subr.bf16.mxu0 %v8983_v1  ;;  %v9059_v0 = vld [vmem:[%s13070_s2 + $0x280] ss:$16 sps:$4 sm:$0xff]   ;;  %v9062_v1 = vld [vmem:[%s13070_s2 + $0x288] ss:$16 sps:$4 sm:$0xff]  }
 0x22c   : > { %7351 = vmatprep.subr.bf16.mxu1 %v8986_v2  ;;  %v9067_v2 = vld [vmem:[%s13070_s2 + $0x2a4] ss:$16 sps:$4 sm:$0xff]  }
 0x22e   : > { %7024 = vmatpush1.bf16.msra.mxu0 %v8981_v3  ;;  %v9070_v3 = vld [vmem:[%s13070_s2 + $0x2ac] ss:$16 sps:$4 sm:$0xff]  }
 0x22f   : > { %7352 = vmatpush1.bf16.msra.mxu1 %v8984_v5  ;;  %7025 = vmatprep.subr.bf16.mxu0 %v8989_v6  ;;  %v9065_v5 = vld [vmem:[%s13070_s2 + $0x2a0] ss:$16 sps:$4 sm:$0xff]   ;;  %v9068_v6 = vld [vmem:[%s13070_s2 + $0x2a8] ss:$16 sps:$4 sm:$0xff]  }
 0x230   : > { %7353 = vmatprep.subr.bf16.mxu1 %v8992_v7  ;;  %v9073_v7 = vld [vmem:[%s13070_s2 + $0x2c4] ss:$16 sps:$4 sm:$0xff]  }
 0x232   : > { %7026 = vmatpush1.bf16.msra.mxu0 %v8987_v10 }
 0x233   : > { %7354 = vmatpush1.bf16.msra.mxu1 %v8990_v11  ;;  %7027 = vmatprep.subr.bf16.mxu0 %v8995_v14  ;;  %v9076_v11 = vld [vmem:[%s13070_s2 + $0x2cc] ss:$16 sps:$4 sm:$0xff]  }
 0x234   : > { %7355 = vmatprep.subr.bf16.mxu1 %v8998_v15 }
 0x236   : > { %7028 = vmatpush1.bf16.msra.mxu0 %v8993_v16 }
 0x237   : > { %7356 = vmatpush1.bf16.msra.mxu1 %v8996_v17  ;;  %7029 = vmatprep.subr.bf16.mxu0 %v9001_v18  ;;  %v9071_v18 = vld [vmem:[%s13070_s2 + $0x2c0] ss:$16 sps:$4 sm:$0xff]  }
 0x238   : > { %7357 = vmatprep.subr.bf16.mxu1 %v9004_v19 }
 0x23a   : > { %7030 = vmatpush1.bf16.msra.mxu0 %v8999_v20 }
 0x23b   : > { %7358 = vmatpush1.bf16.msra.mxu1 %v9002_v21  ;;  %7031 = vmatprep.subr.bf16.mxu0 %v9007_v22  ;;  %v9074_v21 = vld [vmem:[%s13070_s2 + $0x2c8] ss:$16 sps:$4 sm:$0xff]   ;;  %v9079_v22 = vld [vmem:[%s13070_s2 + $0x2e4] ss:$16 sps:$4 sm:$0xff]  }
 0x23c   : > { %7359 = vmatprep.subr.bf16.mxu1 %v9010_v25 }
 0x23e   : > { %7032 = vmatpush1.bf16.msra.mxu0 %v9005_v26  ;;  %v9082_v26 = vld [vmem:[%s13070_s2 + $0x2ec] ss:$16 sps:$4 sm:$0xff]  }
 0x23f   : > { %7360 = vmatpush1.bf16.msra.mxu1 %v9008_v27  ;;  %7033 = vmatprep.subr.bf16.mxu0 %v9013_v28  ;;  %v9077_v27 = vld [vmem:[%s13070_s2 + $0x2e0] ss:$16 sps:$4 sm:$0xff]   ;;  %v9080_v28 = vld [vmem:[%s13070_s2 + $0x2e8] ss:$16 sps:$4 sm:$0xff]  }
 0x240   : > { %7361 = vmatprep.subr.bf16.mxu1 %v9016_v29  ;;  %v9085_v29 = vld [vmem:[%s13070_s2 + $0x304] ss:$16 sps:$4 sm:$0xff]  }
 0x242   : > { %7034 = vmatpush1.bf16.msra.mxu0 %v9011_v30  ;;  %v9088_v30 = vld [vmem:[%s13070_s2 + $0x30c] ss:$16 sps:$4 sm:$0xff]  }
 0x243   : > { %7362 = vmatpush1.bf16.msra.mxu1 %v9014_v57  ;;  %7035 = vmatprep.subr.bf16.mxu0 %v9019_v31  ;;  %v9083_v57 = vld [vmem:[%s13070_s2 + $0x300] ss:$16 sps:$4 sm:$0xff]   ;;  %v9086_v31 = vld [vmem:[%s13070_s2 + $0x308] ss:$16 sps:$4 sm:$0xff]  }
 0x244   : > { %7363 = vmatprep.subr.bf16.mxu1 %v9022_v33  ;;  %v9091_v33 = vld [vmem:[%s13070_s2 + $0x324] ss:$16 sps:$4 sm:$0xff]  }
 0x246   : > { %7036 = vmatpush1.bf16.msra.mxu0 %v9017_v34  ;;  %v9094_v34 = vld [vmem:[%s13070_s2 + $0x32c] ss:$16 sps:$4 sm:$0xff]  }
 0x247   : > { %7364 = vmatpush1.bf16.msra.mxu1 %v9020_v35  ;;  %7037 = vmatprep.subr.bf16.mxu0 %v9025_v38  ;;  %v9089_v35 = vld [vmem:[%s13070_s2 + $0x320] ss:$16 sps:$4 sm:$0xff]   ;;  %v9092_v38 = vld [vmem:[%s13070_s2 + $0x328] ss:$16 sps:$4 sm:$0xff]  }
 0x248   : > { %7365 = vmatprep.subr.bf16.mxu1 %v9028_v12  ;;  %v9097_v12 = vld [vmem:[%s13070_s2 + $0x344] ss:$16 sps:$4 sm:$0xff]  }
 0x24a   : > { %7038 = vmatpush1.bf16.msra.mxu0 %v9023_v39  ;;  %v9100_v39 = vld [vmem:[%s13070_s2 + $0x34c] ss:$16 sps:$4 sm:$0xff]  }
 0x24b   : > { %7366 = vmatpush1.bf16.msra.mxu1 %v9026_v41  ;;  %7039 = vmatprep.subr.bf16.mxu0 %v9031_v42  ;;  %v9095_v41 = vld [vmem:[%s13070_s2 + $0x340] ss:$16 sps:$4 sm:$0xff]   ;;  %v9098_v42 = vld [vmem:[%s13070_s2 + $0x348] ss:$16 sps:$4 sm:$0xff]  }
 0x24c   : > { %7367 = vmatprep.subr.bf16.mxu1 %v9034_v43  ;;  %v9103_v43 = vld [vmem:[%s13070_s2 + $0x364] ss:$16 sps:$4 sm:$0xff]  }
 0x24e   : > { %7040 = vmatpush1.bf16.msra.mxu0 %v9029_v37  ;;  %v9106_v37 = vld [vmem:[%s13070_s2 + $0x36c] ss:$16 sps:$4 sm:$0xff]  }
 0x24f   : > { %7368 = vmatpush1.bf16.msra.mxu1 %v9032_v45  ;;  %7050 = vmatprep.subr.bf16.mxu0 %v9037_v46  ;;  %v9104_v45 = vld [vmem:[%s13070_s2 + $0x368] ss:$16 sps:$4 sm:$0xff]   ;;  %v9109_v46 = vld [vmem:[%s13070_s2 + $0x384] ss:$16 sps:$4 sm:$0xff]  }
 0x250   : > { %7378 = vmatprep.subr.bf16.mxu1 %v9040_v23  ;;  %v9112_v23 = vld [vmem:[%s13070_s2 + $0x38c] ss:$16 sps:$4 sm:$0xff]  }
 0x251   : > { %7042 = vmatmul.mubr.bf16.vlgmr.msra.gmra.mrb[16].mxu0 %v3921_v47 }
 0x252   : > { %7370 = vmatmul.mubr.bf16.vlgmr.msra.gmra.mrb[16].mxu1 %v3921_v47  ;;  %7051 = vmatpush1.bf16.msra.mxu0 %v9035_v32  ;;  %v9110_v32 = vld [vmem:[%s13070_s2 + $0x388] ss:$16 sps:$4 sm:$0xff]   ;;  %v9115_v47 = vld [vmem:[%s13070_s2 + $0x3a4] ss:$16 sps:$4 sm:$0xff]  }
 0x253   : > { %7082 = vmatprep.mubr.bf16.mxu0 %v3924_v50  ;;  %7379 = vmatpush1.bf16.msra.mxu1 %v9038_v48  ;;  %v9118_v48 = vld [vmem:[%s13070_s2 + $0x3ac] ss:$16 sps:$4 sm:$0xff]  }
 0x254   : > { %7410 = vmatprep.mubr.bf16.mxu1 %v3924_v50  ;;  %7052 = vmatprep.subr.bf16.mxu0 %v9043_v49  ;;  %v9113_v49 = vld [vmem:[%s13070_s2 + $0x3a0] ss:$16 sps:$4 sm:$0xff]   ;;  %v9116_v50 = vld [vmem:[%s13070_s2 + $0x3a8] ss:$16 sps:$4 sm:$0xff]  }
 0x255   : > { %7380 = vmatprep.subr.bf16.mxu1 %v9046_v40  ;;  %v9121_v40 = vld [vmem:[%s13070_s2 + $0x3c4] ss:$16 sps:$4 sm:$0xff]  }
 0x256   : > { %7053 = vmatpush1.bf16.msra.mxu0 %v9041_v51  ;;  %v9124_v51 = vld [vmem:[%s13070_s2 + $0x3cc] ss:$16 sps:$4 sm:$0xff]  }
 0x257   : > { %7381 = vmatpush1.bf16.msra.mxu1 %v9044_v52  ;;  %7054 = vmatprep.subr.bf16.mxu0 %v9049_v53  ;;  %v9119_v52 = vld [vmem:[%s13070_s2 + $0x3c0] ss:$16 sps:$4 sm:$0xff]   ;;  %v9122_v53 = vld [vmem:[%s13070_s2 + $0x3c8] ss:$16 sps:$4 sm:$0xff]  }
 0x258   : > { %7382 = vmatprep.subr.bf16.mxu1 %v9052_v54  ;;  %v9127_v54 = vld [vmem:[%s13070_s2 + $0x3e4] ss:$16 sps:$4 sm:$0xff]  }
 0x25a   : > { %7055 = vmatpush1.bf16.msra.mxu0 %v9047_v55  ;;  %v9130_v55 = vld [vmem:[%s13070_s2 + $0x3ec] ss:$16 sps:$4 sm:$0xff]  }
 0x25b   : > { %7383 = vmatpush1.bf16.msra.mxu1 %v9050_v56  ;;  %7056 = vmatprep.subr.bf16.mxu0 %v9055_v58  ;;  %v9125_v56 = vld [vmem:[%s13070_s2 + $0x3e0] ss:$16 sps:$4 sm:$0xff]   ;;  %v3907_v58 = vmax.f32 %v10939_v36, 0.0 }
 0x25c   : > { %7384 = vmatprep.subr.bf16.mxu1 %v9058_v59  ;;  %v9128_v59 = vld [vmem:[%s13070_s2 + $0x3e8] ss:$16 sps:$4 sm:$0xff]   ;;  %v9131_v36 = vld [vmem:[%s13070_s2 + $0x400] ss:$16 sps:$4 sm:$0xff]  }
 0x25e   : > { %7057 = vmatpush1.bf16.msra.mxu0 %v9053_v60  ;;  %v9133_v60 = vld [vmem:[%s13070_s2 + $0x404] ss:$16 sps:$4 sm:$0xff]  }
 0x25f   : > { %7385 = vmatpush1.bf16.msra.mxu1 %v9056_v61  ;;  %7058 = vmatprep.subr.bf16.mxu0 %v9061_v62  ;;  %v9136_v61 = vld [vmem:[%s13070_s2 + $0x40c] ss:$16 sps:$4 sm:$0xff]   ;;  %v3910_v62 = vmax.f32 %v11341_v9, 0.0 }
 0x260   : > { %7386 = vmatprep.subr.bf16.mxu1 %v9064_v63  ;;  %v3923_v63 = vpack.c.bf16 %v3907_v58, %v3907_v58  ;;  %v9142_v9 = vld [vmem:[%s13070_s2 + $0x42c] ss:$16 sps:$4 sm:$0xff]   ;;  %v9211_v58 = vld [vmem:[%s13070_s2 + $0x5a4] ss:$16 sps:$4 sm:$0xff]  }
 0x262   : > { %7059 = vmatpush1.bf16.msra.mxu0 %v9059_v0  ;;  %v9134_v0 = vld [vmem:[%s13070_s2 + $0x408] ss:$16 sps:$4 sm:$0xff]  }
 0x263   : > { %7387 = vmatpush1.bf16.msra.mxu1 %v9062_v1  ;;  %7060 = vmatprep.subr.bf16.mxu0 %v9067_v2  ;;  %v9139_v1 = vld [vmem:[%s13070_s2 + $0x424] ss:$16 sps:$4 sm:$0xff]   ;;  %v3926_v2 = vpack.c.bf16 %v3910_v62, %v3910_v62 }
 0x264   : > { %v11719_v10 = vpop.f32.mrb[8].mxu0  ;;  %7388 = vmatprep.subr.bf16.mxu1 %v9070_v3  ;;  %v11724_v14 = vpop.f32.mrb[8].mxu1  ;;  %v9137_v3 = vld [vmem:[%s13070_s2 + $0x420] ss:$16 sps:$4 sm:$0xff]   ;;  %v9217_v62 = vld [vmem:[%s13070_s2 + $0x5c4] ss:$16 sps:$4 sm:$0xff]  }
 0x265   : > { %v11726_v15 = vpop.f32.mrb[9].mxu0  ;;  %v11728_v16 = vpop.f32.mrb[9].mxu1 }
 0x266   : > { %v3656_v17 = vpop.f32.mrb[10].mxu0  ;;  %7061 = vmatpush1.bf16.msra.mxu0 %v9065_v5  ;;  %v3738_v19 = vpop.f32.mrb[10].mxu1  ;;  %v9140_v5 = vld [vmem:[%s13070_s2 + $0x428] ss:$16 sps:$4 sm:$0xff]  }
 0x267   : > { %7389 = vmatpush1.bf16.msra.mxu1 %v9068_v6  ;;  %v3657_v20 = vpop.f32.mrb[11].mxu0  ;;  %7062 = vmatprep.subr.bf16.mxu0 %v9073_v7  ;;  %v3739_v25 = vpop.f32.mrb[11].mxu1  ;;  %v9145_v6 = vld [vmem:[%s13070_s2 + $0x444] ss:$16 sps:$4 sm:$0xff]   ;;  %v9148_v7 = vld [vmem:[%s13070_s2 + $0x44c] ss:$16 sps:$4 sm:$0xff]  }
 0x268   : > { %7390 = vmatprep.subr.bf16.mxu1 %v9076_v11  ;;  %v9143_v11 = vld [vmem:[%s13070_s2 + $0x440] ss:$16 sps:$4 sm:$0xff]   ;;  %v9146_v17 = vld [vmem:[%s13070_s2 + $0x448] ss:$16 sps:$4 sm:$0xff]   ;;  %v9154_v19 = vld [vmem:[%s13070_s2 + $0x46c] ss:$16 sps:$4 sm:$0xff]  }
 0x269   : > { %v9149_v20 = vld [vmem:[%s13070_s2 + $0x460] ss:$16 sps:$4 sm:$0xff]   ;;  %v9160_v25 = vld [vmem:[%s13070_s2 + $0x48c] ss:$16 sps:$4 sm:$0xff]  }
 0x26a   : > { %7063 = vmatpush1.bf16.msra.mxu0 %v9071_v18  ;;  %v9151_v18 = vld [vmem:[%s13070_s2 + $0x464] ss:$16 sps:$4 sm:$0xff]  }
 0x26b   : > { %7391 = vmatpush1.bf16.msra.mxu1 %v9074_v21  ;;  %7064 = vmatprep.subr.bf16.mxu0 %v9079_v22  ;;  %v9152_v21 = vld [vmem:[%s13070_s2 + $0x468] ss:$16 sps:$4 sm:$0xff]   ;;  %v9157_v22 = vld [vmem:[%s13070_s2 + $0x484] ss:$16 sps:$4 sm:$0xff]  }
 0x26c   : > { %7392 = vmatprep.subr.bf16.mxu1 %v9082_v26  ;;  %v9155_v26 = vld [vmem:[%s13070_s2 + $0x480] ss:$16 sps:$4 sm:$0xff]  }
 0x26e   : > { %7065 = vmatpush1.bf16.msra.mxu0 %v9077_v27  ;;  %v9158_v27 = vld [vmem:[%s13070_s2 + $0x488] ss:$16 sps:$4 sm:$0xff]  }
 0x26f   : > { %7393 = vmatpush1.bf16.msra.mxu1 %v9080_v28  ;;  %7066 = vmatprep.subr.bf16.mxu0 %v9085_v29  ;;  %v9163_v28 = vld [vmem:[%s13070_s2 + $0x4a4] ss:$16 sps:$4 sm:$0xff]   ;;  %v9166_v29 = vld [vmem:[%s13070_s2 + $0x4ac] ss:$16 sps:$4 sm:$0xff]  }
 0x270   : > { %7394 = vmatprep.subr.bf16.mxu1 %v9088_v30  ;;  %v9161_v30 = vld [vmem:[%s13070_s2 + $0x4a0] ss:$16 sps:$4 sm:$0xff]  }
 0x272   : > { %7067 = vmatpush1.bf16.msra.mxu0 %v9083_v57  ;;  %v9164_v57 = vld [vmem:[%s13070_s2 + $0x4a8] ss:$16 sps:$4 sm:$0xff]  }
 0x273   : > { %7395 = vmatpush1.bf16.msra.mxu1 %v9086_v31  ;;  %7068 = vmatprep.subr.bf16.mxu0 %v9091_v33  ;;  %v9169_v31 = vld [vmem:[%s13070_s2 + $0x4c4] ss:$16 sps:$4 sm:$0xff]   ;;  %v9172_v33 = vld [vmem:[%s13070_s2 + $0x4cc] ss:$16 sps:$4 sm:$0xff]  }
 0x274   : > { %7396 = vmatprep.subr.bf16.mxu1 %v9094_v34  ;;  %v9167_v34 = vld [vmem:[%s13070_s2 + $0x4c0] ss:$16 sps:$4 sm:$0xff]  }
 0x276   : > { %7069 = vmatpush1.bf16.msra.mxu0 %v9089_v35  ;;  %v9170_v35 = vld [vmem:[%s13070_s2 + $0x4c8] ss:$16 sps:$4 sm:$0xff]  }
 0x277   : > { %7397 = vmatpush1.bf16.msra.mxu1 %v9092_v38  ;;  %7070 = vmatprep.subr.bf16.mxu0 %v9097_v12  ;;  %v9175_v38 = vld [vmem:[%s13070_s2 + $0x4e4] ss:$16 sps:$4 sm:$0xff]   ;;  %v9178_v12 = vld [vmem:[%s13070_s2 + $0x4ec] ss:$16 sps:$4 sm:$0xff]  }
 0x278   : > { %7398 = vmatprep.subr.bf16.mxu1 %v9100_v39  ;;  %v9173_v39 = vld [vmem:[%s13070_s2 + $0x4e0] ss:$16 sps:$4 sm:$0xff]  }
 0x27a   : > { %7071 = vmatpush1.bf16.msra.mxu0 %v9095_v41  ;;  %v9176_v41 = vld [vmem:[%s13070_s2 + $0x4e8] ss:$16 sps:$4 sm:$0xff]  }
 0x27b   : > { %7399 = vmatpush1.bf16.msra.mxu1 %v9098_v42  ;;  %7072 = vmatprep.subr.bf16.mxu0 %v9103_v43  ;;  %v9181_v42 = vld [vmem:[%s13070_s2 + $0x504] ss:$16 sps:$4 sm:$0xff]   ;;  %v9184_v43 = vld [vmem:[%s13070_s2 + $0x50c] ss:$16 sps:$4 sm:$0xff]  }
 0x27c   : > { %7400 = vmatprep.subr.bf16.mxu1 %v9106_v37  ;;  %v9179_v37 = vld [vmem:[%s13070_s2 + $0x500] ss:$16 sps:$4 sm:$0xff]  }
 0x27e   : > { %7073 = vmatpush1.bf16.msra.mxu0 %v9101_v44  ;;  %v9182_v44 = vld [vmem:[%s13070_s2 + $0x508] ss:$16 sps:$4 sm:$0xff]  }
 0x27f   : > { %7401 = vmatpush1.bf16.msra.mxu1 %v9104_v45  ;;  %7074 = vmatprep.subr.bf16.mxu0 %v9109_v46  ;;  %v9187_v45 = vld [vmem:[%s13070_s2 + $0x524] ss:$16 sps:$4 sm:$0xff]   ;;  %v9190_v46 = vld [vmem:[%s13070_s2 + $0x52c] ss:$16 sps:$4 sm:$0xff]  }
 0x280   : > { %7402 = vmatprep.subr.bf16.mxu1 %v9112_v23  ;;  %v9185_v23 = vld [vmem:[%s13070_s2 + $0x520] ss:$16 sps:$4 sm:$0xff]  }
 0x282   : > { %7075 = vmatpush1.bf16.msra.mxu0 %v9107_v24  ;;  %v9188_v24 = vld [vmem:[%s13070_s2 + $0x528] ss:$16 sps:$4 sm:$0xff]  }
 0x283   : > { %7403 = vmatpush1.bf16.msra.mxu1 %v9110_v32  ;;  %7076 = vmatprep.subr.bf16.mxu0 %v9115_v47  ;;  %v9193_v32 = vld [vmem:[%s13070_s2 + $0x544] ss:$16 sps:$4 sm:$0xff]   ;;  %v9196_v47 = vld [vmem:[%s13070_s2 + $0x54c] ss:$16 sps:$4 sm:$0xff]  }
 0x284   : > { %7404 = vmatprep.subr.bf16.mxu1 %v9118_v48  ;;  %v9191_v48 = vld [vmem:[%s13070_s2 + $0x540] ss:$16 sps:$4 sm:$0xff]  }
 0x286   : > { %7077 = vmatpush1.bf16.msra.mxu0 %v9113_v49  ;;  %v9194_v49 = vld [vmem:[%s13070_s2 + $0x548] ss:$16 sps:$4 sm:$0xff]  }
 0x287   : > { %7405 = vmatpush1.bf16.msra.mxu1 %v9116_v50  ;;  %7078 = vmatprep.subr.bf16.mxu0 %v9121_v40  ;;  %v9199_v50 = vld [vmem:[%s13070_s2 + $0x564] ss:$16 sps:$4 sm:$0xff]   ;;  %v9202_v40 = vld [vmem:[%s13070_s2 + $0x56c] ss:$16 sps:$4 sm:$0xff]  }
 0x288   : > { %7406 = vmatprep.subr.bf16.mxu1 %v9124_v51  ;;  %v9197_v51 = vld [vmem:[%s13070_s2 + $0x560] ss:$16 sps:$4 sm:$0xff]  }
 0x28a   : > { %7079 = vmatpush1.bf16.msra.mxu0 %v9119_v52  ;;  %v9200_v52 = vld [vmem:[%s13070_s2 + $0x568] ss:$16 sps:$4 sm:$0xff]  }
 0x28b   : > { %7407 = vmatpush1.bf16.msra.mxu1 %v9122_v53  ;;  %7080 = vmatprep.subr.bf16.mxu0 %v9127_v54  ;;  %v9205_v53 = vld [vmem:[%s13070_s2 + $0x584] ss:$16 sps:$4 sm:$0xff]   ;;  %v9208_v54 = vld [vmem:[%s13070_s2 + $0x58c] ss:$16 sps:$4 sm:$0xff]  }
 0x28c   : > { %7408 = vmatprep.subr.bf16.mxu1 %v9130_v55  ;;  %v9203_v55 = vld [vmem:[%s13070_s2 + $0x580] ss:$16 sps:$4 sm:$0xff]  }
 0x28e   : > { %7081 = vmatpush1.bf16.msra.mxu0 %v9125_v56  ;;  %v9206_v56 = vld [vmem:[%s13070_s2 + $0x588] ss:$16 sps:$4 sm:$0xff]  }
 0x28f   : > { %7409 = vmatpush1.bf16.msra.mxu1 %v9128_v59  ;;  %7091 = vmatprep.subr.bf16.mxu0 %v9133_v60  ;;  %v9214_v59 = vld [vmem:[%s13070_s2 + $0x5ac] ss:$16 sps:$4 sm:$0xff]   ;;  %v9209_v60 = vld [vmem:[%s13070_s2 + $0x5a0] ss:$16 sps:$4 sm:$0xff]  }
 0x290   : > { %7419 = vmatprep.subr.bf16.mxu1 %v9136_v61  ;;  %v9212_v61 = vld [vmem:[%s13070_s2 + $0x5a8] ss:$16 sps:$4 sm:$0xff]  }
 0x291   : > { %7083 = vmatmul.mubr.bf16.vlgmr.msra.gmra.mrb[16].mxu0 %v3923_v63 }
 0x292   : > { %7411 = vmatmul.mubr.bf16.vlgmr.msra.gmra.mrb[16].mxu1 %v3923_v63  ;;  %7092 = vmatpush1.bf16.msra.mxu0 %v9131_v36  ;;  %v9220_v36 = vld [vmem:[%s13070_s2 + $0x5cc] ss:$16 sps:$4 sm:$0xff]   ;;  %v9215_v63 = vld [vmem:[%s13070_s2 + $0x5c0] ss:$16 sps:$4 sm:$0xff]  }
 0x293   : > { %7123 = vmatprep.mubr.bf16.mxu0 %v3926_v2  ;;  %7420 = vmatpush1.bf16.msra.mxu1 %v9134_v0  ;;  %v9218_v0 = vld [vmem:[%s13070_s2 + $0x5c8] ss:$16 sps:$4 sm:$0xff]  }
 0x294   : > { %7451 = vmatprep.mubr.bf16.mxu1 %v3926_v2  ;;  %7093 = vmatprep.subr.bf16.mxu0 %v9139_v1  ;;  %v9223_v1 = vld [vmem:[%s13070_s2 + $0x5e4] ss:$16 sps:$4 sm:$0xff]   ;;  %v9226_v2 = vld [vmem:[%s13070_s2 + $0x5ec] ss:$16 sps:$4 sm:$0xff]  }
 0x295   : > { %7421 = vmatprep.subr.bf16.mxu1 %v9142_v9  ;;  %v9221_v9 = vld [vmem:[%s13070_s2 + $0x5e0] ss:$16 sps:$4 sm:$0xff]  }
 0x296   : > { %7094 = vmatpush1.bf16.msra.mxu0 %v9137_v3  ;;  %v3909_v3 = vmax.f32 %v11331_v4, 0.0  ;;  %v9227_v4 = vld [vmem:[%s13070_s2 + $0x600] ss:$16 sps:$4 sm:$0xff]  }
 0x297   : > { %7422 = vmatpush1.bf16.msra.mxu1 %v9140_v5  ;;  %7095 = vmatprep.subr.bf16.mxu0 %v9145_v6  ;;  %v9224_v5 = vld [vmem:[%s13070_s2 + $0x5e8] ss:$16 sps:$4 sm:$0xff]   ;;  %v9229_v6 = vld [vmem:[%s13070_s2 + $0x604] ss:$16 sps:$4 sm:$0xff]  }
 0x298   : > { %7423 = vmatprep.subr.bf16.mxu1 %v9148_v7  ;;  %v9232_v7 = vld [vmem:[%s13070_s2 + $0x60c] ss:$16 sps:$4 sm:$0xff]  }
 0x29a   : > { %7096 = vmatpush1.bf16.msra.mxu0 %v9143_v11  ;;  %v3912_v11 = vmax.f32 %v11349_v13, 0.0  ;;  %v9238_v13 = vld [vmem:[%s13070_s2 + $0x62c] ss:$16 sps:$4 sm:$0xff]  }
 0x29b   : > { %7424 = vmatpush1.bf16.msra.mxu1 %v9146_v17  ;;  %7097 = vmatprep.subr.bf16.mxu0 %v9151_v18  ;;  %v3925_v17 = vpack.c.bf16 %v3909_v3, %v3909_v3  ;;  %v9230_v18 = vld [vmem:[%s13070_s2 + $0x608] ss:$16 sps:$4 sm:$0xff]   ;;  %v9293_v3 = vld [vmem:[%s13070_s2 + $0x760] ss:$16 sps:$4 sm:$0xff]  }
 0x29c   : > { %7425 = vmatprep.subr.bf16.mxu1 %v9154_v19  ;;  %v9235_v19 = vld [vmem:[%s13070_s2 + $0x624] ss:$16 sps:$4 sm:$0xff]  }
 0x29e   : > { %7098 = vmatpush1.bf16.msra.mxu0 %v9149_v20  ;;  %v3928_v20 = vpack.c.bf16 %v3912_v11, %v3912_v11  ;;  %v9299_v11 = vld [vmem:[%s13070_s2 + $0x780] ss:$16 sps:$4 sm:$0xff]  }
 0x29f   : > { %7426 = vmatpush1.bf16.msra.mxu1 %v9152_v21  ;;  %7099 = vmatprep.subr.bf16.mxu0 %v9157_v22  ;;  %v9233_v21 = vld [vmem:[%s13070_s2 + $0x620] ss:$16 sps:$4 sm:$0xff]   ;;  %v9236_v22 = vld [vmem:[%s13070_s2 + $0x628] ss:$16 sps:$4 sm:$0xff]  }
 0x2a0   : > { %7427 = vmatprep.subr.bf16.mxu1 %v9160_v25  ;;  %v9241_v25 = vld [vmem:[%s13070_s2 + $0x644] ss:$16 sps:$4 sm:$0xff]  }
 0x2a2   : > { %7100 = vmatpush1.bf16.msra.mxu0 %v9155_v26  ;;  %v9244_v26 = vld [vmem:[%s13070_s2 + $0x64c] ss:$16 sps:$4 sm:$0xff]  }
 0x2a3   : > { %7428 = vmatpush1.bf16.msra.mxu1 %v9158_v27  ;;  %7101 = vmatprep.subr.bf16.mxu0 %v9163_v28  ;;  %v9239_v27 = vld [vmem:[%s13070_s2 + $0x640] ss:$16 sps:$4 sm:$0xff]   ;;  %v9242_v28 = vld [vmem:[%s13070_s2 + $0x648] ss:$16 sps:$4 sm:$0xff]  }
 0x2a4   : > { %7429 = vmatprep.subr.bf16.mxu1 %v9166_v29  ;;  %v9247_v29 = vld [vmem:[%s13070_s2 + $0x664] ss:$16 sps:$4 sm:$0xff]  }
 0x2a6   : > { %7102 = vmatpush1.bf16.msra.mxu0 %v9161_v30  ;;  %v9250_v30 = vld [vmem:[%s13070_s2 + $0x66c] ss:$16 sps:$4 sm:$0xff]  }
 0x2a7   : > { %7430 = vmatpush1.bf16.msra.mxu1 %v9164_v57  ;;  %7103 = vmatprep.subr.bf16.mxu0 %v9169_v31  ;;  %v9245_v57 = vld [vmem:[%s13070_s2 + $0x660] ss:$16 sps:$4 sm:$0xff]   ;;  %v9248_v31 = vld [vmem:[%s13070_s2 + $0x668] ss:$16 sps:$4 sm:$0xff]  }
 0x2a8   : > { %7431 = vmatprep.subr.bf16.mxu1 %v9172_v33  ;;  %v9253_v33 = vld [vmem:[%s13070_s2 + $0x684] ss:$16 sps:$4 sm:$0xff]  }
 0x2aa   : > { %7104 = vmatpush1.bf16.msra.mxu0 %v9167_v34  ;;  %v9256_v34 = vld [vmem:[%s13070_s2 + $0x68c] ss:$16 sps:$4 sm:$0xff]  }
 0x2ab   : > { %7432 = vmatpush1.bf16.msra.mxu1 %v9170_v35  ;;  %7105 = vmatprep.subr.bf16.mxu0 %v9175_v38  ;;  %v9251_v35 = vld [vmem:[%s13070_s2 + $0x680] ss:$16 sps:$4 sm:$0xff]   ;;  %v9254_v38 = vld [vmem:[%s13070_s2 + $0x688] ss:$16 sps:$4 sm:$0xff]  }
 0x2ac   : > { %7433 = vmatprep.subr.bf16.mxu1 %v9178_v12  ;;  %v9259_v12 = vld [vmem:[%s13070_s2 + $0x6a4] ss:$16 sps:$4 sm:$0xff]  }
 0x2ae   : > { %7106 = vmatpush1.bf16.msra.mxu0 %v9173_v39  ;;  %v9262_v39 = vld [vmem:[%s13070_s2 + $0x6ac] ss:$16 sps:$4 sm:$0xff]  }
 0x2af   : > { %7434 = vmatpush1.bf16.msra.mxu1 %v9176_v41  ;;  %7107 = vmatprep.subr.bf16.mxu0 %v9181_v42  ;;  %v9257_v41 = vld [vmem:[%s13070_s2 + $0x6a0] ss:$16 sps:$4 sm:$0xff]   ;;  %v9260_v42 = vld [vmem:[%s13070_s2 + $0x6a8] ss:$16 sps:$4 sm:$0xff]  }
 0x2b0   : > { %7435 = vmatprep.subr.bf16.mxu1 %v9184_v43  ;;  %v9265_v43 = vld [vmem:[%s13070_s2 + $0x6c4] ss:$16 sps:$4 sm:$0xff]  }
 0x2b2   : > { %7108 = vmatpush1.bf16.msra.mxu0 %v9179_v37 }
 0x2b3   : > { %7436 = vmatpush1.bf16.msra.mxu1 %v9182_v44  ;;  %7109 = vmatprep.subr.bf16.mxu0 %v9187_v45  ;;  %v9268_v44 = vld [vmem:[%s13070_s2 + $0x6cc] ss:$16 sps:$4 sm:$0xff]  }
 0x2b4   : > { %7437 = vmatprep.subr.bf16.mxu1 %v9190_v46 }
 0x2b6   : > { %7110 = vmatpush1.bf16.msra.mxu0 %v9185_v23 }
 0x2b7   : > { %7438 = vmatpush1.bf16.msra.mxu1 %v9188_v24  ;;  %7111 = vmatprep.subr.bf16.mxu0 %v9193_v32  ;;  %v9263_v32 = vld [vmem:[%s13070_s2 + $0x6c0] ss:$16 sps:$4 sm:$0xff]  }
 0x2b8   : > { %7439 = vmatprep.subr.bf16.mxu1 %v9196_v47 }
 0x2ba   : > { %7112 = vmatpush1.bf16.msra.mxu0 %v9191_v48 }
 0x2bb   : > { %7440 = vmatpush1.bf16.msra.mxu1 %v9194_v49  ;;  %7113 = vmatprep.subr.bf16.mxu0 %v9199_v50  ;;  %v9266_v49 = vld [vmem:[%s13070_s2 + $0x6c8] ss:$16 sps:$4 sm:$0xff]   ;;  %v9271_v50 = vld [vmem:[%s13070_s2 + $0x6e4] ss:$16 sps:$4 sm:$0xff]  }
 0x2bc   : > { %7441 = vmatprep.subr.bf16.mxu1 %v9202_v40 }
 0x2be   : > { %7114 = vmatpush1.bf16.msra.mxu0 %v9197_v51  ;;  %v9274_v51 = vld [vmem:[%s13070_s2 + $0x6ec] ss:$16 sps:$4 sm:$0xff]  }
 0x2bf   : > { %7442 = vmatpush1.bf16.msra.mxu1 %v9200_v52  ;;  %7115 = vmatprep.subr.bf16.mxu0 %v9205_v53  ;;  %v9269_v52 = vld [vmem:[%s13070_s2 + $0x6e0] ss:$16 sps:$4 sm:$0xff]   ;;  %v9272_v53 = vld [vmem:[%s13070_s2 + $0x6e8] ss:$16 sps:$4 sm:$0xff]  }
 0x2c0   : > { %7443 = vmatprep.subr.bf16.mxu1 %v9208_v54  ;;  %v9277_v54 = vld [vmem:[%s13070_s2 + $0x704] ss:$16 sps:$4 sm:$0xff]  }
 0x2c2   : > { %7116 = vmatpush1.bf16.msra.mxu0 %v9203_v55  ;;  %v9280_v55 = vld [vmem:[%s13070_s2 + $0x70c] ss:$16 sps:$4 sm:$0xff]  }
 0x2c3   : > { %7444 = vmatpush1.bf16.msra.mxu1 %v9206_v56  ;;  %7117 = vmatprep.subr.bf16.mxu0 %v9211_v58  ;;  %v9275_v56 = vld [vmem:[%s13070_s2 + $0x700] ss:$16 sps:$4 sm:$0xff]   ;;  %v9278_v58 = vld [vmem:[%s13070_s2 + $0x708] ss:$16 sps:$4 sm:$0xff]  }
 0x2c4   : > { %7445 = vmatprep.subr.bf16.mxu1 %v9214_v59  ;;  %v9283_v59 = vld [vmem:[%s13070_s2 + $0x724] ss:$16 sps:$4 sm:$0xff]  }
 0x2c6   : > { %7118 = vmatpush1.bf16.msra.mxu0 %v9209_v60  ;;  %v9286_v60 = vld [vmem:[%s13070_s2 + $0x72c] ss:$16 sps:$4 sm:$0xff]  }
 0x2c7   : > { %7446 = vmatpush1.bf16.msra.mxu1 %v9212_v61  ;;  %7119 = vmatprep.subr.bf16.mxu0 %v9217_v62  ;;  %v9281_v61 = vld [vmem:[%s13070_s2 + $0x720] ss:$16 sps:$4 sm:$0xff]   ;;  %v9284_v62 = vld [vmem:[%s13070_s2 + $0x728] ss:$16 sps:$4 sm:$0xff]  }
 0x2c8   : > { %7447 = vmatprep.subr.bf16.mxu1 %v9220_v36  ;;  %v9289_v36 = vld [vmem:[%s13070_s2 + $0x744] ss:$16 sps:$4 sm:$0xff]  }
 0x2ca   : > { %7120 = vmatpush1.bf16.msra.mxu0 %v9215_v63  ;;  %v9292_v63 = vld [vmem:[%s13070_s2 + $0x74c] ss:$16 sps:$4 sm:$0xff]  }
 0x2cb   : > { %7448 = vmatpush1.bf16.msra.mxu1 %v9218_v0  ;;  %7121 = vmatprep.subr.bf16.mxu0 %v9223_v1  ;;  %v9287_v0 = vld [vmem:[%s13070_s2 + $0x740] ss:$16 sps:$4 sm:$0xff]   ;;  %v9290_v1 = vld [vmem:[%s13070_s2 + $0x748] ss:$16 sps:$4 sm:$0xff]  }
 0x2cc   : > { %7449 = vmatprep.subr.bf16.mxu1 %v9226_v2  ;;  %v9295_v2 = vld [vmem:[%s13070_s2 + $0x764] ss:$16 sps:$4 sm:$0xff]  }
 0x2ce   : > { %7122 = vmatpush1.bf16.msra.mxu0 %v9221_v9  ;;  %v9298_v9 = vld [vmem:[%s13070_s2 + $0x76c] ss:$16 sps:$4 sm:$0xff]  }
 0x2cf   : > { %7450 = vmatpush1.bf16.msra.mxu1 %v9224_v5  ;;  %7132 = vmatprep.subr.bf16.mxu0 %v9229_v6  ;;  %v9296_v5 = vld [vmem:[%s13070_s2 + $0x768] ss:$16 sps:$4 sm:$0xff]   ;;  %v9301_v6 = vld [vmem:[%s13070_s2 + $0x784] ss:$16 sps:$4 sm:$0xff]  }
 0x2d0   : > { %7460 = vmatprep.subr.bf16.mxu1 %v9232_v7  ;;  %v9304_v7 = vld [vmem:[%s13070_s2 + $0x78c] ss:$16 sps:$4 sm:$0xff]  }
 0x2d1   : > { %7124 = vmatmul.mubr.bf16.vlgmr.msra.gmra.mrb[16].mxu0 %v3925_v17 }
 0x2d2   : > { %7452 = vmatmul.mubr.bf16.vlgmr.msra.gmra.mrb[16].mxu1 %v3925_v17  ;;  %7133 = vmatpush1.bf16.msra.mxu0 %v9227_v4  ;;  %v9302_v4 = vld [vmem:[%s13070_s2 + $0x788] ss:$16 sps:$4 sm:$0xff]   ;;  %v9307_v17 = vld [vmem:[%s13070_s2 + $0x7a4] ss:$16 sps:$4 sm:$0xff]  }
 0x2d3   : > { %7164 = vmatprep.mubr.bf16.mxu0 %v3928_v20  ;;  %7461 = vmatpush1.bf16.msra.mxu1 %v9230_v18  ;;  %v9310_v18 = vld [vmem:[%s13070_s2 + $0x7ac] ss:$16 sps:$4 sm:$0xff]  }
 0x2d4   : > { %7492 = vmatprep.mubr.bf16.mxu1 %v3928_v20  ;;  %7134 = vmatprep.subr.bf16.mxu0 %v9235_v19  ;;  %v9305_v19 = vld [vmem:[%s13070_s2 + $0x7a0] ss:$16 sps:$4 sm:$0xff]   ;;  %v9308_v20 = vld [vmem:[%s13070_s2 + $0x7a8] ss:$16 sps:$4 sm:$0xff]  }
 0x2d5   : > { %7462 = vmatprep.subr.bf16.mxu1 %v9238_v13  ;;  %v9313_v13 = vld [vmem:[%s13070_s2 + $0x7c4] ss:$16 sps:$4 sm:$0xff]  }
 0x2d6   : > { %7135 = vmatpush1.bf16.msra.mxu0 %v9233_v21  ;;  %v9316_v21 = vld [vmem:[%s13070_s2 + $0x7cc] ss:$16 sps:$4 sm:$0xff]  }
 0x2d7   : > { %7463 = vmatpush1.bf16.msra.mxu1 %v9236_v22  ;;  %7136 = vmatprep.subr.bf16.mxu0 %v9241_v25  ;;  %v9311_v22 = vld [vmem:[%s13070_s2 + $0x7c0] ss:$16 sps:$4 sm:$0xff]   ;;  %v9314_v25 = vld [vmem:[%s13070_s2 + $0x7c8] ss:$16 sps:$4 sm:$0xff]  }
 0x2d8   : > { %7464 = vmatprep.subr.bf16.mxu1 %v9244_v26  ;;  %v9319_v26 = vld [vmem:[%s13070_s2 + $0x7e4] ss:$16 sps:$4 sm:$0xff]  }
 0x2da   : > { %7137 = vmatpush1.bf16.msra.mxu0 %v9239_v27  ;;  %v9322_v27 = vld [vmem:[%s13070_s2 + $0x7ec] ss:$16 sps:$4 sm:$0xff]  }
 0x2db   : > { %7465 = vmatpush1.bf16.msra.mxu1 %v9242_v28  ;;  %7138 = vmatprep.subr.bf16.mxu0 %v9247_v29  ;;  %v9317_v28 = vld [vmem:[%s13070_s2 + $0x7e0] ss:$16 sps:$4 sm:$0xff]   ;;  %v3911_v29 = vmax.f32 %v11339_v8, 0.0 }
 0x2dc   : > { %7466 = vmatprep.subr.bf16.mxu1 %v9250_v30  ;;  %v9320_v30 = vld [vmem:[%s13070_s2 + $0x7e8] ss:$16 sps:$4 sm:$0xff]   ;;  %v9323_v8 = vld [vmem:[%s13070_s2 + $0x800] ss:$16 sps:$4 sm:$0xff]  }
 0x2de   : > { %7139 = vmatpush1.bf16.msra.mxu0 %v9245_v57  ;;  %v9325_v57 = vld [vmem:[%s13070_s2 + $0x804] ss:$16 sps:$4 sm:$0xff]  }
 0x2df   : > { %7467 = vmatpush1.bf16.msra.mxu1 %v9248_v31  ;;  %7140 = vmatprep.subr.bf16.mxu0 %v9253_v33  ;;  %v9328_v31 = vld [vmem:[%s13070_s2 + $0x80c] ss:$16 sps:$4 sm:$0xff]   ;;  %v3914_v33 = vmax.f32 %v11726_v15, 0.0 }
 0x2e0   : > { %7468 = vmatprep.subr.bf16.mxu1 %v9256_v34  ;;  %v3927_v34 = vpack.c.bf16 %v3911_v29, %v3911_v29  ;;  %v9334_v15 = vld [vmem:[%s13070_s2 + $0x82c] ss:$16 sps:$4 sm:$0xff]   ;;  %v9403_v29 = vld [vmem:[%s13070_s2 + $0x9a4] ss:$16 sps:$4 sm:$0xff]  }
 0x2e2   : > { %7141 = vmatpush1.bf16.msra.mxu0 %v9251_v35  ;;  %v9326_v35 = vld [vmem:[%s13070_s2 + $0x808] ss:$16 sps:$4 sm:$0xff]  }
 0x2e3   : > { %7469 = vmatpush1.bf16.msra.mxu1 %v9254_v38  ;;  %7142 = vmatprep.subr.bf16.mxu0 %v9259_v12  ;;  %v9331_v38 = vld [vmem:[%s13070_s2 + $0x824] ss:$16 sps:$4 sm:$0xff]   ;;  %v3930_v12 = vpack.c.bf16 %v3914_v33, %v3914_v33 }
 0x2e4   : > { %v12115_v37 = vpop.f32.mrb[12].mxu0  ;;  %7470 = vmatprep.subr.bf16.mxu1 %v9262_v39  ;;  %v12120_v45 = vpop.f32.mrb[12].mxu1  ;;  %v9329_v39 = vld [vmem:[%s13070_s2 + $0x820] ss:$16 sps:$4 sm:$0xff]   ;;  %v9409_v33 = vld [vmem:[%s13070_s2 + $0x9c4] ss:$16 sps:$4 sm:$0xff]  }
 0x2e5   : > { %v12122_v46 = vpop.f32.mrb[13].mxu0  ;;  %v12124_v23 = vpop.f32.mrb[13].mxu1 }
 0x2e6   : > { %v3820_v24 = vpop.f32.mrb[14].mxu0  ;;  %7143 = vmatpush1.bf16.msra.mxu0 %v9257_v41  ;;  %v3902_v47 = vpop.f32.mrb[14].mxu1  ;;  %v9332_v41 = vld [vmem:[%s13070_s2 + $0x828] ss:$16 sps:$4 sm:$0xff]  }
 0x2e7   : > { %7471 = vmatpush1.bf16.msra.mxu1 %v9260_v42  ;;  %v3821_v48 = vpop.f32.mrb[15].mxu0  ;;  %7144 = vmatprep.subr.bf16.mxu0 %v9265_v43  ;;  %v3903_v40 = vpop.f32.mrb[15].mxu1  ;;  %v9337_v42 = vld [vmem:[%s13070_s2 + $0x844] ss:$16 sps:$4 sm:$0xff]   ;;  %v9340_v43 = vld [vmem:[%s13070_s2 + $0x84c] ss:$16 sps:$4 sm:$0xff]  }
 0x2e8   : > { %7472 = vmatprep.subr.bf16.mxu1 %v9268_v44  ;;  %v9335_v44 = vld [vmem:[%s13070_s2 + $0x840] ss:$16 sps:$4 sm:$0xff]   ;;  %v9338_v24 = vld [vmem:[%s13070_s2 + $0x848] ss:$16 sps:$4 sm:$0xff]   ;;  %v9346_v47 = vld [vmem:[%s13070_s2 + $0x86c] ss:$16 sps:$4 sm:$0xff]  }
 0x2e9   : > { %v9341_v48 = vld [vmem:[%s13070_s2 + $0x860] ss:$16 sps:$4 sm:$0xff]   ;;  %v9352_v40 = vld [vmem:[%s13070_s2 + $0x88c] ss:$16 sps:$4 sm:$0xff]  }
 0x2ea   : > { %7145 = vmatpush1.bf16.msra.mxu0 %v9263_v32  ;;  %v9343_v32 = vld [vmem:[%s13070_s2 + $0x864] ss:$16 sps:$4 sm:$0xff]  }
 0x2eb   : > { %7473 = vmatpush1.bf16.msra.mxu1 %v9266_v49  ;;  %7146 = vmatprep.subr.bf16.mxu0 %v9271_v50  ;;  %v9344_v49 = vld [vmem:[%s13070_s2 + $0x868] ss:$16 sps:$4 sm:$0xff]   ;;  %v9349_v50 = vld [vmem:[%s13070_s2 + $0x884] ss:$16 sps:$4 sm:$0xff]  }
 0x2ec   : > { %7474 = vmatprep.subr.bf16.mxu1 %v9274_v51  ;;  %v9347_v51 = vld [vmem:[%s13070_s2 + $0x880] ss:$16 sps:$4 sm:$0xff]  }
 0x2ee   : > { %7147 = vmatpush1.bf16.msra.mxu0 %v9269_v52  ;;  %v9350_v52 = vld [vmem:[%s13070_s2 + $0x888] ss:$16 sps:$4 sm:$0xff]  }
 0x2ef   : > { %7475 = vmatpush1.bf16.msra.mxu1 %v9272_v53  ;;  %7148 = vmatprep.subr.bf16.mxu0 %v9277_v54  ;;  %v9355_v53 = vld [vmem:[%s13070_s2 + $0x8a4] ss:$16 sps:$4 sm:$0xff]   ;;  %v9358_v54 = vld [vmem:[%s13070_s2 + $0x8ac] ss:$16 sps:$4 sm:$0xff]  }
 0x2f0   : > { %7476 = vmatprep.subr.bf16.mxu1 %v9280_v55  ;;  %v9353_v55 = vld [vmem:[%s13070_s2 + $0x8a0] ss:$16 sps:$4 sm:$0xff]  }
 0x2f2   : > { %7149 = vmatpush1.bf16.msra.mxu0 %v9275_v56  ;;  %v9356_v56 = vld [vmem:[%s13070_s2 + $0x8a8] ss:$16 sps:$4 sm:$0xff]  }
 0x2f3   : > { %7477 = vmatpush1.bf16.msra.mxu1 %v9278_v58  ;;  %7150 = vmatprep.subr.bf16.mxu0 %v9283_v59  ;;  %v9361_v58 = vld [vmem:[%s13070_s2 + $0x8c4] ss:$16 sps:$4 sm:$0xff]   ;;  %v9364_v59 = vld [vmem:[%s13070_s2 + $0x8cc] ss:$16 sps:$4 sm:$0xff]  }
 0x2f4   : > { %7478 = vmatprep.subr.bf16.mxu1 %v9286_v60  ;;  %v9359_v60 = vld [vmem:[%s13070_s2 + $0x8c0] ss:$16 sps:$4 sm:$0xff]  }
 0x2f6   : > { %7151 = vmatpush1.bf16.msra.mxu0 %v9281_v61  ;;  %v9362_v61 = vld [vmem:[%s13070_s2 + $0x8c8] ss:$16 sps:$4 sm:$0xff]  }
 0x2f7   : > { %7479 = vmatpush1.bf16.msra.mxu1 %v9284_v62  ;;  %7152 = vmatprep.subr.bf16.mxu0 %v9289_v36  ;;  %v9367_v62 = vld [vmem:[%s13070_s2 + $0x8e4] ss:$16 sps:$4 sm:$0xff]   ;;  %v9370_v36 = vld [vmem:[%s13070_s2 + $0x8ec] ss:$16 sps:$4 sm:$0xff]  }
 0x2f8   : > { %7480 = vmatprep.subr.bf16.mxu1 %v9292_v63  ;;  %v9365_v63 = vld [vmem:[%s13070_s2 + $0x8e0] ss:$16 sps:$4 sm:$0xff]  }
 0x2fa   : > { %7153 = vmatpush1.bf16.msra.mxu0 %v9287_v0  ;;  %v9368_v0 = vld [vmem:[%s13070_s2 + $0x8e8] ss:$16 sps:$4 sm:$0xff]  }
 0x2fb   : > { %7481 = vmatpush1.bf16.msra.mxu1 %v9290_v1  ;;  %7154 = vmatprep.subr.bf16.mxu0 %v9295_v2  ;;  %v9373_v1 = vld [vmem:[%s13070_s2 + $0x904] ss:$16 sps:$4 sm:$0xff]   ;;  %v9376_v2 = vld [vmem:[%s13070_s2 + $0x90c] ss:$16 sps:$4 sm:$0xff]  }
 0x2fc   : > { %7482 = vmatprep.subr.bf16.mxu1 %v9298_v9  ;;  %v9371_v9 = vld [vmem:[%s13070_s2 + $0x900] ss:$16 sps:$4 sm:$0xff]  }
 0x2fe   : > { %7155 = vmatpush1.bf16.msra.mxu0 %v9293_v3  ;;  %v9374_v3 = vld [vmem:[%s13070_s2 + $0x908] ss:$16 sps:$4 sm:$0xff]  }
 0x2ff   : > { %7483 = vmatpush1.bf16.msra.mxu1 %v9296_v5  ;;  %7156 = vmatprep.subr.bf16.mxu0 %v9301_v6  ;;  %v9379_v5 = vld [vmem:[%s13070_s2 + $0x924] ss:$16 sps:$4 sm:$0xff]   ;;  %v9382_v6 = vld [vmem:[%s13070_s2 + $0x92c] ss:$16 sps:$4 sm:$0xff]  }
 0x300   : > { %7484 = vmatprep.subr.bf16.mxu1 %v9304_v7  ;;  %v9377_v7 = vld [vmem:[%s13070_s2 + $0x920] ss:$16 sps:$4 sm:$0xff]  }
 0x302   : > { %7157 = vmatpush1.bf16.msra.mxu0 %v9299_v11  ;;  %v9380_v11 = vld [vmem:[%s13070_s2 + $0x928] ss:$16 sps:$4 sm:$0xff]  }
 0x303   : > { %7485 = vmatpush1.bf16.msra.mxu1 %v9302_v4  ;;  %7158 = vmatprep.subr.bf16.mxu0 %v9307_v17  ;;  %v9385_v4 = vld [vmem:[%s13070_s2 + $0x944] ss:$16 sps:$4 sm:$0xff]   ;;  %v9388_v17 = vld [vmem:[%s13070_s2 + $0x94c] ss:$16 sps:$4 sm:$0xff]  }
 0x304   : > { %7486 = vmatprep.subr.bf16.mxu1 %v9310_v18  ;;  %v9383_v18 = vld [vmem:[%s13070_s2 + $0x940] ss:$16 sps:$4 sm:$0xff]  }
 0x306   : > { %7159 = vmatpush1.bf16.msra.mxu0 %v9305_v19  ;;  %v9386_v19 = vld [vmem:[%s13070_s2 + $0x948] ss:$16 sps:$4 sm:$0xff]  }
 0x307   : > { %7487 = vmatpush1.bf16.msra.mxu1 %v9308_v20  ;;  %7160 = vmatprep.subr.bf16.mxu0 %v9313_v13  ;;  %v9391_v20 = vld [vmem:[%s13070_s2 + $0x964] ss:$16 sps:$4 sm:$0xff]   ;;  %v9394_v13 = vld [vmem:[%s13070_s2 + $0x96c] ss:$16 sps:$4 sm:$0xff]  }
 0x308   : > { %7488 = vmatprep.subr.bf16.mxu1 %v9316_v21  ;;  %v9389_v21 = vld [vmem:[%s13070_s2 + $0x960] ss:$16 sps:$4 sm:$0xff]  }
 0x30a   : > { %7161 = vmatpush1.bf16.msra.mxu0 %v9311_v22  ;;  %v9392_v22 = vld [vmem:[%s13070_s2 + $0x968] ss:$16 sps:$4 sm:$0xff]  }
 0x30b   : > { %7489 = vmatpush1.bf16.msra.mxu1 %v9314_v25  ;;  %7162 = vmatprep.subr.bf16.mxu0 %v9319_v26  ;;  %v9397_v25 = vld [vmem:[%s13070_s2 + $0x984] ss:$16 sps:$4 sm:$0xff]   ;;  %v9400_v26 = vld [vmem:[%s13070_s2 + $0x98c] ss:$16 sps:$4 sm:$0xff]  }
 0x30c   : > { %7490 = vmatprep.subr.bf16.mxu1 %v9322_v27  ;;  %v9395_v27 = vld [vmem:[%s13070_s2 + $0x980] ss:$16 sps:$4 sm:$0xff]  }
 0x30e   : > { %7163 = vmatpush1.bf16.msra.mxu0 %v9317_v28  ;;  %v9398_v28 = vld [vmem:[%s13070_s2 + $0x988] ss:$16 sps:$4 sm:$0xff]  }
 0x30f   : > { %7491 = vmatpush1.bf16.msra.mxu1 %v9320_v30  ;;  %7173 = vmatprep.subr.bf16.mxu0 %v9325_v57  ;;  %v9406_v30 = vld [vmem:[%s13070_s2 + $0x9ac] ss:$16 sps:$4 sm:$0xff]   ;;  %v9401_v57 = vld [vmem:[%s13070_s2 + $0x9a0] ss:$16 sps:$4 sm:$0xff]  }
 0x310   : > { %7501 = vmatprep.subr.bf16.mxu1 %v9328_v31  ;;  %v9404_v31 = vld [vmem:[%s13070_s2 + $0x9a8] ss:$16 sps:$4 sm:$0xff]  }
 0x311   : > { %7165 = vmatmul.mubr.bf16.vlgmr.msra.gmra.mrb[16].mxu0 %v3927_v34 }
 0x312   : > { %7493 = vmatmul.mubr.bf16.vlgmr.msra.gmra.mrb[16].mxu1 %v3927_v34  ;;  %7174 = vmatpush1.bf16.msra.mxu0 %v9323_v8  ;;  %v9412_v8 = vld [vmem:[%s13070_s2 + $0x9cc] ss:$16 sps:$4 sm:$0xff]   ;;  %v9407_v34 = vld [vmem:[%s13070_s2 + $0x9c0] ss:$16 sps:$4 sm:$0xff]  }
 0x313   : > { %7205 = vmatprep.mubr.bf16.mxu0 %v3930_v12  ;;  %7502 = vmatpush1.bf16.msra.mxu1 %v9326_v35  ;;  %v9410_v35 = vld [vmem:[%s13070_s2 + $0x9c8] ss:$16 sps:$4 sm:$0xff]  }
 0x314   : > { %7533 = vmatprep.mubr.bf16.mxu1 %v3930_v12  ;;  %7175 = vmatprep.subr.bf16.mxu0 %v9331_v38  ;;  %v9415_v38 = vld [vmem:[%s13070_s2 + $0x9e4] ss:$16 sps:$4 sm:$0xff]   ;;  %v9418_v12 = vld [vmem:[%s13070_s2 + $0x9ec] ss:$16 sps:$4 sm:$0xff]  }
 0x315   : > { %7503 = vmatprep.subr.bf16.mxu1 %v9334_v15  ;;  %v9413_v15 = vld [vmem:[%s13070_s2 + $0x9e0] ss:$16 sps:$4 sm:$0xff]  }
 0x316   : > { %7176 = vmatpush1.bf16.msra.mxu0 %v9329_v39  ;;  %v3913_v39 = vmax.f32 %v11719_v10, 0.0  ;;  %v9419_v10 = vld [vmem:[%s13070_s2 + $0xa00] ss:$16 sps:$4 sm:$0xff]  }
 0x317   : > { %7504 = vmatpush1.bf16.msra.mxu1 %v9332_v41  ;;  %7177 = vmatprep.subr.bf16.mxu0 %v9337_v42  ;;  %v9416_v41 = vld [vmem:[%s13070_s2 + $0x9e8] ss:$16 sps:$4 sm:$0xff]   ;;  %v9421_v42 = vld [vmem:[%s13070_s2 + $0xa04] ss:$16 sps:$4 sm:$0xff]  }
 0x318   : > { %7505 = vmatprep.subr.bf16.mxu1 %v9340_v43  ;;  %v9424_v43 = vld [vmem:[%s13070_s2 + $0xa0c] ss:$16 sps:$4 sm:$0xff]  }
 0x31a   : > { %7178 = vmatpush1.bf16.msra.mxu0 %v9335_v44  ;;  %v3916_v44 = vmax.f32 %v11728_v16, 0.0  ;;  %v9430_v16 = vld [vmem:[%s13070_s2 + $0xa2c] ss:$16 sps:$4 sm:$0xff]  }
 0x31b   : > { %7506 = vmatpush1.bf16.msra.mxu1 %v9338_v24  ;;  %7179 = vmatprep.subr.bf16.mxu0 %v9343_v32  ;;  %v3929_v24 = vpack.c.bf16 %v3913_v39, %v3913_v39  ;;  %v9422_v32 = vld [vmem:[%s13070_s2 + $0xa08] ss:$16 sps:$4 sm:$0xff]   ;;  %v9497_v39 = vld [vmem:[%s13070_s2 + $0xba0] ss:$16 sps:$4 sm:$0xff]  }
 0x31c   : > { %7507 = vmatprep.subr.bf16.mxu1 %v9346_v47  ;;  %v9427_v47 = vld [vmem:[%s13070_s2 + $0xa24] ss:$16 sps:$4 sm:$0xff]  }
 0x31e   : > { %7180 = vmatpush1.bf16.msra.mxu0 %v9341_v48  ;;  %v3932_v48 = vpack.c.bf16 %v3916_v44, %v3916_v44  ;;  %v9503_v44 = vld [vmem:[%s13070_s2 + $0xbc0] ss:$16 sps:$4 sm:$0xff]  }
 0x31f   : > { %7508 = vmatpush1.bf16.msra.mxu1 %v9344_v49  ;;  %7181 = vmatprep.subr.bf16.mxu0 %v9349_v50  ;;  %v9425_v49 = vld [vmem:[%s13070_s2 + $0xa20] ss:$16 sps:$4 sm:$0xff]   ;;  %v9428_v50 = vld [vmem:[%s13070_s2 + $0xa28] ss:$16 sps:$4 sm:$0xff]  }
 0x320   : > { %7509 = vmatprep.subr.bf16.mxu1 %v9352_v40  ;;  %v9433_v40 = vld [vmem:[%s13070_s2 + $0xa44] ss:$16 sps:$4 sm:$0xff]  }
 0x322   : > { %7182 = vmatpush1.bf16.msra.mxu0 %v9347_v51  ;;  %v9436_v51 = vld [vmem:[%s13070_s2 + $0xa4c] ss:$16 sps:$4 sm:$0xff]  }
 0x323   : > { %7510 = vmatpush1.bf16.msra.mxu1 %v9350_v52  ;;  %7183 = vmatprep.subr.bf16.mxu0 %v9355_v53  ;;  %v9431_v52 = vld [vmem:[%s13070_s2 + $0xa40] ss:$16 sps:$4 sm:$0xff]   ;;  %v9434_v53 = vld [vmem:[%s13070_s2 + $0xa48] ss:$16 sps:$4 sm:$0xff]  }
 0x324   : > { %7511 = vmatprep.subr.bf16.mxu1 %v9358_v54  ;;  %v9439_v54 = vld [vmem:[%s13070_s2 + $0xa64] ss:$16 sps:$4 sm:$0xff]  }
 0x326   : > { %7184 = vmatpush1.bf16.msra.mxu0 %v9353_v55  ;;  %v9442_v55 = vld [vmem:[%s13070_s2 + $0xa6c] ss:$16 sps:$4 sm:$0xff]  }
 0x327   : > { %7512 = vmatpush1.bf16.msra.mxu1 %v9356_v56  ;;  %7185 = vmatprep.subr.bf16.mxu0 %v9361_v58  ;;  %v9437_v56 = vld [vmem:[%s13070_s2 + $0xa60] ss:$16 sps:$4 sm:$0xff]   ;;  %v9440_v58 = vld [vmem:[%s13070_s2 + $0xa68] ss:$16 sps:$4 sm:$0xff]  }
 0x328   : > { %7513 = vmatprep.subr.bf16.mxu1 %v9364_v59  ;;  %v9445_v59 = vld [vmem:[%s13070_s2 + $0xa84] ss:$16 sps:$4 sm:$0xff]  }
 0x32a   : > { %7186 = vmatpush1.bf16.msra.mxu0 %v9359_v60  ;;  %v9448_v60 = vld [vmem:[%s13070_s2 + $0xa8c] ss:$16 sps:$4 sm:$0xff]  }
 0x32b   : > { %7514 = vmatpush1.bf16.msra.mxu1 %v9362_v61  ;;  %7187 = vmatprep.subr.bf16.mxu0 %v9367_v62  ;;  %v9443_v61 = vld [vmem:[%s13070_s2 + $0xa80] ss:$16 sps:$4 sm:$0xff]   ;;  %v9446_v62 = vld [vmem:[%s13070_s2 + $0xa88] ss:$16 sps:$4 sm:$0xff]  }
 0x32c   : > { %7515 = vmatprep.subr.bf16.mxu1 %v9370_v36  ;;  %v9451_v36 = vld [vmem:[%s13070_s2 + $0xaa4] ss:$16 sps:$4 sm:$0xff]  }
 0x32e   : > { %7188 = vmatpush1.bf16.msra.mxu0 %v9365_v63  ;;  %v9454_v63 = vld [vmem:[%s13070_s2 + $0xaac] ss:$16 sps:$4 sm:$0xff]  }
 0x32f   : > { %7516 = vmatpush1.bf16.msra.mxu1 %v9368_v0  ;;  %7189 = vmatprep.subr.bf16.mxu0 %v9373_v1  ;;  %v9449_v0 = vld [vmem:[%s13070_s2 + $0xaa0] ss:$16 sps:$4 sm:$0xff]   ;;  %v9452_v1 = vld [vmem:[%s13070_s2 + $0xaa8] ss:$16 sps:$4 sm:$0xff]  }
 0x330   : > { %7517 = vmatprep.subr.bf16.mxu1 %v9376_v2  ;;  %v9457_v2 = vld [vmem:[%s13070_s2 + $0xac4] ss:$16 sps:$4 sm:$0xff]  }
 0x332   : > { %7190 = vmatpush1.bf16.msra.mxu0 %v9371_v9  ;;  %v9460_v9 = vld [vmem:[%s13070_s2 + $0xacc] ss:$16 sps:$4 sm:$0xff]  }
 0x333   : > { %7518 = vmatpush1.bf16.msra.mxu1 %v9374_v3  ;;  %7191 = vmatprep.subr.bf16.mxu0 %v9379_v5  ;;  %v9455_v3 = vld [vmem:[%s13070_s2 + $0xac0] ss:$16 sps:$4 sm:$0xff]   ;;  %v9458_v5 = vld [vmem:[%s13070_s2 + $0xac8] ss:$16 sps:$4 sm:$0xff]  }
 0x334   : > { %7519 = vmatprep.subr.bf16.mxu1 %v9382_v6  ;;  %v9463_v6 = vld [vmem:[%s13070_s2 + $0xae4] ss:$16 sps:$4 sm:$0xff]  }
 0x336   : > { %7192 = vmatpush1.bf16.msra.mxu0 %v9377_v7  ;;  %v9466_v7 = vld [vmem:[%s13070_s2 + $0xaec] ss:$16 sps:$4 sm:$0xff]  }
 0x337   : > { %7520 = vmatpush1.bf16.msra.mxu1 %v9380_v11  ;;  %7193 = vmatprep.subr.bf16.mxu0 %v9385_v4  ;;  %v9461_v11 = vld [vmem:[%s13070_s2 + $0xae0] ss:$16 sps:$4 sm:$0xff]   ;;  %v9464_v4 = vld [vmem:[%s13070_s2 + $0xae8] ss:$16 sps:$4 sm:$0xff]  }
 0x338   : > { %7521 = vmatprep.subr.bf16.mxu1 %v9388_v17  ;;  %v9469_v17 = vld [vmem:[%s13070_s2 + $0xb04] ss:$16 sps:$4 sm:$0xff]  }
 0x33a   : > { %7194 = vmatpush1.bf16.msra.mxu0 %v9383_v18  ;;  %v9472_v18 = vld [vmem:[%s13070_s2 + $0xb0c] ss:$16 sps:$4 sm:$0xff]  }
 0x33b   : > { %7522 = vmatpush1.bf16.msra.mxu1 %v9386_v19  ;;  %7195 = vmatprep.subr.bf16.mxu0 %v9391_v20  ;;  %v9467_v19 = vld [vmem:[%s13070_s2 + $0xb00] ss:$16 sps:$4 sm:$0xff]   ;;  %v9470_v20 = vld [vmem:[%s13070_s2 + $0xb08] ss:$16 sps:$4 sm:$0xff]  }
 0x33c   : > { %7523 = vmatprep.subr.bf16.mxu1 %v9394_v13  ;;  %v9475_v13 = vld [vmem:[%s13070_s2 + $0xb24] ss:$16 sps:$4 sm:$0xff]  }
 0x33e   : > { %7196 = vmatpush1.bf16.msra.mxu0 %v9389_v21  ;;  %v9478_v21 = vld [vmem:[%s13070_s2 + $0xb2c] ss:$16 sps:$4 sm:$0xff]  }
 0x33f   : > { %7524 = vmatpush1.bf16.msra.mxu1 %v9392_v22  ;;  %7197 = vmatprep.subr.bf16.mxu0 %v9397_v25  ;;  %v9473_v22 = vld [vmem:[%s13070_s2 + $0xb20] ss:$16 sps:$4 sm:$0xff]   ;;  %v9476_v25 = vld [vmem:[%s13070_s2 + $0xb28] ss:$16 sps:$4 sm:$0xff]  }
 0x340   : > { %7525 = vmatprep.subr.bf16.mxu1 %v9400_v26  ;;  %v9481_v26 = vld [vmem:[%s13070_s2 + $0xb44] ss:$16 sps:$4 sm:$0xff]  }
 0x342   : > { %7198 = vmatpush1.bf16.msra.mxu0 %v9395_v27  ;;  %v9484_v27 = vld [vmem:[%s13070_s2 + $0xb4c] ss:$16 sps:$4 sm:$0xff]  }
 0x343   : > { %7526 = vmatpush1.bf16.msra.mxu1 %v9398_v28  ;;  %7199 = vmatprep.subr.bf16.mxu0 %v9403_v29  ;;  %v9479_v28 = vld [vmem:[%s13070_s2 + $0xb40] ss:$16 sps:$4 sm:$0xff]   ;;  %v9482_v29 = vld [vmem:[%s13070_s2 + $0xb48] ss:$16 sps:$4 sm:$0xff]  }
 0x344   : > { %7527 = vmatprep.subr.bf16.mxu1 %v9406_v30  ;;  %v9487_v30 = vld [vmem:[%s13070_s2 + $0xb64] ss:$16 sps:$4 sm:$0xff]  }
 0x346   : > { %7200 = vmatpush1.bf16.msra.mxu0 %v9401_v57  ;;  %v9490_v57 = vld [vmem:[%s13070_s2 + $0xb6c] ss:$16 sps:$4 sm:$0xff]  }
 0x347   : > { %7528 = vmatpush1.bf16.msra.mxu1 %v9404_v31  ;;  %7201 = vmatprep.subr.bf16.mxu0 %v9409_v33  ;;  %v9485_v31 = vld [vmem:[%s13070_s2 + $0xb60] ss:$16 sps:$4 sm:$0xff]   ;;  %v9488_v33 = vld [vmem:[%s13070_s2 + $0xb68] ss:$16 sps:$4 sm:$0xff]  }
 0x348   : > { %7529 = vmatprep.subr.bf16.mxu1 %v9412_v8  ;;  %v9493_v8 = vld [vmem:[%s13070_s2 + $0xb84] ss:$16 sps:$4 sm:$0xff]  }
 0x34a   : > { %7202 = vmatpush1.bf16.msra.mxu0 %v9407_v34  ;;  %v9496_v34 = vld [vmem:[%s13070_s2 + $0xb8c] ss:$16 sps:$4 sm:$0xff]  }
 0x34b   : > { %7530 = vmatpush1.bf16.msra.mxu1 %v9410_v35  ;;  %7203 = vmatprep.subr.bf16.mxu0 %v9415_v38  ;;  %v9491_v35 = vld [vmem:[%s13070_s2 + $0xb80] ss:$16 sps:$4 sm:$0xff]   ;;  %v9494_v38 = vld [vmem:[%s13070_s2 + $0xb88] ss:$16 sps:$4 sm:$0xff]  }
 0x34c   : > { %7531 = vmatprep.subr.bf16.mxu1 %v9418_v12  ;;  %v9499_v12 = vld [vmem:[%s13070_s2 + $0xba4] ss:$16 sps:$4 sm:$0xff]  }
 0x34e   : > { %7204 = vmatpush1.bf16.msra.mxu0 %v9413_v15  ;;  %v9502_v15 = vld [vmem:[%s13070_s2 + $0xbac] ss:$16 sps:$4 sm:$0xff]  }
 0x34f   : > { %7532 = vmatpush1.bf16.msra.mxu1 %v9416_v41  ;;  %7214 = vmatprep.subr.bf16.mxu0 %v9421_v42  ;;  %v9500_v41 = vld [vmem:[%s13070_s2 + $0xba8] ss:$16 sps:$4 sm:$0xff]   ;;  %v9505_v42 = vld [vmem:[%s13070_s2 + $0xbc4] ss:$16 sps:$4 sm:$0xff]  }
 0x350   : > { %7542 = vmatprep.subr.bf16.mxu1 %v9424_v43  ;;  %v9508_v43 = vld [vmem:[%s13070_s2 + $0xbcc] ss:$16 sps:$4 sm:$0xff]  }
 0x351   : > { %7206 = vmatmul.mubr.bf16.vlgmr.msra.gmra.mrb[16].mxu0 %v3929_v24 }
 0x352   : > { %7534 = vmatmul.mubr.bf16.vlgmr.msra.gmra.mrb[16].mxu1 %v3929_v24  ;;  %7215 = vmatpush1.bf16.msra.mxu0 %v9419_v10  ;;  %v9506_v10 = vld [vmem:[%s13070_s2 + $0xbc8] ss:$16 sps:$4 sm:$0xff]   ;;  %v9511_v24 = vld [vmem:[%s13070_s2 + $0xbe4] ss:$16 sps:$4 sm:$0xff]  }
 0x353   : > { %7246 = vmatprep.mubr.bf16.mxu0 %v3932_v48  ;;  %7543 = vmatpush1.bf16.msra.mxu1 %v9422_v32  ;;  %v9514_v32 = vld [vmem:[%s13070_s2 + $0xbec] ss:$16 sps:$4 sm:$0xff]  }
 0x354   : > { %7574 = vmatprep.mubr.bf16.mxu1 %v3932_v48  ;;  %7216 = vmatprep.subr.bf16.mxu0 %v9427_v47  ;;  %v9509_v47 = vld [vmem:[%s13070_s2 + $0xbe0] ss:$16 sps:$4 sm:$0xff]   ;;  %v3915_v48 = vmax.f32 %v11724_v14, 0.0 }
 0x355   : > { %7544 = vmatprep.subr.bf16.mxu1 %v9430_v16  ;;  %v9512_v16 = vld [vmem:[%s13070_s2 + $0xbe8] ss:$16 sps:$4 sm:$0xff]   ;;  %v9515_v14 = vld [vmem:[%s13070_s2 + $0xc00] ss:$16 sps:$4 sm:$0xff]  }
 0x356   : > { %7217 = vmatpush1.bf16.msra.mxu0 %v9425_v49  ;;  %v9517_v49 = vld [vmem:[%s13070_s2 + $0xc04] ss:$16 sps:$4 sm:$0xff]  }
 0x357   : > { %7545 = vmatpush1.bf16.msra.mxu1 %v9428_v50  ;;  %7218 = vmatprep.subr.bf16.mxu0 %v9433_v40  ;;  %v9520_v50 = vld [vmem:[%s13070_s2 + $0xc0c] ss:$16 sps:$4 sm:$0xff]   ;;  %v3918_v40 = vmax.f32 %v12122_v46, 0.0 }
 0x358   : > { %7546 = vmatprep.subr.bf16.mxu1 %v9436_v51  ;;  %v3931_v51 = vpack.c.bf16 %v3915_v48, %v3915_v48  ;;  %v9526_v46 = vld [vmem:[%s13070_s2 + $0xc2c] ss:$16 sps:$4 sm:$0xff]   ;;  %v9601_v48 = vld [vmem:[%s13070_s2 + $0xdc4] ss:$16 sps:$4 sm:$0xff]  }
 0x35a   : > { %7219 = vmatpush1.bf16.msra.mxu0 %v9431_v52  ;;  %v9518_v52 = vld [vmem:[%s13070_s2 + $0xc08] ss:$16 sps:$4 sm:$0xff]  }
 0x35b   : > { %7547 = vmatpush1.bf16.msra.mxu1 %v9434_v53  ;;  %7220 = vmatprep.subr.bf16.mxu0 %v9439_v54  ;;  %v9523_v53 = vld [vmem:[%s13070_s2 + $0xc24] ss:$16 sps:$4 sm:$0xff]   ;;  %v3934_v54 = vpack.c.bf16 %v3918_v40, %v3918_v40 }
 0x35c   : > { %7548 = vmatprep.subr.bf16.mxu1 %v9442_v55  ;;  %v9521_v55 = vld [vmem:[%s13070_s2 + $0xc20] ss:$16 sps:$4 sm:$0xff]   ;;  %v9607_v40 = vld [vmem:[%s13070_s2 + $0xde4] ss:$16 sps:$4 sm:$0xff]  }
 0x35e   : > { %7221 = vmatpush1.bf16.msra.mxu0 %v9437_v56  ;;  %v9524_v56 = vld [vmem:[%s13070_s2 + $0xc28] ss:$16 sps:$4 sm:$0xff]  }
 0x35f   : > { %7549 = vmatpush1.bf16.msra.mxu1 %v9440_v58  ;;  %7222 = vmatprep.subr.bf16.mxu0 %v9445_v59  ;;  %v9529_v58 = vld [vmem:[%s13070_s2 + $0xc44] ss:$16 sps:$4 sm:$0xff]   ;;  %v9532_v59 = vld [vmem:[%s13070_s2 + $0xc4c] ss:$16 sps:$4 sm:$0xff]  }
 0x360   : > { %7550 = vmatprep.subr.bf16.mxu1 %v9448_v60  ;;  %v9527_v60 = vld [vmem:[%s13070_s2 + $0xc40] ss:$16 sps:$4 sm:$0xff]  }
 0x362   : > { %7223 = vmatpush1.bf16.msra.mxu0 %v9443_v61  ;;  %v9530_v61 = vld [vmem:[%s13070_s2 + $0xc48] ss:$16 sps:$4 sm:$0xff]  }
 0x363   : > { %7551 = vmatpush1.bf16.msra.mxu1 %v9446_v62  ;;  %7224 = vmatprep.subr.bf16.mxu0 %v9451_v36  ;;  %v9535_v62 = vld [vmem:[%s13070_s2 + $0xc64] ss:$16 sps:$4 sm:$0xff]   ;;  %v9538_v36 = vld [vmem:[%s13070_s2 + $0xc6c] ss:$16 sps:$4 sm:$0xff]  }
 0x364   : > { %7552 = vmatprep.subr.bf16.mxu1 %v9454_v63  ;;  %v9533_v63 = vld [vmem:[%s13070_s2 + $0xc60] ss:$16 sps:$4 sm:$0xff]  }
 0x366   : > { %7225 = vmatpush1.bf16.msra.mxu0 %v9449_v0  ;;  %v9536_v0 = vld [vmem:[%s13070_s2 + $0xc68] ss:$16 sps:$4 sm:$0xff]  }
 0x367   : > { %7553 = vmatpush1.bf16.msra.mxu1 %v9452_v1  ;;  %7226 = vmatprep.subr.bf16.mxu0 %v9457_v2  ;;  %v9541_v1 = vld [vmem:[%s13070_s2 + $0xc84] ss:$16 sps:$4 sm:$0xff]   ;;  %v9544_v2 = vld [vmem:[%s13070_s2 + $0xc8c] ss:$16 sps:$4 sm:$0xff]  }
 0x368   : > { %7554 = vmatprep.subr.bf16.mxu1 %v9460_v9  ;;  %v9539_v9 = vld [vmem:[%s13070_s2 + $0xc80] ss:$16 sps:$4 sm:$0xff]  }
 0x36a   : > { %7227 = vmatpush1.bf16.msra.mxu0 %v9455_v3  ;;  %v9542_v3 = vld [vmem:[%s13070_s2 + $0xc88] ss:$16 sps:$4 sm:$0xff]  }
 0x36b   : > { %7555 = vmatpush1.bf16.msra.mxu1 %v9458_v5  ;;  %7228 = vmatprep.subr.bf16.mxu0 %v9463_v6  ;;  %v9547_v5 = vld [vmem:[%s13070_s2 + $0xca4] ss:$16 sps:$4 sm:$0xff]   ;;  %v9550_v6 = vld [vmem:[%s13070_s2 + $0xcac] ss:$16 sps:$4 sm:$0xff]  }
 0x36c   : > { %7556 = vmatprep.subr.bf16.mxu1 %v9466_v7  ;;  %v9545_v7 = vld [vmem:[%s13070_s2 + $0xca0] ss:$16 sps:$4 sm:$0xff]  }
 0x36e   : > { %7229 = vmatpush1.bf16.msra.mxu0 %v9461_v11  ;;  %v9548_v11 = vld [vmem:[%s13070_s2 + $0xca8] ss:$16 sps:$4 sm:$0xff]  }
 0x36f   : > { %7557 = vmatpush1.bf16.msra.mxu1 %v9464_v4  ;;  %7230 = vmatprep.subr.bf16.mxu0 %v9469_v17  ;;  %v9553_v4 = vld [vmem:[%s13070_s2 + $0xcc4] ss:$16 sps:$4 sm:$0xff]   ;;  %v9556_v17 = vld [vmem:[%s13070_s2 + $0xccc] ss:$16 sps:$4 sm:$0xff]  }
 0x370   : > { %7558 = vmatprep.subr.bf16.mxu1 %v9472_v18  ;;  %v9551_v18 = vld [vmem:[%s13070_s2 + $0xcc0] ss:$16 sps:$4 sm:$0xff]  }
 0x372   : > { %7231 = vmatpush1.bf16.msra.mxu0 %v9467_v19  ;;  %v9554_v19 = vld [vmem:[%s13070_s2 + $0xcc8] ss:$16 sps:$4 sm:$0xff]  }
 0x373   : > { %7559 = vmatpush1.bf16.msra.mxu1 %v9470_v20  ;;  %7232 = vmatprep.subr.bf16.mxu0 %v9475_v13  ;;  %v9559_v20 = vld [vmem:[%s13070_s2 + $0xce4] ss:$16 sps:$4 sm:$0xff]   ;;  %v9562_v13 = vld [vmem:[%s13070_s2 + $0xcec] ss:$16 sps:$4 sm:$0xff]  }
 0x374   : > { %7560 = vmatprep.subr.bf16.mxu1 %v9478_v21  ;;  %v9557_v21 = vld [vmem:[%s13070_s2 + $0xce0] ss:$16 sps:$4 sm:$0xff]  }
 0x376   : > { %7233 = vmatpush1.bf16.msra.mxu0 %v9473_v22  ;;  %v9560_v22 = vld [vmem:[%s13070_s2 + $0xce8] ss:$16 sps:$4 sm:$0xff]  }
 0x377   : > { %7561 = vmatpush1.bf16.msra.mxu1 %v9476_v25  ;;  %7234 = vmatprep.subr.bf16.mxu0 %v9481_v26  ;;  %v9565_v25 = vld [vmem:[%s13070_s2 + $0xd04] ss:$16 sps:$4 sm:$0xff]   ;;  %v9568_v26 = vld [vmem:[%s13070_s2 + $0xd0c] ss:$16 sps:$4 sm:$0xff]  }
 0x378   : > { %7562 = vmatprep.subr.bf16.mxu1 %v9484_v27  ;;  %v9563_v27 = vld [vmem:[%s13070_s2 + $0xd00] ss:$16 sps:$4 sm:$0xff]  }
 0x37a   : > { %7235 = vmatpush1.bf16.msra.mxu0 %v9479_v28  ;;  %v9566_v28 = vld [vmem:[%s13070_s2 + $0xd08] ss:$16 sps:$4 sm:$0xff]  }
 0x37b   : > { %7563 = vmatpush1.bf16.msra.mxu1 %v9482_v29  ;;  %7236 = vmatprep.subr.bf16.mxu0 %v9487_v30  ;;  %v9571_v29 = vld [vmem:[%s13070_s2 + $0xd24] ss:$16 sps:$4 sm:$0xff]   ;;  %v9574_v30 = vld [vmem:[%s13070_s2 + $0xd2c] ss:$16 sps:$4 sm:$0xff]  }
 0x37c   : > { %7564 = vmatprep.subr.bf16.mxu1 %v9490_v57  ;;  %v9569_v57 = vld [vmem:[%s13070_s2 + $0xd20] ss:$16 sps:$4 sm:$0xff]  }
 0x37e   : > { %7237 = vmatpush1.bf16.msra.mxu0 %v9485_v31  ;;  %v9572_v31 = vld [vmem:[%s13070_s2 + $0xd28] ss:$16 sps:$4 sm:$0xff]  }
 0x37f   : > { %7565 = vmatpush1.bf16.msra.mxu1 %v9488_v33  ;;  %7238 = vmatprep.subr.bf16.mxu0 %v9493_v8  ;;  %v9577_v33 = vld [vmem:[%s13070_s2 + $0xd44] ss:$16 sps:$4 sm:$0xff]   ;;  %v9580_v8 = vld [vmem:[%s13070_s2 + $0xd4c] ss:$16 sps:$4 sm:$0xff]  }
 0x380   : > { %7566 = vmatprep.subr.bf16.mxu1 %v9496_v34  ;;  %v9575_v34 = vld [vmem:[%s13070_s2 + $0xd40] ss:$16 sps:$4 sm:$0xff]  }
 0x382   : > { %7239 = vmatpush1.bf16.msra.mxu0 %v9491_v35  ;;  %v9578_v35 = vld [vmem:[%s13070_s2 + $0xd48] ss:$16 sps:$4 sm:$0xff]  }
 0x383   : > { %7567 = vmatpush1.bf16.msra.mxu1 %v9494_v38  ;;  %7240 = vmatprep.subr.bf16.mxu0 %v9499_v12  ;;  %v9583_v38 = vld [vmem:[%s13070_s2 + $0xd64] ss:$16 sps:$4 sm:$0xff]   ;;  %v9586_v12 = vld [vmem:[%s13070_s2 + $0xd6c] ss:$16 sps:$4 sm:$0xff]  }
 0x384   : > { %7568 = vmatprep.subr.bf16.mxu1 %v9502_v15  ;;  %v9581_v15 = vld [vmem:[%s13070_s2 + $0xd60] ss:$16 sps:$4 sm:$0xff]  }
 0x386   : > { %7241 = vmatpush1.bf16.msra.mxu0 %v9497_v39  ;;  %v9584_v39 = vld [vmem:[%s13070_s2 + $0xd68] ss:$16 sps:$4 sm:$0xff]  }
 0x387   : > { %7569 = vmatpush1.bf16.msra.mxu1 %v9500_v41  ;;  %7242 = vmatprep.subr.bf16.mxu0 %v9505_v42  ;;  %v9589_v41 = vld [vmem:[%s13070_s2 + $0xd84] ss:$16 sps:$4 sm:$0xff]   ;;  %v9592_v42 = vld [vmem:[%s13070_s2 + $0xd8c] ss:$16 sps:$4 sm:$0xff]  }
 0x388   : > { %7570 = vmatprep.subr.bf16.mxu1 %v9508_v43  ;;  %v9587_v43 = vld [vmem:[%s13070_s2 + $0xd80] ss:$16 sps:$4 sm:$0xff]  }
 0x38a   : > { %7243 = vmatpush1.bf16.msra.mxu0 %v9503_v44  ;;  %v9590_v44 = vld [vmem:[%s13070_s2 + $0xd88] ss:$16 sps:$4 sm:$0xff]  }
 0x38b   : > { %7571 = vmatpush1.bf16.msra.mxu1 %v9506_v10  ;;  %7244 = vmatprep.subr.bf16.mxu0 %v9511_v24  ;;  %v9595_v10 = vld [vmem:[%s13070_s2 + $0xda4] ss:$16 sps:$4 sm:$0xff]   ;;  %v9598_v24 = vld [vmem:[%s13070_s2 + $0xdac] ss:$16 sps:$4 sm:$0xff]  }
 0x38c   : > { %7572 = vmatprep.subr.bf16.mxu1 %v9514_v32  ;;  %v9593_v32 = vld [vmem:[%s13070_s2 + $0xda0] ss:$16 sps:$4 sm:$0xff]  }
 0x38e   : > { %7245 = vmatpush1.bf16.msra.mxu0 %v9509_v47  ;;  %v9596_v47 = vld [vmem:[%s13070_s2 + $0xda8] ss:$16 sps:$4 sm:$0xff]  }
 0x38f   : > { %7573 = vmatpush1.bf16.msra.mxu1 %v9512_v16  ;;  %7255 = vmatprep.subr.bf16.mxu0 %v9517_v49  ;;  %v9604_v16 = vld [vmem:[%s13070_s2 + $0xdcc] ss:$16 sps:$4 sm:$0xff]   ;;  %v9599_v49 = vld [vmem:[%s13070_s2 + $0xdc0] ss:$16 sps:$4 sm:$0xff]  }
 0x390   : > { %7583 = vmatprep.subr.bf16.mxu1 %v9520_v50  ;;  %v9602_v50 = vld [vmem:[%s13070_s2 + $0xdc8] ss:$16 sps:$4 sm:$0xff]  }
 0x391   : > { %7247 = vmatmul.mubr.bf16.vlgmr.msra.gmra.mrb[16].mxu0 %v3931_v51 }
 0x392   : > { %7575 = vmatmul.mubr.bf16.vlgmr.msra.gmra.mrb[16].mxu1 %v3931_v51  ;;  %7256 = vmatpush1.bf16.msra.mxu0 %v9515_v14  ;;  %v9610_v14 = vld [vmem:[%s13070_s2 + $0xdec] ss:$16 sps:$4 sm:$0xff]   ;;  %v9605_v51 = vld [vmem:[%s13070_s2 + $0xde0] ss:$16 sps:$4 sm:$0xff]  }
 0x393   : > { %7287 = vmatprep.mubr.bf16.mxu0 %v3934_v54  ;;  %7584 = vmatpush1.bf16.msra.mxu1 %v9518_v52  ;;  %v3917_v52 = vmax.f32 %v12115_v37, 0.0  ;;  %v9611_v37 = vld [vmem:[%s13070_s2 + $0xe00] ss:$16 sps:$4 sm:$0xff]  }
 0x394   : > { %7615 = vmatprep.mubr.bf16.mxu1 %v3934_v54  ;;  %7257 = vmatprep.subr.bf16.mxu0 %v9523_v53  ;;  %v9608_v53 = vld [vmem:[%s13070_s2 + $0xde8] ss:$16 sps:$4 sm:$0xff]   ;;  %v9613_v54 = vld [vmem:[%s13070_s2 + $0xe04] ss:$16 sps:$4 sm:$0xff]  }
 0x395   : > { %7585 = vmatprep.subr.bf16.mxu1 %v9526_v46  ;;  %v9616_v46 = vld [vmem:[%s13070_s2 + $0xe0c] ss:$16 sps:$4 sm:$0xff]  }
 0x396   : > { %7258 = vmatpush1.bf16.msra.mxu0 %v9521_v55  ;;  %v3920_v55 = vmax.f32 %v12124_v23, 0.0  ;;  %v9622_v23 = vld [vmem:[%s13070_s2 + $0xe2c] ss:$16 sps:$4 sm:$0xff]  }
 0x397   : > { %7586 = vmatpush1.bf16.msra.mxu1 %v9524_v56  ;;  %7259 = vmatprep.subr.bf16.mxu0 %v9529_v58  ;;  %v3933_v56 = vpack.c.bf16 %v3917_v52, %v3917_v52  ;;  %v9614_v58 = vld [vmem:[%s13070_s2 + $0xe08] ss:$16 sps:$4 sm:$0xff]   ;;  %v9695_v52 = vld [vmem:[%s13070_s2 + $0xfc0] ss:$16 sps:$4 sm:$0xff]  }
 0x398   : > { %7587 = vmatprep.subr.bf16.mxu1 %v9532_v59  ;;  %v9619_v59 = vld [vmem:[%s13070_s2 + $0xe24] ss:$16 sps:$4 sm:$0xff]  }
 0x39a   : > { %7260 = vmatpush1.bf16.msra.mxu0 %v9527_v60  ;;  %v3936_v60 = vpack.c.bf16 %v3920_v55, %v3920_v55  ;;  %v9701_v55 = vld [vmem:[%s13070_s2 + $0xfe0] ss:$16 sps:$4 sm:$0xff]  }
 0x39b   : > { %7588 = vmatpush1.bf16.msra.mxu1 %v9530_v61  ;;  %7261 = vmatprep.subr.bf16.mxu0 %v9535_v62  ;;  %v9617_v61 = vld [vmem:[%s13070_s2 + $0xe20] ss:$16 sps:$4 sm:$0xff]   ;;  %v9620_v62 = vld [vmem:[%s13070_s2 + $0xe28] ss:$16 sps:$4 sm:$0xff]  }
 0x39c   : > { %7589 = vmatprep.subr.bf16.mxu1 %v9538_v36  ;;  %v9625_v36 = vld [vmem:[%s13070_s2 + $0xe44] ss:$16 sps:$4 sm:$0xff]  }
 0x39e   : > { %7262 = vmatpush1.bf16.msra.mxu0 %v9533_v63  ;;  %v9628_v63 = vld [vmem:[%s13070_s2 + $0xe4c] ss:$16 sps:$4 sm:$0xff]  }
 0x39f   : > { %7590 = vmatpush1.bf16.msra.mxu1 %v9536_v0  ;;  %7263 = vmatprep.subr.bf16.mxu0 %v9541_v1  ;;  %v9623_v0 = vld [vmem:[%s13070_s2 + $0xe40] ss:$16 sps:$4 sm:$0xff]   ;;  %v9626_v1 = vld [vmem:[%s13070_s2 + $0xe48] ss:$16 sps:$4 sm:$0xff]  }
 0x3a0   : > { %7591 = vmatprep.subr.bf16.mxu1 %v9544_v2  ;;  %v9631_v2 = vld [vmem:[%s13070_s2 + $0xe64] ss:$16 sps:$4 sm:$0xff]  }
 0x3a2   : > { %7264 = vmatpush1.bf16.msra.mxu0 %v9539_v9  ;;  %v9634_v9 = vld [vmem:[%s13070_s2 + $0xe6c] ss:$16 sps:$4 sm:$0xff]  }
 0x3a3   : > { %7592 = vmatpush1.bf16.msra.mxu1 %v9542_v3  ;;  %7265 = vmatprep.subr.bf16.mxu0 %v9547_v5  ;;  %v9629_v3 = vld [vmem:[%s13070_s2 + $0xe60] ss:$16 sps:$4 sm:$0xff]   ;;  %v9632_v5 = vld [vmem:[%s13070_s2 + $0xe68] ss:$16 sps:$4 sm:$0xff]  }
 0x3a4   : > { %7593 = vmatprep.subr.bf16.mxu1 %v9550_v6  ;;  %v9637_v6 = vld [vmem:[%s13070_s2 + $0xe84] ss:$16 sps:$4 sm:$0xff]  }
 0x3a6   : > { %7266 = vmatpush1.bf16.msra.mxu0 %v9545_v7  ;;  %v9640_v7 = vld [vmem:[%s13070_s2 + $0xe8c] ss:$16 sps:$4 sm:$0xff]  }
 0x3a7   : > { %7594 = vmatpush1.bf16.msra.mxu1 %v9548_v11  ;;  %7267 = vmatprep.subr.bf16.mxu0 %v9553_v4  ;;  %v9635_v11 = vld [vmem:[%s13070_s2 + $0xe80] ss:$16 sps:$4 sm:$0xff]   ;;  %v9638_v4 = vld [vmem:[%s13070_s2 + $0xe88] ss:$16 sps:$4 sm:$0xff]  }
 0x3a8   : > { %7595 = vmatprep.subr.bf16.mxu1 %v9556_v17  ;;  %v9643_v17 = vld [vmem:[%s13070_s2 + $0xea4] ss:$16 sps:$4 sm:$0xff]  }
 0x3aa   : > { %7268 = vmatpush1.bf16.msra.mxu0 %v9551_v18  ;;  %v9646_v18 = vld [vmem:[%s13070_s2 + $0xeac] ss:$16 sps:$4 sm:$0xff]  }
 0x3ab   : > { %7596 = vmatpush1.bf16.msra.mxu1 %v9554_v19  ;;  %7269 = vmatprep.subr.bf16.mxu0 %v9559_v20  ;;  %v9641_v19 = vld [vmem:[%s13070_s2 + $0xea0] ss:$16 sps:$4 sm:$0xff]   ;;  %v9644_v20 = vld [vmem:[%s13070_s2 + $0xea8] ss:$16 sps:$4 sm:$0xff]  }
 0x3ac   : > { %7597 = vmatprep.subr.bf16.mxu1 %v9562_v13  ;;  %v9649_v13 = vld [vmem:[%s13070_s2 + $0xec4] ss:$16 sps:$4 sm:$0xff]  }
 0x3ae   : > { %7270 = vmatpush1.bf16.msra.mxu0 %v9557_v21  ;;  %v9652_v21 = vld [vmem:[%s13070_s2 + $0xecc] ss:$16 sps:$4 sm:$0xff]  }
 0x3af   : > { %7598 = vmatpush1.bf16.msra.mxu1 %v9560_v22  ;;  %7271 = vmatprep.subr.bf16.mxu0 %v9565_v25  ;;  %v9647_v22 = vld [vmem:[%s13070_s2 + $0xec0] ss:$16 sps:$4 sm:$0xff]   ;;  %v9650_v25 = vld [vmem:[%s13070_s2 + $0xec8] ss:$16 sps:$4 sm:$0xff]  }
 0x3b0   : > { %7599 = vmatprep.subr.bf16.mxu1 %v9568_v26  ;;  %v9655_v26 = vld [vmem:[%s13070_s2 + $0xee4] ss:$16 sps:$4 sm:$0xff]  }
 0x3b2   : > { %7272 = vmatpush1.bf16.msra.mxu0 %v9563_v27  ;;  %v9658_v27 = vld [vmem:[%s13070_s2 + $0xeec] ss:$16 sps:$4 sm:$0xff]  }
 0x3b3   : > { %7600 = vmatpush1.bf16.msra.mxu1 %v9566_v28  ;;  %7273 = vmatprep.subr.bf16.mxu0 %v9571_v29  ;;  %v9653_v28 = vld [vmem:[%s13070_s2 + $0xee0] ss:$16 sps:$4 sm:$0xff]   ;;  %v9656_v29 = vld [vmem:[%s13070_s2 + $0xee8] ss:$16 sps:$4 sm:$0xff]  }
 0x3b4   : > { %7601 = vmatprep.subr.bf16.mxu1 %v9574_v30  ;;  %v9661_v30 = vld [vmem:[%s13070_s2 + $0xf04] ss:$16 sps:$4 sm:$0xff]  }
 0x3b6   : > { %7274 = vmatpush1.bf16.msra.mxu0 %v9569_v57  ;;  %v9664_v57 = vld [vmem:[%s13070_s2 + $0xf0c] ss:$16 sps:$4 sm:$0xff]  }
 0x3b7   : > { %7602 = vmatpush1.bf16.msra.mxu1 %v9572_v31  ;;  %7275 = vmatprep.subr.bf16.mxu0 %v9577_v33  ;;  %v9659_v31 = vld [vmem:[%s13070_s2 + $0xf00] ss:$16 sps:$4 sm:$0xff]   ;;  %v9662_v33 = vld [vmem:[%s13070_s2 + $0xf08] ss:$16 sps:$4 sm:$0xff]  }
 0x3b8   : > { %7603 = vmatprep.subr.bf16.mxu1 %v9580_v8  ;;  %v9667_v8 = vld [vmem:[%s13070_s2 + $0xf24] ss:$16 sps:$4 sm:$0xff]  }
 0x3ba   : > { %7276 = vmatpush1.bf16.msra.mxu0 %v9575_v34  ;;  %v9670_v34 = vld [vmem:[%s13070_s2 + $0xf2c] ss:$16 sps:$4 sm:$0xff]  }
 0x3bb   : > { %7604 = vmatpush1.bf16.msra.mxu1 %v9578_v35  ;;  %7277 = vmatprep.subr.bf16.mxu0 %v9583_v38  ;;  %v9665_v35 = vld [vmem:[%s13070_s2 + $0xf20] ss:$16 sps:$4 sm:$0xff]   ;;  %v9668_v38 = vld [vmem:[%s13070_s2 + $0xf28] ss:$16 sps:$4 sm:$0xff]  }
 0x3bc   : > { %7605 = vmatprep.subr.bf16.mxu1 %v9586_v12  ;;  %v9673_v12 = vld [vmem:[%s13070_s2 + $0xf44] ss:$16 sps:$4 sm:$0xff]  }
 0x3be   : > { %7278 = vmatpush1.bf16.msra.mxu0 %v9581_v15  ;;  %v9676_v15 = vld [vmem:[%s13070_s2 + $0xf4c] ss:$16 sps:$4 sm:$0xff]  }
 0x3bf   : > { %7606 = vmatpush1.bf16.msra.mxu1 %v9584_v39  ;;  %7279 = vmatprep.subr.bf16.mxu0 %v9589_v41  ;;  %v9671_v39 = vld [vmem:[%s13070_s2 + $0xf40] ss:$16 sps:$4 sm:$0xff]   ;;  %v9674_v41 = vld [vmem:[%s13070_s2 + $0xf48] ss:$16 sps:$4 sm:$0xff]  }
 0x3c0   : > { %7607 = vmatprep.subr.bf16.mxu1 %v9592_v42  ;;  %v9679_v42 = vld [vmem:[%s13070_s2 + $0xf64] ss:$16 sps:$4 sm:$0xff]  }
 0x3c2   : > { %7280 = vmatpush1.bf16.msra.mxu0 %v9587_v43  ;;  %v9682_v43 = vld [vmem:[%s13070_s2 + $0xf6c] ss:$16 sps:$4 sm:$0xff]  }
 0x3c3   : > { %7608 = vmatpush1.bf16.msra.mxu1 %v9590_v44  ;;  %7281 = vmatprep.subr.bf16.mxu0 %v9595_v10  ;;  %v9677_v44 = vld [vmem:[%s13070_s2 + $0xf60] ss:$16 sps:$4 sm:$0xff]   ;;  %v9680_v10 = vld [vmem:[%s13070_s2 + $0xf68] ss:$16 sps:$4 sm:$0xff]  }
 0x3c4   : > { %7609 = vmatprep.subr.bf16.mxu1 %v9598_v24  ;;  %v9685_v24 = vld [vmem:[%s13070_s2 + $0xf84] ss:$16 sps:$4 sm:$0xff]  }
 0x3c6   : > { %7282 = vmatpush1.bf16.msra.mxu0 %v9593_v32  ;;  %v9688_v32 = vld [vmem:[%s13070_s2 + $0xf8c] ss:$16 sps:$4 sm:$0xff]  }
 0x3c7   : > { %7610 = vmatpush1.bf16.msra.mxu1 %v9596_v47  ;;  %7283 = vmatprep.subr.bf16.mxu0 %v9601_v48  ;;  %v9683_v47 = vld [vmem:[%s13070_s2 + $0xf80] ss:$16 sps:$4 sm:$0xff]   ;;  %v9686_v48 = vld [vmem:[%s13070_s2 + $0xf88] ss:$16 sps:$4 sm:$0xff]  }
 0x3c8   : > { %7611 = vmatprep.subr.bf16.mxu1 %v9604_v16  ;;  %v9691_v16 = vld [vmem:[%s13070_s2 + $0xfa4] ss:$16 sps:$4 sm:$0xff]  }
 0x3ca   : > { %7284 = vmatpush1.bf16.msra.mxu0 %v9599_v49  ;;  %v9694_v49 = vld [vmem:[%s13070_s2 + $0xfac] ss:$16 sps:$4 sm:$0xff]  }
 0x3cb   : > { %7612 = vmatpush1.bf16.msra.mxu1 %v9602_v50  ;;  %7285 = vmatprep.subr.bf16.mxu0 %v9607_v40  ;;  %v9689_v50 = vld [vmem:[%s13070_s2 + $0xfa0] ss:$16 sps:$4 sm:$0xff]   ;;  %v9692_v40 = vld [vmem:[%s13070_s2 + $0xfa8] ss:$16 sps:$4 sm:$0xff]  }
 0x3cc   : > { %7613 = vmatprep.subr.bf16.mxu1 %v9610_v14  ;;  %v9697_v14 = vld [vmem:[%s13070_s2 + $0xfc4] ss:$16 sps:$4 sm:$0xff]  }
 0x3ce   : > { %7286 = vmatpush1.bf16.msra.mxu0 %v9605_v51  ;;  %v9700_v51 = vld [vmem:[%s13070_s2 + $0xfcc] ss:$16 sps:$4 sm:$0xff]  }
 0x3cf   : > { %7614 = vmatpush1.bf16.msra.mxu1 %v9608_v53  ;;  %7296 = vmatprep.subr.bf16.mxu0 %v9613_v54  ;;  %v9698_v53 = vld [vmem:[%s13070_s2 + $0xfc8] ss:$16 sps:$4 sm:$0xff]   ;;  %v9703_v54 = vld [vmem:[%s13070_s2 + $0xfe4] ss:$16 sps:$4 sm:$0xff]  }
 0x3d0   : > { %7624 = vmatprep.subr.bf16.mxu1 %v9616_v46  ;;  %v9706_v46 = vld [vmem:[%s13070_s2 + $0xfec] ss:$16 sps:$4 sm:$0xff]  }
 0x3d1   : > { %7288 = vmatmul.mubr.bf16.vlgmr.msra.gmra.mrb[16].mxu0 %v3933_v56 }
 0x3d2   : > { %7616 = vmatmul.mubr.bf16.vlgmr.msra.gmra.mrb[16].mxu1 %v3933_v56  ;;  %7297 = vmatpush1.bf16.msra.mxu0 %v9611_v37  ;;  %v3919_v37 = vmax.f32 %v12120_v45, 0.0  ;;  %v9704_v56 = vld [vmem:[%s13070_s2 + $0xfe8] ss:$16 sps:$4 sm:$0xff]  }
 0x3d3   : > { %7328 = vmatprep.mubr.bf16.mxu0 %v3936_v60  ;;  %7625 = vmatpush1.bf16.msra.mxu1 %v9614_v58  ;;  %v9710_v45 = vld [vmem:[%s9929_s26 + $0x8] sm:$0xff] }
 0x3d4   : > { %7656 = vmatprep.mubr.bf16.mxu1 %v3936_v60  ;;  %7298 = vmatprep.subr.bf16.mxu0 %v9619_v59  ;;  %v3935_v58 = vpack.c.bf16 %v3919_v37, %v3919_v37  ;;  %v9709_v60 = vld [vmem:[%s9929_s26] sm:$0xff] }
 0x3d5   : > { %7626 = vmatprep.subr.bf16.mxu1 %v9622_v23 }
 0x3d6   : > { %7299 = vmatpush1.bf16.msra.mxu0 %v9617_v61 }
 0x3d7   : > { %7627 = vmatpush1.bf16.msra.mxu1 %v9620_v62  ;;  %7300 = vmatprep.subr.bf16.mxu0 %v9625_v36 }
 0x3d8   : > { %7628 = vmatprep.subr.bf16.mxu1 %v9628_v63 }
 0x3da   : > { %7301 = vmatpush1.bf16.msra.mxu0 %v9623_v0 }
 0x3db   : > { %7629 = vmatpush1.bf16.msra.mxu1 %v9626_v1  ;;  %7302 = vmatprep.subr.bf16.mxu0 %v9631_v2 }
 0x3dc   : > { %7630 = vmatprep.subr.bf16.mxu1 %v9634_v9  ;;  %v9711_v9 = vld [vmem:[%s9929_s26 + $0x10] sm:$0xff] }
 0x3de   : > { %7303 = vmatpush1.bf16.msra.mxu0 %v9629_v3 }
 0x3df   : > { %7631 = vmatpush1.bf16.msra.mxu1 %v9632_v5  ;;  %7304 = vmatprep.subr.bf16.mxu0 %v9637_v6 }
 0x3e0   : > { %7632 = vmatprep.subr.bf16.mxu1 %v9640_v7  ;;  %v9712_v7 = vld [vmem:[%s9929_s26 + $0x18] sm:$0xff]  ;;  %s161_s26 = sand.u32 1, %s9767_s13  }
 0x3e1   : > { %s7774_s7 = sshll.u32 %s161_s26, 5  ;;  %s7697_s16 = scalar_lea.sflag [#allocation3], %s161_s26 }
 0x3e2   : > { %7305 = vmatpush1.bf16.msra.mxu0 %v9635_v11  ;;  %s163_s9 = scalar_lea.vmem [#allocation2], %s7774_s7 }
 0x3e3   : > { %7633 = vmatpush1.bf16.msra.mxu1 %v9638_v4  ;;  %7306 = vmatprep.subr.bf16.mxu0 %v9643_v17  ;;  %s7711_s10 = sshll.u32 %s163_s9, 4  ;;  %s13028_s10 = int_to_ptr.vmem [resolvable:$true] %s7711_s10 }
 0x3e4   : > { %7634 = vmatprep.subr.bf16.mxu1 %v9646_v18  ;;  %s9713_s20 = scalar_lea.vmem %s13028_s10, 512  ;;  %p9720_p0 = scmp.lt.s32.totalorder %s13028_s10, %s9718_s25 }
 0x3e5   : > { %p9714_p11 = scmp.ne.s32.totalorder %s13028_s10, %s9713_s20  ;;  %p9721_p1 = scmp.lt.s32.totalorder %s9719_s27, %s9713_s20 }
 0x3e6   : > { %7307 = vmatpush1.bf16.msra.mxu0 %v9641_v19 }
 0x3e7   : > { %7635 = vmatpush1.bf16.msra.mxu1 %v9644_v20  ;;  %7308 = vmatprep.subr.bf16.mxu0 %v9649_v13  ;;  %p9715_p12 = pnand %p9714_p11, %p9836_p5  ;;  %p9722_p2 = por %p9721_p1, %p9720_p0 }
 0x3e8   : > { %7636 = vmatprep.subr.bf16.mxu1 %v9652_v21 }
 0x3e9   : > { %p9716_p13 = pneg %p9715_p12 }
 0x3ea   : > { %7309 = vmatpush1.bf16.msra.mxu0 %v9647_v22 }
 0x3eb   : > { %7637 = vmatpush1.bf16.msra.mxu1 %v9650_v25  ;;  %7310 = vmatprep.subr.bf16.mxu0 %v9655_v26  ;;  %p9723_p3 = pnand %p9722_p2, %p9716_p13 }
 0x3ec   : > { %7638 = vmatprep.subr.bf16.mxu1 %v9658_v27 }
 0x3ee   : > { %7311 = vmatpush1.bf16.msra.mxu0 %v9653_v28 }
 0x3ef   : > { %7639 = vmatpush1.bf16.msra.mxu1 %v9656_v29  ;;  %7312 = vmatprep.subr.bf16.mxu0 %v9661_v30 }
 0x3f0   : > { %7640 = vmatprep.subr.bf16.mxu1 %v9664_v57 }
 0x3f2   : > { %7313 = vmatpush1.bf16.msra.mxu0 %v9659_v31 }
 0x3f3   : > { %7641 = vmatpush1.bf16.msra.mxu1 %v9662_v33  ;;  %7314 = vmatprep.subr.bf16.mxu0 %v9667_v8 }
 0x3f4   : > { %7642 = vmatprep.subr.bf16.mxu1 %v9670_v34 }
 0x3f6   : > { %7315 = vmatpush1.bf16.msra.mxu0 %v9665_v35 }
 0x3f7   : > { %7643 = vmatpush1.bf16.msra.mxu1 %v9668_v38  ;;  %7316 = vmatprep.subr.bf16.mxu0 %v9673_v12 }
 0x3f8   : > { %7644 = vmatprep.subr.bf16.mxu1 %v9676_v15 }
 0x3fa   : > { %7317 = vmatpush1.bf16.msra.mxu0 %v9671_v39 }
 0x3fb   : > { %7645 = vmatpush1.bf16.msra.mxu1 %v9674_v41  ;;  %7318 = vmatprep.subr.bf16.mxu0 %v9679_v42 }
 0x3fc   : > { %7646 = vmatprep.subr.bf16.mxu1 %v9682_v43 }
 0x3fe   : > { %7319 = vmatpush1.bf16.msra.mxu0 %v9677_v44 }
 0x3ff   : > { %7647 = vmatpush1.bf16.msra.mxu1 %v9680_v10  ;;  %7320 = vmatprep.subr.bf16.mxu0 %v9685_v24 }
 0x400   : > { %7648 = vmatprep.subr.bf16.mxu1 %v9688_v32 }
 0x402   : > { %7321 = vmatpush1.bf16.msra.mxu0 %v9683_v47 }
 0x403   : > { %7649 = vmatpush1.bf16.msra.mxu1 %v9686_v48  ;;  %7322 = vmatprep.subr.bf16.mxu0 %v9691_v16 }
 0x404   : > { %7650 = vmatprep.subr.bf16.mxu1 %v9694_v49 }
 0x406   : > { %7323 = vmatpush1.bf16.msra.mxu0 %v9689_v50 }
 0x407   : > { %7651 = vmatpush1.bf16.msra.mxu1 %v9692_v40  ;;  %7324 = vmatprep.subr.bf16.mxu0 %v9697_v14 }
 0x408   : > { %7652 = vmatprep.subr.bf16.mxu1 %v9700_v51 }
 0x40a   : > { %7325 = vmatpush1.bf16.msra.mxu0 %v9695_v52 }
 0x40b   : > { %7653 = vmatpush1.bf16.msra.mxu1 %v9698_v53  ;;  %7326 = vmatprep.subr.bf16.mxu0 %v9703_v54 }
 0x40c   : > { %7654 = vmatprep.subr.bf16.mxu1 %v9706_v46 }
 0x40e   : > { %7327 = vmatpush1.bf16.msra.mxu0 %v9701_v55 }
 0x40f   : > { %7655 = vmatpush1.bf16.msra.mxu1 %v9704_v56 }
 0x411   : > { %7329 = vmatmul.mubr.bf16.vlgmr.msra.gmra.mrb[16].mxu0 %v3935_v58 }
 0x412   : > { %7657 = vmatmul.mubr.bf16.vlgmr.msra.gmra.mrb[16].mxu1 %v3935_v58 }
 0x4e4   : > { %v7330_v59 = vpop.f32.mrb[16].mxu0 }
 0x4e5   : > { %v8808_v23 = vadd.f32 %v9709_v60, %v7330_v59  ;;  %v7658_v61 = vpop.f32.mrb[16].mxu1  ;;  %v7332_v62 = vpop.f32.mrb[17].mxu0 }
 0x4e6   : > { %v8809_v36 = vadd.f32 %v9710_v45, %v7332_v62  ;;  %v7660_v63 = vpop.f32.mrb[17].mxu1  ;;  %v7334_v0 = vpop.f32.mrb[18].mxu0  ;;  %v8810_v3 = vadd.f32 %v9711_v9, %v7658_v61 }
 0x4e7   : > { %v7662_v1 = vpop.f32.mrb[18].mxu1  ;;  %v7335_v2 = vpop.f32.mrb[19].mxu0  ;;  %v8811_v11 = vadd.f32 %v9712_v7, %v7660_v63 }
 0x4e8   : > { %v7665_v5 = vadd.f32 %v8809_v36, %v8808_v23  ;;  %v7663_v6 = vpop.f32.mrb[19].mxu1 }
 0x4ea   : > { %v7666_v4 = vadd.f32 %v8810_v3, %v7665_v5 }
 0x4ec   : > { %v7667_v17 = vadd.f32 %v8811_v11, %v7666_v4 }
 0x4ee   : > { %7668 = vadd.xlane.f32.xlu0 %v7667_v17 }
 0x57b   : > { %v7669_v18 = vpop.xlane.xlu0 %7668 }
 0x57c   : > { %v7671_v19 = vmul.f32 0.001953125, %v7669_v18 }
 0x57e   : > { %v7672_v20 = vsub.f32 %v8808_v23, %v7671_v19  ;;  %v7673_v13 = vsub.f32 %v8809_v36, %v7671_v19  ;;  %v7674_v21 = vsub.f32 %v8810_v3, %v7671_v19  ;;  %v7675_v22 = vsub.f32 %v8811_v11, %v7671_v19 }
 0x580   : > { %v7676_v25 = vmul.f32 %v7672_v20, %v7672_v20  ;;  %v7677_v26 = vmul.f32 %v7673_v13, %v7673_v13  ;;  %v7678_v27 = vmul.f32 %v7674_v21, %v7674_v21  ;;  %v7679_v29 = vmul.f32 %v7675_v22, %v7675_v22 }
 0x582   : > { %v7680_v28 = vadd.f32 %v7677_v26, %v7676_v25 }
 0x584   : > { %v7681_v30 = vadd.f32 %v7680_v28, %v7678_v27 }
 0x586   : > { %v7682_v57 = vadd.f32 %v7681_v30, %v7679_v29 }
 0x588   : > { %7683 = vadd.xlane.f32.xlu0 %v7682_v57 }
 0x615   : > { %v7684_v31 = vpop.xlane.xlu0 %7683 }
 0x616   : > { %v7685_v33 = vmul.f32 0.001953125, %v7684_v31 }
 0x618   : > { %v7686_v8 = vadd.f32 1e-05, %v7685_v33 }
 0x61a   : > { %9707 = vrsqrt.f32 %v7686_v8 }
 0x624   : > { %v9708_v34 = vpop.eup %9707 }
 0x625   : > { %v7688_v35 = vmul.f32 %v9708_v34, %v7672_v20  ;;  %v7689_v38 = vmul.f32 %v9708_v34, %v7673_v13  ;;  %v7690_v12 = vmul.f32 %v9708_v34, %v7674_v21  ;;  %v7691_v15 = vmul.f32 %v9708_v34, %v7675_v22 }
 0x627   : > { %7692 = vst [vmem:[%s163_s9] sm:$0xff] %v7688_v35  ;;  %7693 = vst [vmem:[%s163_s9 + $0x8] sm:$0xff] %v7689_v38 }
 0x628   : > { %7694 = vst [vmem:[%s163_s9 + $0x10] sm:$0xff] %v7690_v12  ;;  %7695 = vst [vmem:[%s163_s9 + $0x18] sm:$0xff] %v7691_v15 }
 0x629   : > { %9726 = shalt.err (!%p9723_p3)
}
 0x62a   : > { %s9727_s28 = scalar_lea.hbm %s13026_s19, 512  ;;  %s9731_s4 = scalar_lea.hbm %s13071_s3, 1024 }
 0x62b   : > { %p9728_p4 = scmp.ne.s32.totalorder %s13026_s19, %s9727_s28  ;;  %p9732_p9 = scmp.lt.u32.totalorder %s13026_s19, %s13071_s3 }
 0x62c   : > { %p9733_p10 = scmp.lt.u32.totalorder %s9731_s4, %s9727_s28  ;;  %p9735_p12 = scmp.lt.u32.totalorder %s9727_s28, %s13026_s19 }
 0x62d   : > { %p9729_p7 = pnand %p9728_p4, %p9836_p5 }
 0x62e   : > { %p9734_p11 = por %p9733_p10, %p9732_p9 }
 0x62f   : > { %p9730_p8 = pneg %p9729_p7 }
 0x630   : > { %p9736_p13 = por %p9735_p12, %p9734_p11 }
 0x632   : > { %p9737_p0 = pnand %p9736_p13, %p9730_p8 }
 0x634   : > { %9740 = shalt.err (!%p9737_p0)
}
 0x635   : > { %8900 = dma.vmem_to_hbm [thread:$0]  (%p9836_p5), %s13028_s10, 512, %s13026_s19, %s7697_s16  }
 0x636 PF: > { %p8906_p1 = scmp.ge.s32.totalorder %s9775_s15, 2  ;;  %s7723_s26 = sand.u32 1, %s9763_s12  }
 0x637   : > { %s7724_s7 = scalar_lea.sflag [#allocation3], %s7723_s26 }
 0x638   : > { %p8903_p2 = pnand %p8906_p1, %p9840_p6 }
 0x63a   : > { %9758 = dma.done.wait (!%p8903_p2), %s7724_s7, 512  }
 0x63b   : > { %9760 = vsyncadd (!%p8903_p2), %s7724_s7, 4294966784  ;;  %p13_p3 = scmp.ge.s32.totalorder %s9823_s18, 4   ;;  %s13074_s12 = smov %s9767_s13 }
 0x63c   : > { %s13075_s13 = smov %s9771_s14  ;;  %s13076_s14 = smov %s9834_s21 }
 0x63d   : > { %s13077_s15 = smov %s9823_s18  ;;  %15 = sbr.rel (!%p13_p3) target bundleno = 3 (0x3), region = 67 }
 0x644   :  { %7729 = vsyncpa [#allocation3], 1 }
 0x645   :  { %7731 = vsyncpa [#allocation3 + $0x1], 1 }

</bundles_post_ra>
